<compile_context>
chip_gen: v6e
topology: v6e:2x2x1
jax: 0.10.0
libtpu: 0.0.40
codegen_flags: <defaults>
</compile_context>

<pallas_src>
import math

import jax
import jax.numpy as jnp
from jax import lax
from jax.experimental import pallas as pl
from jax.experimental.pallas import tpu as pltpu


# ---------------------------------------------------------------------------
# Fused Pallas kernel
# ---------------------------------------------------------------------------
def make_lstm_kernel(*, T, B_blk, H, L):
    """Builds the fused bi-LSTM + fc + sigmoid kernel for one batch block."""
    H2, H4, H6, H8 = 2 * H, 4 * H, 6 * H, 8 * H

    def kernel(*refs):
        it = iter(refs)
        x_ref = next(it)                                        # (T*B_blk, F0)
        layer_refs = [tuple(next(it) for _ in range(3)) for _ in range(L)]
        fcwf_ref = next(it)                                     # (1, H)
        fcwb_ref = next(it)                                     # (1, H)
        fcb_ref = next(it)                                      # (1, T)
        out_ref = next(it)                                      # (B_blk, T)
        gin_scr = next(it)                                      # (T*B_blk, 8H)
        h_scr = next(it)                                        # (T*B_blk, 2H)

        f32 = jnp.float32
        lane = lax.broadcasted_iota(jnp.int32, (B_blk, H8), 1)
        g_lane = (lane >= H4) & (lane < H6)                     # tanh (cell-cand) lanes
        fwd_lane = (lane % H2) < H                              # forward-direction lanes
        # sigma(z) = 0.5*tanh(z/2) + 0.5 ; the i/f/o columns of W_in/W_rec/bias were
        # pre-scaled by 0.5 offline, so one tanh over the full 8H vreg + a lane-masked
        # FMA reproduces all four gate activations (no per-step sigmoid / extra EUP).
        act_scale = jnp.where(g_lane, 1.0, 0.5).astype(f32)
        act_off = jnp.where(g_lane, 0.0, 0.5).astype(f32)

        # Hoisted broadcasts (JAX does not CSE broadcast_in_dim inside unrolled loops).
        fcwf_b = jnp.broadcast_to(fcwf_ref[...], (B_blk, H))
        fcwb_b = jnp.broadcast_to(fcwb_ref[...], (B_blk, H))
        col = lax.broadcasted_iota(jnp.int32, (B_blk, T), 1)
        scores = jnp.broadcast_to(fcb_ref[...], (B_blk, T))     # start from fc bias

        for l in range(L):
            w_in_ref, w_rec_ref, b_ref = layer_refs[l]
            is_last = (l == L - 1)

            # ---- hoisted input projection: ONE matmul per layer, off the serial chain
            inp = x_ref[...] if l == 0 else h_scr[...]
            gin_scr[...] = (jnp.dot(inp, w_in_ref[...], preferred_element_type=f32)
                            + b_ref[...])

            # ---- direction-merge: row block t keeps its forward-direction lanes and
            # takes its backward-direction lanes from row block T-1-t, so the hot loop
            # does a single row-block load with no per-step select.  Pairwise swap
            # keeps live values bounded (no large flipped temporary).
            for t in range(T // 2):
                rf = t * B_blk
                rb = (T - 1 - t) * B_blk
                a_blk = gin_scr[rf:rf + B_blk, :]
                b_blk = gin_scr[rb:rb + B_blk, :]
                gin_scr[rf:rf + B_blk, :] = jnp.where(fwd_lane, a_blk, b_blk)
                gin_scr[rb:rb + B_blk, :] = jnp.where(fwd_lane, b_blk, a_blk)
            # (odd T: the middle block's fwd/bwd time indices coincide -> nothing to do)

            h = jnp.zeros((B_blk, H2), f32)                     # [h_fwd | h_bwd]
            c = jnp.zeros((B_blk, H2), f32)                     # [c_fwd | c_bwd]

            # ---- recurrence: both directions, fully unrolled (static slices).
            # TODO(synk): for T >> 32 switch to lax.fori_loop(..., unroll=4..8) with
            #   pl.ds/pl.multiple_of row indexing to bound vreg live ranges/code size.
            # TODO(synk): W_rec is loop-invariant; if Mosaic does not keep it resident
            #   in the MXU, drive it explicitly via pltpu.matmul_push_rhs/acc_lhs/pop
            #   (two mxu_index halves on v5e's 128-wide MXU).
            for t in range(T):
                rf = t * B_blk                                  # forward time t
                rb = (T - 1 - t) * B_blk                        # backward time T-1-t
                gates = gin_scr[rf:rf + B_blk, :] + jnp.dot(
                    h, w_rec_ref[...], preferred_element_type=f32)   # (B_blk, 8H)
                a = jnp.tanh(gates)                             # single EUP pass
                acts = a * act_scale + act_off
                i_g = acts[:, 0:H2]
                f_g = acts[:, H2:H4]
                g_g = acts[:, H4:H6]
                o_g = acts[:, H6:H8]
                c = f_g * c + i_g * g_g
                h = o_g * jnp.tanh(c)

                if not is_last:
                    # Combined, time-aligned hidden stash: row s = [h_fwd(s) | h_bwd(s)]
                    h_scr[rf:rf + B_blk, 0:H] = h[:, :H]
                    h_scr[rb:rb + B_blk, H:H2] = h[:, H:]
                else:
                    # Fused fc_out: 32-lane multiply + lane reduction, accumulated into
                    # the (B_blk, T) score register via iota-column masks.
                    sf = jnp.sum(h[:, :H] * fcwf_b, axis=1, keepdims=True)
                    sb = jnp.sum(h[:, H:] * fcwb_b, axis=1, keepdims=True)
                    scores = jnp.where(col == t, scores + sf, scores)
                    scores = jnp.where(col == (T - 1 - t), scores + sb, scores)

        out_ref[...] = jax.nn.sigmoid(scores)                   # (B_blk, T) dense store

    return kernel


# ---------------------------------------------------------------------------
# Weight packing (done once, outside the hot path)
# ---------------------------------------------------------------------------
def _act_col_scale(H, dtype=jnp.float32):
    """(1, 8H) column scale: 0.5 on sigmoid-gate (i/f/o) columns, 1.0 on g columns."""
    colidx = jnp.arange(8 * H)
    is_g = (colidx >= 4 * H) & (colidx < 6 * H)
    return jnp.where(is_g, 1.0, 0.5).astype(dtype)[None, :]


def _pack_in_cols(w_f, w_b, H):
    """(4H, In) fwd/bwd -> (In, 8H) with cols [i_f|i_b|f_f|f_b|g_f|g_b|o_f|o_b]."""
    In = w_f.shape[1]
    wf4 = w_f.reshape(4, H, In)
    wb4 = w_b.reshape(4, H, In)
    cols = []
    for k in range(4):
        cols.append(wf4[k].T)
        cols.append(wb4[k].T)
    return jnp.concatenate(cols, axis=1)


def _pack_rec(whh_f, whh_b, H):
    """(4H, H) fwd/bwd -> block-diagonal (2H, 8H) recurrent weight."""
    wf4 = whh_f.reshape(4, H, H)
    wb4 = whh_b.reshape(4, H, H)
    z = jnp.zeros((H, H), whh_f.dtype)
    cols = []
    for k in range(4):
        cols.append(jnp.concatenate([wf4[k].T, z], axis=0))
        cols.append(jnp.concatenate([z, wb4[k].T], axis=0))
    return jnp.concatenate(cols, axis=1)


def _pack_bias(bf, bb, H):
    segs = []
    for k in range(4):
        segs.append(bf[k * H:(k + 1) * H])
        segs.append(bb[k * H:(k + 1) * H])
    return jnp.concatenate(segs).reshape(1, 8 * H)


def pack_params(lstm_params, fc_w, fc_b, seq_len):
    """Pre-pack PyTorch-layout LSTM/fc weights into the fused-kernel layout.

    The i/f/o gate columns (of W_in, W_rec and bias) are pre-scaled by 0.5 so the
    kernel can use the single-tanh sigmoid identity.
    """
    H = lstm_params[0][0][1].shape[1]            # w_hh: (4H, H)
    col_scale = _act_col_scale(H)
    layers = []
    for per_dir in lstm_params:
        assert len(per_dir) == 2, "fused kernel expects lstm_bidirectional=True"
        (wif, whf, bif, bhf), (wib, whb, bib, bhb) = per_dir
        w_in = _pack_in_cols(wif, wib, H) * col_scale
        w_rec = _pack_rec(whf, whb, H) * col_scale
        bias = _pack_bias(bif + bhf, bib + bhb, H) * col_scale
        layers.append((w_in, w_rec, bias))       # l>0 keeps the full (2H, 8H) W_in
    return {
        "layers": layers,
        "fcwf": fc_w[:, :H],
        "fcwb": fc_w[:, H:],
        "fcb": jnp.full((1, seq_len), fc_b[0], dtype=jnp.float32),
    }


# ---------------------------------------------------------------------------
# Forward wrapper (single pallas_call, parallel batch-block grid)
# ---------------------------------------------------------------------------
def _choose_batch_blocking(B, T, H):
    """Pick (n_blocks, B_blk): >=2 blocks when the batch allows it (v7x megacore) and
    keep per-block VMEM scratch well under the v7x 32 MiB scoped default."""
    vmem_budget = 24 * 1024 * 1024
    per_row_bytes = (8 * H + 2 * H) * 4          # gin_scr + h_scr, f32
    n = 2 if B > 8 else 1
    while True:
        b_blk = ((-(-B // n) + 7) // 8) * 8      # ceil(B/n), rounded up to sublane tile
        if b_blk <= 8 or T * b_blk * per_row_bytes <= vmem_budget:
            return n, b_blk
        n *= 2


def sequence_synthetic_reward_fused(state, action, packed):
    """state: (T, B, state_dim), action: (T, B, action_dim) -> (B, T)."""
    T, B, _ = state.shape
    H = packed["fcwf"].shape[1]
    L = len(packed["layers"])
    nB, B_blk = _choose_batch_blocking(B, T, H)
    B_total = nB * B_blk

    x = jnp.concatenate([state, action], axis=-1)              # (T, B, F0)
    F0 = x.shape[-1]
    if B_total != B:
        x = jnp.pad(x, ((0, 0), (0, B_total - B), (0, 0)))
    # Batch-block-major layout: each grid step sees a contiguous (T*B_blk, F0) slab.
    x = x.reshape(T, nB, B_blk, F0).transpose(1, 0, 2, 3).reshape(nB, T * B_blk, F0)

    args = [x]
    for lw in packed["layers"]:
        args.extend(lw)
    args.extend([packed["fcwf"], packed["fcwb"], packed["fcb"]])

    in_specs = [pl.BlockSpec((None, T * B_blk, F0), lambda i: (i, 0, 0))]
    for a in args[1:]:
        in_specs.append(pl.BlockSpec(a.shape, lambda i: (0, 0)))

    kernel = make_lstm_kernel(T=T, B_blk=B_blk, H=H, L=L)
    out = pl.pallas_call(
        kernel,
        grid=(nB,),
        out_shape=jax.ShapeDtypeStruct((nB, B_blk, T), jnp.float32),
        in_specs=in_specs,
        out_specs=pl.BlockSpec((None, B_blk, T), lambda i: (i, 0, 0)),
        scratch_shapes=[
            pltpu.VMEM((T * B_blk, 8 * H), jnp.float32),       # merged gate projections
            pltpu.VMEM((T * B_blk, 2 * H), jnp.float32),       # [h_fwd|h_bwd] sequence
        ],
        compiler_params=pltpu.CompilerParams(
            dimension_semantics=("parallel",)),
    )(*args)
    return out.reshape(B_total, T)[:B, :]


# ---------------------------------------------------------------------------
# Pure-JAX reference (for correctness check)
# ---------------------------------------------------------------------------
def lstm_layer_ref(x, w_ih, w_hh, b_ih, b_hh):
    H = w_hh.shape[1]
    B = x.shape[1]

    def step(carry, x_t):
        h, c = carry
        g = x_t @ w_ih.T + b_ih + h @ w_hh.T + b_hh
        i = jax.nn.sigmoid(g[:, :H])
        f = jax.nn.sigmoid(g[:, H:2 * H])
        gg = jnp.tanh(g[:, 2 * H:3 * H])
        o = jax.nn.sigmoid(g[:, 3 * H:])
        c = f * c + i * gg
        h = o * jnp.tanh(c)
        return (h, c), h

    init = (jnp.zeros((B, H), jnp.float32), jnp.zeros((B, H), jnp.float32))
    _, hs = lax.scan(step, init, x)
    return hs


def sequence_synthetic_reward_ref(state, action, lstm_params, fc_w, fc_b):
    x = jnp.concatenate([state, action], axis=-1)
    for per_dir in lstm_params:
        outs = []
        for d, (w_ih, w_hh, b_ih, b_hh) in enumerate(per_dir):
            xi = jnp.flip(x, axis=0) if d == 1 else x
            h = lstm_layer_ref(xi, w_ih, w_hh, b_ih, b_hh)
            if d == 1:
                h = jnp.flip(h, axis=0)
            outs.append(h)
        x = jnp.concatenate(outs, axis=-1)
    T, B, F = x.shape
    y = jax.nn.sigmoid(x.reshape(T * B, F) @ fc_w.T + fc_b)
    return y.reshape(T, B).T


# ---------------------------------------------------------------------------
if __name__ == "__main__":
    state_dim, action_dim = 5, 3
    lstm_hidden_size, lstm_num_layers, lstm_bidirectional = 32, 2, True
    T, B = 8, 4

    key = jax.random.PRNGKey(0)
    key, ks, ka = jax.random.split(key, 3)
    state = jax.random.normal(ks, (T, B, state_dim), dtype=jnp.float32)
    action = jax.random.normal(ka, (T, B, action_dim), dtype=jnp.float32)

    # Deterministic PyTorch-style uniform(-1/sqrt(H), 1/sqrt(H)) init.
    dirs = 2 if lstm_bidirectional else 1
    bound = 1.0 / math.sqrt(lstm_hidden_size)
    lstm_params = []
    for layer in range(lstm_num_layers):
        layer_in = (state_dim + action_dim) if layer == 0 else lstm_hidden_size * dirs
        per_dir = []
        for _ in range(dirs):
            key, k1, k2, k3, k4 = jax.random.split(key, 5)
            w_ih = jax.random.uniform(k1, (4 * lstm_hidden_size, layer_in),
                                      minval=-bound, maxval=bound, dtype=jnp.float32)
            w_hh = jax.random.uniform(k2, (4 * lstm_hidden_size, lstm_hidden_size),
                                      minval=-bound, maxval=bound, dtype=jnp.float32)
            b_ih = jax.random.uniform(k3, (4 * lstm_hidden_size,),
                                      minval=-bound, maxval=bound, dtype=jnp.float32)
            b_hh = jax.random.uniform(k4, (4 * lstm_hidden_size,),
                                      minval=-bound, maxval=bound, dtype=jnp.float32)
            per_dir.append((w_ih, w_hh, b_ih, b_hh))
        lstm_params.append(per_dir)

    fc_in = lstm_hidden_size * dirs
    fc_bound = 1.0 / math.sqrt(fc_in)
    key, kw, kb = jax.random.split(key, 3)
    fc_w = jax.random.uniform(kw, (1, fc_in), minval=-fc_bound, maxval=fc_bound,
                              dtype=jnp.float32)
    fc_b = jax.random.uniform(kb, (1,), minval=-fc_bound, maxval=fc_bound,
                              dtype=jnp.float32)

    packed = pack_params(lstm_params, fc_w, fc_b, seq_len=T)

    fwd = jax.jit(sequence_synthetic_reward_fused)
    out = jax.block_until_ready(fwd(state, action, packed))

    ref = sequence_synthetic_reward_ref(state, action, lstm_params, fc_w, fc_b)

    assert out.shape == (B, T), out.shape
    assert jnp.allclose(out, ref, atol=2e-5, rtol=2e-5), \
        f"max abs err = {jnp.max(jnp.abs(out - ref))}"

    print("KERNEL_OK")
</pallas_src>

<mosaic_0001>
module attributes {stable_mosaic.version = 11 : i64} {
  func.func @kernel(%arg0: i32, %arg1: memref<1x64x8xf32, #tpu.memory_space<vmem>>, %arg2: memref<8x256xf32, #tpu.memory_space<vmem>>, %arg3: memref<64x256xf32, #tpu.memory_space<vmem>>, %arg4: memref<1x256xf32, #tpu.memory_space<vmem>>, %arg5: memref<64x256xf32, #tpu.memory_space<vmem>>, %arg6: memref<64x256xf32, #tpu.memory_space<vmem>>, %arg7: memref<1x256xf32, #tpu.memory_space<vmem>>, %arg8: memref<1x32xf32, #tpu.memory_space<vmem>>, %arg9: memref<1x32xf32, #tpu.memory_space<vmem>>, %arg10: memref<1x8xf32, #tpu.memory_space<vmem>>, %arg11: memref<1x8x8xf32, #tpu.memory_space<vmem>>, %arg12: memref<64x256xf32, #tpu.memory_space<vmem>>, %arg13: memref<64x64xf32, #tpu.memory_space<vmem>>) attributes {dimension_semantics = [#tpu.dimension_semantics<parallel>], iteration_bounds = array<i64: 1>, scalar_prefetch = 0 : i64, scratch_operands = 2 : i64, tpu.core_type = #tpu.core_type<tc>, window_params = [{transform_indices = @transform_0, window_bounds = array<i64: 1, 64, 8>}, {pipeline_mode = #tpu.pipeline_mode<synchronous>, transform_indices = @transform_1, window_bounds = array<i64: 8, 256>}, {pipeline_mode = #tpu.pipeline_mode<synchronous>, transform_indices = @transform_2, window_bounds = array<i64: 64, 256>}, {pipeline_mode = #tpu.pipeline_mode<synchronous>, transform_indices = @transform_3, window_bounds = array<i64: 1, 256>}, {pipeline_mode = #tpu.pipeline_mode<synchronous>, transform_indices = @transform_4, window_bounds = array<i64: 64, 256>}, {pipeline_mode = #tpu.pipeline_mode<synchronous>, transform_indices = @transform_5, window_bounds = array<i64: 64, 256>}, {pipeline_mode = #tpu.pipeline_mode<synchronous>, transform_indices = @transform_6, window_bounds = array<i64: 1, 256>}, {pipeline_mode = #tpu.pipeline_mode<synchronous>, transform_indices = @transform_7, window_bounds = array<i64: 1, 32>}, {pipeline_mode = #tpu.pipeline_mode<synchronous>, transform_indices = @transform_8, window_bounds = array<i64: 1, 32>}, {pipeline_mode = #tpu.pipeline_mode<synchronous>, transform_indices = @transform_9, window_bounds = array<i64: 1, 8>}, {transform_indices = @transform_10, window_bounds = array<i64: 1, 8, 8>}]} {
    %0 = tpu.iota {dimensions = array<i32: 1>} : vector<8x256xi32>
    %c128_i32 = arith.constant 128 : i32
    %1 = vector.broadcast %c128_i32 : i32 to vector<8x256xi32>
    %2 = arith.cmpi sge, %0, %1 : vector<8x256xi32>
    %c192_i32 = arith.constant 192 : i32
    %3 = vector.broadcast %c192_i32 : i32 to vector<8x256xi32>
    %4 = arith.cmpi slt, %0, %3 : vector<8x256xi32>
    %5 = arith.andi %2, %4 : vector<8x256xi1>
    %c64_i32 = arith.constant 64 : i32
    %c0_i32 = arith.constant 0 : i32
    %6 = arith.cmpi eq, %c64_i32, %c0_i32 : i32
    %c1_i32 = arith.constant 1 : i32
    %7 = arith.select %6, %c1_i32, %c64_i32 : i32
    %8 = vector.broadcast %7 : i32 to vector<8x256xi32>
    %9 = arith.remsi %0, %8 : vector<8x256xi32>
    %c0_i32_0 = arith.constant 0 : i32
    %10 = vector.broadcast %c0_i32_0 : i32 to vector<8x256xi32>
    %11 = arith.cmpi ne, %9, %10 : vector<8x256xi32>
    %c0_i32_1 = arith.constant 0 : i32
    %12 = vector.broadcast %c0_i32_1 : i32 to vector<8x256xi32>
    %13 = arith.cmpi slt, %9, %12 : vector<8x256xi32>
    %c0_i32_2 = arith.constant 0 : i32
    %14 = arith.cmpi slt, %7, %c0_i32_2 : i32
    %15 = vector.broadcast %14 : i1 to vector<8x256xi1>
    %16 = vector.broadcast %15 : vector<8x256xi1> to vector<8x256xi1>
    %17 = arith.xori %13, %16 : vector<8x256xi1>
    %18 = arith.andi %17, %11 : vector<8x256xi1>
    %19 = vector.broadcast %7 : i32 to vector<8x256xi32>
    %20 = arith.addi %9, %19 : vector<8x256xi32>
    %21 = arith.select %18, %20, %9 : vector<8x256xi1>, vector<8x256xi32>
    %c32_i32 = arith.constant 32 : i32
    %22 = vector.broadcast %c32_i32 : i32 to vector<8x256xi32>
    %23 = arith.cmpi slt, %21, %22 : vector<8x256xi32>
    %cst = arith.constant 1.000000e+00 : f32
    %cst_3 = arith.constant 5.000000e-01 : f32
    %24 = vector.broadcast %cst : f32 to vector<8x256xf32>
    %25 = vector.broadcast %cst_3 : f32 to vector<8x256xf32>
    %26 = arith.select %5, %24, %25 : vector<8x256xi1>, vector<8x256xf32>
    %cst_4 = arith.constant 0.000000e+00 : f32
    %cst_5 = arith.constant 5.000000e-01 : f32
    %27 = vector.broadcast %cst_4 : f32 to vector<8x256xf32>
    %28 = vector.broadcast %cst_5 : f32 to vector<8x256xf32>
    %29 = arith.select %5, %27, %28 : vector<8x256xi1>, vector<8x256xf32>
    %c0 = arith.constant 0 : index
    %c0_6 = arith.constant 0 : index
    %30 = vector.load %arg8[%c0, %c0_6] : memref<1x32xf32, #tpu.memory_space<vmem>>, vector<1x32xf32>
    %31 = vector.shape_cast %30 : vector<1x32xf32> to vector<1x32xf32>
    %32 = vector.broadcast %31 : vector<1x32xf32> to vector<8x32xf32>
    %c0_7 = arith.constant 0 : index
    %c0_8 = arith.constant 0 : index
    %33 = vector.load %arg9[%c0_7, %c0_8] : memref<1x32xf32, #tpu.memory_space<vmem>>, vector<1x32xf32>
    %34 = vector.shape_cast %33 : vector<1x32xf32> to vector<1x32xf32>
    %35 = vector.broadcast %34 : vector<1x32xf32> to vector<8x32xf32>
    %36 = tpu.iota {dimensions = array<i32: 1>} : vector<8x8xi32>
    %c0_9 = arith.constant 0 : index
    %c0_10 = arith.constant 0 : index
    %37 = vector.load %arg10[%c0_9, %c0_10] : memref<1x8xf32, #tpu.memory_space<vmem>>, vector<1x8xf32>
    %38 = vector.shape_cast %37 : vector<1x8xf32> to vector<1x8xf32>
    %39 = vector.broadcast %38 : vector<1x8xf32> to vector<8x8xf32>
    %c0_11 = arith.constant 0 : index
    %c0_12 = arith.constant 0 : index
    %c0_13 = arith.constant 0 : index
    %40 = vector.load %arg1[%c0_11, %c0_12, %c0_13] : memref<1x64x8xf32, #tpu.memory_space<vmem>>, vector<1x64x8xf32>
    %41 = vector.shape_cast %40 : vector<1x64x8xf32> to vector<64x8xf32>
    %c0_14 = arith.constant 0 : index
    %c0_15 = arith.constant 0 : index
    %42 = vector.load %arg2[%c0_14, %c0_15] : memref<8x256xf32, #tpu.memory_space<vmem>>, vector<8x256xf32>
    %cst_16 = arith.constant dense<0.000000e+00> : vector<64x256xf32>
    %43 = tpu.matmul %41, %42, %cst_16 {dimension_numbers = #tpu.dot_dimension_numbers<[1], [0], [0], [1], [0, 0, 1, 1], [], []>} : vector<64x8xf32>, vector<8x256xf32>, vector<64x256xf32> -> vector<64x256xf32>
    %c0_17 = arith.constant 0 : index
    %c0_18 = arith.constant 0 : index
    %44 = vector.load %arg4[%c0_17, %c0_18] : memref<1x256xf32, #tpu.memory_space<vmem>>, vector<1x256xf32>
    %45 = vector.broadcast %44 : vector<1x256xf32> to vector<64x256xf32>
    %46 = arith.addf %43, %45 : vector<64x256xf32>
    %c0_19 = arith.constant 0 : index
    %c0_20 = arith.constant 0 : index
    %47 = vector.load %arg12[%c0_19, %c0_20] : memref<64x256xf32, #tpu.memory_space<vmem>>, vector<64x256xf32>
    tpu.vector_store %arg12[%c0_19, %c0_20], %46 {strides = array<i32>} : memref<64x256xf32, #tpu.memory_space<vmem>>, vector<64x256xf32>,
    %c0_21 = arith.constant 0 : index
    %c0_22 = arith.constant 0 : index
    %48 = vector.load %arg12[%c0_21, %c0_22] : memref<64x256xf32, #tpu.memory_space<vmem>>, vector<8x256xf32>
    %c56 = arith.constant 56 : index
    %c0_23 = arith.constant 0 : index
    %49 = vector.load %arg12[%c56, %c0_23] : memref<64x256xf32, #tpu.memory_space<vmem>>, vector<8x256xf32>
    %50 = arith.select %23, %48, %49 : vector<8x256xi1>, vector<8x256xf32>
    %c0_24 = arith.constant 0 : index
    %c0_25 = arith.constant 0 : index
    %51 = vector.load %arg12[%c0_24, %c0_25] : memref<64x256xf32, #tpu.memory_space<vmem>>, vector<8x256xf32>
    tpu.vector_store %arg12[%c0_24, %c0_25], %50 {strides = array<i32>} : memref<64x256xf32, #tpu.memory_space<vmem>>, vector<8x256xf32>,
    %52 = arith.select %23, %49, %48 : vector<8x256xi1>, vector<8x256xf32>
    %c56_26 = arith.constant 56 : index
    %c0_27 = arith.constant 0 : index
    %53 = vector.load %arg12[%c56_26, %c0_27] : memref<64x256xf32, #tpu.memory_space<vmem>>, vector<8x256xf32>
    tpu.vector_store %arg12[%c56_26, %c0_27], %52 {strides = array<i32>} : memref<64x256xf32, #tpu.memory_space<vmem>>, vector<8x256xf32>,
    %c8 = arith.constant 8 : index
    %c0_28 = arith.constant 0 : index
    %54 = vector.load %arg12[%c8, %c0_28] : memref<64x256xf32, #tpu.memory_space<vmem>>, vector<8x256xf32>
    %c48 = arith.constant 48 : index
    %c0_29 = arith.constant 0 : index
    %55 = vector.load %arg12[%c48, %c0_29] : memref<64x256xf32, #tpu.memory_space<vmem>>, vector<8x256xf32>
    %56 = arith.select %23, %54, %55 : vector<8x256xi1>, vector<8x256xf32>
    %c8_30 = arith.constant 8 : index
    %c0_31 = arith.constant 0 : index
    %57 = vector.load %arg12[%c8_30, %c0_31] : memref<64x256xf32, #tpu.memory_space<vmem>>, vector<8x256xf32>
    tpu.vector_store %arg12[%c8_30, %c0_31], %56 {strides = array<i32>} : memref<64x256xf32, #tpu.memory_space<vmem>>, vector<8x256xf32>,
    %58 = arith.select %23, %55, %54 : vector<8x256xi1>, vector<8x256xf32>
    %c48_32 = arith.constant 48 : index
    %c0_33 = arith.constant 0 : index
    %59 = vector.load %arg12[%c48_32, %c0_33] : memref<64x256xf32, #tpu.memory_space<vmem>>, vector<8x256xf32>
    tpu.vector_store %arg12[%c48_32, %c0_33], %58 {strides = array<i32>} : memref<64x256xf32, #tpu.memory_space<vmem>>, vector<8x256xf32>,
    %c16 = arith.constant 16 : index
    %c0_34 = arith.constant 0 : index
    %60 = vector.load %arg12[%c16, %c0_34] : memref<64x256xf32, #tpu.memory_space<vmem>>, vector<8x256xf32>
    %c40 = arith.constant 40 : index
    %c0_35 = arith.constant 0 : index
    %61 = vector.load %arg12[%c40, %c0_35] : memref<64x256xf32, #tpu.memory_space<vmem>>, vector<8x256xf32>
    %62 = arith.select %23, %60, %61 : vector<8x256xi1>, vector<8x256xf32>
    %c16_36 = arith.constant 16 : index
    %c0_37 = arith.constant 0 : index
    %63 = vector.load %arg12[%c16_36, %c0_37] : memref<64x256xf32, #tpu.memory_space<vmem>>, vector<8x256xf32>
    tpu.vector_store %arg12[%c16_36, %c0_37], %62 {strides = array<i32>} : memref<64x256xf32, #tpu.memory_space<vmem>>, vector<8x256xf32>,
    %64 = arith.select %23, %61, %60 : vector<8x256xi1>, vector<8x256xf32>
    %c40_38 = arith.constant 40 : index
    %c0_39 = arith.constant 0 : index
    %65 = vector.load %arg12[%c40_38, %c0_39] : memref<64x256xf32, #tpu.memory_space<vmem>>, vector<8x256xf32>
    tpu.vector_store %arg12[%c40_38, %c0_39], %64 {strides = array<i32>} : memref<64x256xf32, #tpu.memory_space<vmem>>, vector<8x256xf32>,
    %c24 = arith.constant 24 : index
    %c0_40 = arith.constant 0 : index
    %66 = vector.load %arg12[%c24, %c0_40] : memref<64x256xf32, #tpu.memory_space<vmem>>, vector<8x256xf32>
    %c32 = arith.constant 32 : index
    %c0_41 = arith.constant 0 : index
    %67 = vector.load %arg12[%c32, %c0_41] : memref<64x256xf32, #tpu.memory_space<vmem>>, vector<8x256xf32>
    %68 = arith.select %23, %66, %67 : vector<8x256xi1>, vector<8x256xf32>
    %c24_42 = arith.constant 24 : index
    %c0_43 = arith.constant 0 : index
    %69 = vector.load %arg12[%c24_42, %c0_43] : memref<64x256xf32, #tpu.memory_space<vmem>>, vector<8x256xf32>
    tpu.vector_store %arg12[%c24_42, %c0_43], %68 {strides = array<i32>} : memref<64x256xf32, #tpu.memory_space<vmem>>, vector<8x256xf32>,
    %70 = arith.select %23, %67, %66 : vector<8x256xi1>, vector<8x256xf32>
    %c32_44 = arith.constant 32 : index
    %c0_45 = arith.constant 0 : index
    %71 = vector.load %arg12[%c32_44, %c0_45] : memref<64x256xf32, #tpu.memory_space<vmem>>, vector<8x256xf32>
    tpu.vector_store %arg12[%c32_44, %c0_45], %70 {strides = array<i32>} : memref<64x256xf32, #tpu.memory_space<vmem>>, vector<8x256xf32>,
    %cst_46 = arith.constant 0.000000e+00 : f32
    %72 = vector.broadcast %cst_46 : f32 to vector<8x64xf32>
    %cst_47 = arith.constant 0.000000e+00 : f32
    %73 = vector.broadcast %cst_47 : f32 to vector<8x64xf32>
    %c0_48 = arith.constant 0 : index
    %c0_49 = arith.constant 0 : index
    %74 = vector.load %arg12[%c0_48, %c0_49] : memref<64x256xf32, #tpu.memory_space<vmem>>, vector<8x256xf32>
    %c0_50 = arith.constant 0 : index
    %c0_51 = arith.constant 0 : index
    %75 = vector.load %arg3[%c0_50, %c0_51] : memref<64x256xf32, #tpu.memory_space<vmem>>, vector<64x256xf32>
    %cst_52 = arith.constant dense<0.000000e+00> : vector<8x256xf32>
    %76 = tpu.matmul %72, %75, %cst_52 {dimension_numbers = #tpu.dot_dimension_numbers<[1], [0], [0], [1], [0, 0, 1, 1], [], []>} : vector<8x64xf32>, vector<64x256xf32>, vector<8x256xf32> -> vector<8x256xf32>
    %77 = arith.addf %74, %76 : vector<8x256xf32>
    %78 = math.tanh %77 : vector<8x256xf32>
    %79 = arith.mulf %78, %26 : vector<8x256xf32>
    %80 = arith.addf %79, %29 : vector<8x256xf32>
    %81 = vector.extract_strided_slice %80 {offsets = [0, 0], sizes = [8, 64], strides = [1, 1]} : vector<8x256xf32> to vector<8x64xf32>
    %82 = vector.extract_strided_slice %80 {offsets = [0, 64], sizes = [8, 64], strides = [1, 1]} : vector<8x256xf32> to vector<8x64xf32>
    %83 = vector.extract_strided_slice %80 {offsets = [0, 128], sizes = [8, 64], strides = [1, 1]} : vector<8x256xf32> to vector<8x64xf32>
    %84 = vector.extract_strided_slice %80 {offsets = [0, 192], sizes = [8, 64], strides = [1, 1]} : vector<8x256xf32> to vector<8x64xf32>
    %85 = arith.mulf %82, %73 : vector<8x64xf32>
    %86 = arith.mulf %81, %83 : vector<8x64xf32>
    %87 = arith.addf %85, %86 : vector<8x64xf32>
    %88 = math.tanh %87 : vector<8x64xf32>
    %89 = arith.mulf %84, %88 : vector<8x64xf32>
    %90 = vector.extract_strided_slice %89 {offsets = [0, 0], sizes = [8, 32], strides = [1, 1]} : vector<8x64xf32> to vector<8x32xf32>
    %c0_53 = arith.constant 0 : index
    %c0_54 = arith.constant 0 : index
    %91 = vector.load %arg13[%c0_53, %c0_54] : memref<64x64xf32, #tpu.memory_space<vmem>>, vector<8x32xf32>
    tpu.vector_store %arg13[%c0_53, %c0_54], %90 {strides = array<i32>} : memref<64x64xf32, #tpu.memory_space<vmem>>, vector<8x32xf32>,
    %92 = vector.extract_strided_slice %89 {offsets = [0, 32], sizes = [8, 32], strides = [1, 1]} : vector<8x64xf32> to vector<8x32xf32>
    %c56_55 = arith.constant 56 : index
    %c32_56 = arith.constant 32 : index
    %93 = vector.load %arg13[%c56_55, %c32_56] : memref<64x64xf32, #tpu.memory_space<vmem>>, vector<8x32xf32>
    tpu.vector_store %arg13[%c56_55, %c32_56], %92 {strides = array<i32>} : memref<64x64xf32, #tpu.memory_space<vmem>>, vector<8x32xf32>,
    %c8_57 = arith.constant 8 : index
    %c0_58 = arith.constant 0 : index
    %94 = vector.load %arg12[%c8_57, %c0_58] : memref<64x256xf32, #tpu.memory_space<vmem>>, vector<8x256xf32>
    %c0_59 = arith.constant 0 : index
    %c0_60 = arith.constant 0 : index
    %95 = vector.load %arg3[%c0_59, %c0_60] : memref<64x256xf32, #tpu.memory_space<vmem>>, vector<64x256xf32>
    %cst_61 = arith.constant dense<0.000000e+00> : vector<8x256xf32>
    %96 = tpu.matmul %89, %95, %cst_61 {dimension_numbers = #tpu.dot_dimension_numbers<[1], [0], [0], [1], [0, 0, 1, 1], [], []>} : vector<8x64xf32>, vector<64x256xf32>, vector<8x256xf32> -> vector<8x256xf32>
    %97 = arith.addf %94, %96 : vector<8x256xf32>
    %98 = math.tanh %97 : vector<8x256xf32>
    %99 = arith.mulf %98, %26 : vector<8x256xf32>
    %100 = arith.addf %99, %29 : vector<8x256xf32>
    %101 = vector.extract_strided_slice %100 {offsets = [0, 0], sizes = [8, 64], strides = [1, 1]} : vector<8x256xf32> to vector<8x64xf32>
    %102 = vector.extract_strided_slice %100 {offsets = [0, 64], sizes = [8, 64], strides = [1, 1]} : vector<8x256xf32> to vector<8x64xf32>
    %103 = vector.extract_strided_slice %100 {offsets = [0, 128], sizes = [8, 64], strides = [1, 1]} : vector<8x256xf32> to vector<8x64xf32>
    %104 = vector.extract_strided_slice %100 {offsets = [0, 192], sizes = [8, 64], strides = [1, 1]} : vector<8x256xf32> to vector<8x64xf32>
    %105 = arith.mulf %102, %87 : vector<8x64xf32>
    %106 = arith.mulf %101, %103 : vector<8x64xf32>
    %107 = arith.addf %105, %106 : vector<8x64xf32>
    %108 = math.tanh %107 : vector<8x64xf32>
    %109 = arith.mulf %104, %108 : vector<8x64xf32>
    %110 = vector.extract_strided_slice %109 {offsets = [0, 0], sizes = [8, 32], strides = [1, 1]} : vector<8x64xf32> to vector<8x32xf32>
    %c8_62 = arith.constant 8 : index
    %c0_63 = arith.constant 0 : index
    %111 = vector.load %arg13[%c8_62, %c0_63] : memref<64x64xf32, #tpu.memory_space<vmem>>, vector<8x32xf32>
    tpu.vector_store %arg13[%c8_62, %c0_63], %110 {strides = array<i32>} : memref<64x64xf32, #tpu.memory_space<vmem>>, vector<8x32xf32>,
    %112 = vector.extract_strided_slice %109 {offsets = [0, 32], sizes = [8, 32], strides = [1, 1]} : vector<8x64xf32> to vector<8x32xf32>
    %c48_64 = arith.constant 48 : index
    %c32_65 = arith.constant 32 : index
    %113 = vector.load %arg13[%c48_64, %c32_65] : memref<64x64xf32, #tpu.memory_space<vmem>>, vector<8x32xf32>
    tpu.vector_store %arg13[%c48_64, %c32_65], %112 {strides = array<i32>} : memref<64x64xf32, #tpu.memory_space<vmem>>, vector<8x32xf32>,
    %c16_66 = arith.constant 16 : index
    %c0_67 = arith.constant 0 : index
    %114 = vector.load %arg12[%c16_66, %c0_67] : memref<64x256xf32, #tpu.memory_space<vmem>>, vector<8x256xf32>
    %c0_68 = arith.constant 0 : index
    %c0_69 = arith.constant 0 : index
    %115 = vector.load %arg3[%c0_68, %c0_69] : memref<64x256xf32, #tpu.memory_space<vmem>>, vector<64x256xf32>
    %cst_70 = arith.constant dense<0.000000e+00> : vector<8x256xf32>
    %116 = tpu.matmul %109, %115, %cst_70 {dimension_numbers = #tpu.dot_dimension_numbers<[1], [0], [0], [1], [0, 0, 1, 1], [], []>} : vector<8x64xf32>, vector<64x256xf32>, vector<8x256xf32> -> vector<8x256xf32>
    %117 = arith.addf %114, %116 : vector<8x256xf32>
    %118 = math.tanh %117 : vector<8x256xf32>
    %119 = arith.mulf %118, %26 : vector<8x256xf32>
    %120 = arith.addf %119, %29 : vector<8x256xf32>
    %121 = vector.extract_strided_slice %120 {offsets = [0, 0], sizes = [8, 64], strides = [1, 1]} : vector<8x256xf32> to vector<8x64xf32>
    %122 = vector.extract_strided_slice %120 {offsets = [0, 64], sizes = [8, 64], strides = [1, 1]} : vector<8x256xf32> to vector<8x64xf32>
    %123 = vector.extract_strided_slice %120 {offsets = [0, 128], sizes = [8, 64], strides = [1, 1]} : vector<8x256xf32> to vector<8x64xf32>
    %124 = vector.extract_strided_slice %120 {offsets = [0, 192], sizes = [8, 64], strides = [1, 1]} : vector<8x256xf32> to vector<8x64xf32>
    %125 = arith.mulf %122, %107 : vector<8x64xf32>
    %126 = arith.mulf %121, %123 : vector<8x64xf32>
    %127 = arith.addf %125, %126 : vector<8x64xf32>
    %128 = math.tanh %127 : vector<8x64xf32>
    %129 = arith.mulf %124, %128 : vector<8x64xf32>
    %130 = vector.extract_strided_slice %129 {offsets = [0, 0], sizes = [8, 32], strides = [1, 1]} : vector<8x64xf32> to vector<8x32xf32>
    %c16_71 = arith.constant 16 : index
    %c0_72 = arith.constant 0 : index
    %131 = vector.load %arg13[%c16_71, %c0_72] : memref<64x64xf32, #tpu.memory_space<vmem>>, vector<8x32xf32>
    tpu.vector_store %arg13[%c16_71, %c0_72], %130 {strides = array<i32>} : memref<64x64xf32, #tpu.memory_space<vmem>>, vector<8x32xf32>,
    %132 = vector.extract_strided_slice %129 {offsets = [0, 32], sizes = [8, 32], strides = [1, 1]} : vector<8x64xf32> to vector<8x32xf32>
    %c40_73 = arith.constant 40 : index
    %c32_74 = arith.constant 32 : index
    %133 = vector.load %arg13[%c40_73, %c32_74] : memref<64x64xf32, #tpu.memory_space<vmem>>, vector<8x32xf32>
    tpu.vector_store %arg13[%c40_73, %c32_74], %132 {strides = array<i32>} : memref<64x64xf32, #tpu.memory_space<vmem>>, vector<8x32xf32>,
    %c24_75 = arith.constant 24 : index
    %c0_76 = arith.constant 0 : index
    %134 = vector.load %arg12[%c24_75, %c0_76] : memref<64x256xf32, #tpu.memory_space<vmem>>, vector<8x256xf32>
    %c0_77 = arith.constant 0 : index
    %c0_78 = arith.constant 0 : index
    %135 = vector.load %arg3[%c0_77, %c0_78] : memref<64x256xf32, #tpu.memory_space<vmem>>, vector<64x256xf32>
    %cst_79 = arith.constant dense<0.000000e+00> : vector<8x256xf32>
    %136 = tpu.matmul %129, %135, %cst_79 {dimension_numbers = #tpu.dot_dimension_numbers<[1], [0], [0], [1], [0, 0, 1, 1], [], []>} : vector<8x64xf32>, vector<64x256xf32>, vector<8x256xf32> -> vector<8x256xf32>
    %137 = arith.addf %134, %136 : vector<8x256xf32>
    %138 = math.tanh %137 : vector<8x256xf32>
    %139 = arith.mulf %138, %26 : vector<8x256xf32>
    %140 = arith.addf %139, %29 : vector<8x256xf32>
    %141 = vector.extract_strided_slice %140 {offsets = [0, 0], sizes = [8, 64], strides = [1, 1]} : vector<8x256xf32> to vector<8x64xf32>
    %142 = vector.extract_strided_slice %140 {offsets = [0, 64], sizes = [8, 64], strides = [1, 1]} : vector<8x256xf32> to vector<8x64xf32>
    %143 = vector.extract_strided_slice %140 {offsets = [0, 128], sizes = [8, 64], strides = [1, 1]} : vector<8x256xf32> to vector<8x64xf32>
    %144 = vector.extract_strided_slice %140 {offsets = [0, 192], sizes = [8, 64], strides = [1, 1]} : vector<8x256xf32> to vector<8x64xf32>
    %145 = arith.mulf %142, %127 : vector<8x64xf32>
    %146 = arith.mulf %141, %143 : vector<8x64xf32>
    %147 = arith.addf %145, %146 : vector<8x64xf32>
    %148 = math.tanh %147 : vector<8x64xf32>
    %149 = arith.mulf %144, %148 : vector<8x64xf32>
    %150 = vector.extract_strided_slice %149 {offsets = [0, 0], sizes = [8, 32], strides = [1, 1]} : vector<8x64xf32> to vector<8x32xf32>
    %c24_80 = arith.constant 24 : index
    %c0_81 = arith.constant 0 : index
    %151 = vector.load %arg13[%c24_80, %c0_81] : memref<64x64xf32, #tpu.memory_space<vmem>>, vector<8x32xf32>
    tpu.vector_store %arg13[%c24_80, %c0_81], %150 {strides = array<i32>} : memref<64x64xf32, #tpu.memory_space<vmem>>, vector<8x32xf32>,
    %152 = vector.extract_strided_slice %149 {offsets = [0, 32], sizes = [8, 32], strides = [1, 1]} : vector<8x64xf32> to vector<8x32xf32>
    %c32_82 = arith.constant 32 : index
    %c32_83 = arith.constant 32 : index
    %153 = vector.load %arg13[%c32_82, %c32_83] : memref<64x64xf32, #tpu.memory_space<vmem>>, vector<8x32xf32>
    tpu.vector_store %arg13[%c32_82, %c32_83], %152 {strides = array<i32>} : memref<64x64xf32, #tpu.memory_space<vmem>>, vector<8x32xf32>,
    %c32_84 = arith.constant 32 : index
    %c0_85 = arith.constant 0 : index
    %154 = vector.load %arg12[%c32_84, %c0_85] : memref<64x256xf32, #tpu.memory_space<vmem>>, vector<8x256xf32>
    %c0_86 = arith.constant 0 : index
    %c0_87 = arith.constant 0 : index
    %155 = vector.load %arg3[%c0_86, %c0_87] : memref<64x256xf32, #tpu.memory_space<vmem>>, vector<64x256xf32>
    %cst_88 = arith.constant dense<0.000000e+00> : vector<8x256xf32>
    %156 = tpu.matmul %149, %155, %cst_88 {dimension_numbers = #tpu.dot_dimension_numbers<[1], [0], [0], [1], [0, 0, 1, 1], [], []>} : vector<8x64xf32>, vector<64x256xf32>, vector<8x256xf32> -> vector<8x256xf32>
    %157 = arith.addf %154, %156 : vector<8x256xf32>
    %158 = math.tanh %157 : vector<8x256xf32>
    %159 = arith.mulf %158, %26 : vector<8x256xf32>
    %160 = arith.addf %159, %29 : vector<8x256xf32>
    %161 = vector.extract_strided_slice %160 {offsets = [0, 0], sizes = [8, 64], strides = [1, 1]} : vector<8x256xf32> to vector<8x64xf32>
    %162 = vector.extract_strided_slice %160 {offsets = [0, 64], sizes = [8, 64], strides = [1, 1]} : vector<8x256xf32> to vector<8x64xf32>
    %163 = vector.extract_strided_slice %160 {offsets = [0, 128], sizes = [8, 64], strides = [1, 1]} : vector<8x256xf32> to vector<8x64xf32>
    %164 = vector.extract_strided_slice %160 {offsets = [0, 192], sizes = [8, 64], strides = [1, 1]} : vector<8x256xf32> to vector<8x64xf32>
    %165 = arith.mulf %162, %147 : vector<8x64xf32>
    %166 = arith.mulf %161, %163 : vector<8x64xf32>
    %167 = arith.addf %165, %166 : vector<8x64xf32>
    %168 = math.tanh %167 : vector<8x64xf32>
    %169 = arith.mulf %164, %168 : vector<8x64xf32>
    %170 = vector.extract_strided_slice %169 {offsets = [0, 0], sizes = [8, 32], strides = [1, 1]} : vector<8x64xf32> to vector<8x32xf32>
    %c32_89 = arith.constant 32 : index
    %c0_90 = arith.constant 0 : index
    %171 = vector.load %arg13[%c32_89, %c0_90] : memref<64x64xf32, #tpu.memory_space<vmem>>, vector<8x32xf32>
    tpu.vector_store %arg13[%c32_89, %c0_90], %170 {strides = array<i32>} : memref<64x64xf32, #tpu.memory_space<vmem>>, vector<8x32xf32>,
    %172 = vector.extract_strided_slice %169 {offsets = [0, 32], sizes = [8, 32], strides = [1, 1]} : vector<8x64xf32> to vector<8x32xf32>
    %c24_91 = arith.constant 24 : index
    %c32_92 = arith.constant 32 : index
    %173 = vector.load %arg13[%c24_91, %c32_92] : memref<64x64xf32, #tpu.memory_space<vmem>>, vector<8x32xf32>
    tpu.vector_store %arg13[%c24_91, %c32_92], %172 {strides = array<i32>} : memref<64x64xf32, #tpu.memory_space<vmem>>, vector<8x32xf32>,
    %c40_93 = arith.constant 40 : index
    %c0_94 = arith.constant 0 : index
    %174 = vector.load %arg12[%c40_93, %c0_94] : memref<64x256xf32, #tpu.memory_space<vmem>>, vector<8x256xf32>
    %c0_95 = arith.constant 0 : index
    %c0_96 = arith.constant 0 : index
    %175 = vector.load %arg3[%c0_95, %c0_96] : memref<64x256xf32, #tpu.memory_space<vmem>>, vector<64x256xf32>
    %cst_97 = arith.constant dense<0.000000e+00> : vector<8x256xf32>
    %176 = tpu.matmul %169, %175, %cst_97 {dimension_numbers = #tpu.dot_dimension_numbers<[1], [0], [0], [1], [0, 0, 1, 1], [], []>} : vector<8x64xf32>, vector<64x256xf32>, vector<8x256xf32> -> vector<8x256xf32>
    %177 = arith.addf %174, %176 : vector<8x256xf32>
    %178 = math.tanh %177 : vector<8x256xf32>
    %179 = arith.mulf %178, %26 : vector<8x256xf32>
    %180 = arith.addf %179, %29 : vector<8x256xf32>
    %181 = vector.extract_strided_slice %180 {offsets = [0, 0], sizes = [8, 64], strides = [1, 1]} : vector<8x256xf32> to vector<8x64xf32>
    %182 = vector.extract_strided_slice %180 {offsets = [0, 64], sizes = [8, 64], strides = [1, 1]} : vector<8x256xf32> to vector<8x64xf32>
    %183 = vector.extract_strided_slice %180 {offsets = [0, 128], sizes = [8, 64], strides = [1, 1]} : vector<8x256xf32> to vector<8x64xf32>
    %184 = vector.extract_strided_slice %180 {offsets = [0, 192], sizes = [8, 64], strides = [1, 1]} : vector<8x256xf32> to vector<8x64xf32>
    %185 = arith.mulf %182, %167 : vector<8x64xf32>
    %186 = arith.mulf %181, %183 : vector<8x64xf32>
    %187 = arith.addf %185, %186 : vector<8x64xf32>
    %188 = math.tanh %187 : vector<8x64xf32>
    %189 = arith.mulf %184, %188 : vector<8x64xf32>
    %190 = vector.extract_strided_slice %189 {offsets = [0, 0], sizes = [8, 32], strides = [1, 1]} : vector<8x64xf32> to vector<8x32xf32>
    %c40_98 = arith.constant 40 : index
    %c0_99 = arith.constant 0 : index
    %191 = vector.load %arg13[%c40_98, %c0_99] : memref<64x64xf32, #tpu.memory_space<vmem>>, vector<8x32xf32>
    tpu.vector_store %arg13[%c40_98, %c0_99], %190 {strides = array<i32>} : memref<64x64xf32, #tpu.memory_space<vmem>>, vector<8x32xf32>,
    %192 = vector.extract_strided_slice %189 {offsets = [0, 32], sizes = [8, 32], strides = [1, 1]} : vector<8x64xf32> to vector<8x32xf32>
    %c16_100 = arith.constant 16 : index
    %c32_101 = arith.constant 32 : index
    %193 = vector.load %arg13[%c16_100, %c32_101] : memref<64x64xf32, #tpu.memory_space<vmem>>, vector<8x32xf32>
    tpu.vector_store %arg13[%c16_100, %c32_101], %192 {strides = array<i32>} : memref<64x64xf32, #tpu.memory_space<vmem>>, vector<8x32xf32>,
    %c48_102 = arith.constant 48 : index
    %c0_103 = arith.constant 0 : index
    %194 = vector.load %arg12[%c48_102, %c0_103] : memref<64x256xf32, #tpu.memory_space<vmem>>, vector<8x256xf32>
    %c0_104 = arith.constant 0 : index
    %c0_105 = arith.constant 0 : index
    %195 = vector.load %arg3[%c0_104, %c0_105] : memref<64x256xf32, #tpu.memory_space<vmem>>, vector<64x256xf32>
    %cst_106 = arith.constant dense<0.000000e+00> : vector<8x256xf32>
    %196 = tpu.matmul %189, %195, %cst_106 {dimension_numbers = #tpu.dot_dimension_numbers<[1], [0], [0], [1], [0, 0, 1, 1], [], []>} : vector<8x64xf32>, vector<64x256xf32>, vector<8x256xf32> -> vector<8x256xf32>
    %197 = arith.addf %194, %196 : vector<8x256xf32>
    %198 = math.tanh %197 : vector<8x256xf32>
    %199 = arith.mulf %198, %26 : vector<8x256xf32>
    %200 = arith.addf %199, %29 : vector<8x256xf32>
    %201 = vector.extract_strided_slice %200 {offsets = [0, 0], sizes = [8, 64], strides = [1, 1]} : vector<8x256xf32> to vector<8x64xf32>
    %202 = vector.extract_strided_slice %200 {offsets = [0, 64], sizes = [8, 64], strides = [1, 1]} : vector<8x256xf32> to vector<8x64xf32>
    %203 = vector.extract_strided_slice %200 {offsets = [0, 128], sizes = [8, 64], strides = [1, 1]} : vector<8x256xf32> to vector<8x64xf32>
    %204 = vector.extract_strided_slice %200 {offsets = [0, 192], sizes = [8, 64], strides = [1, 1]} : vector<8x256xf32> to vector<8x64xf32>
    %205 = arith.mulf %202, %187 : vector<8x64xf32>
    %206 = arith.mulf %201, %203 : vector<8x64xf32>
    %207 = arith.addf %205, %206 : vector<8x64xf32>
    %208 = math.tanh %207 : vector<8x64xf32>
    %209 = arith.mulf %204, %208 : vector<8x64xf32>
    %210 = vector.extract_strided_slice %209 {offsets = [0, 0], sizes = [8, 32], strides = [1, 1]} : vector<8x64xf32> to vector<8x32xf32>
    %c48_107 = arith.constant 48 : index
    %c0_108 = arith.constant 0 : index
    %211 = vector.load %arg13[%c48_107, %c0_108] : memref<64x64xf32, #tpu.memory_space<vmem>>, vector<8x32xf32>
    tpu.vector_store %arg13[%c48_107, %c0_108], %210 {strides = array<i32>} : memref<64x64xf32, #tpu.memory_space<vmem>>, vector<8x32xf32>,
    %212 = vector.extract_strided_slice %209 {offsets = [0, 32], sizes = [8, 32], strides = [1, 1]} : vector<8x64xf32> to vector<8x32xf32>
    %c8_109 = arith.constant 8 : index
    %c32_110 = arith.constant 32 : index
    %213 = vector.load %arg13[%c8_109, %c32_110] : memref<64x64xf32, #tpu.memory_space<vmem>>, vector<8x32xf32>
    tpu.vector_store %arg13[%c8_109, %c32_110], %212 {strides = array<i32>} : memref<64x64xf32, #tpu.memory_space<vmem>>, vector<8x32xf32>,
    %c56_111 = arith.constant 56 : index
    %c0_112 = arith.constant 0 : index
    %214 = vector.load %arg12[%c56_111, %c0_112] : memref<64x256xf32, #tpu.memory_space<vmem>>, vector<8x256xf32>
    %c0_113 = arith.constant 0 : index
    %c0_114 = arith.constant 0 : index
    %215 = vector.load %arg3[%c0_113, %c0_114] : memref<64x256xf32, #tpu.memory_space<vmem>>, vector<64x256xf32>
    %cst_115 = arith.constant dense<0.000000e+00> : vector<8x256xf32>
    %216 = tpu.matmul %209, %215, %cst_115 {dimension_numbers = #tpu.dot_dimension_numbers<[1], [0], [0], [1], [0, 0, 1, 1], [], []>} : vector<8x64xf32>, vector<64x256xf32>, vector<8x256xf32> -> vector<8x256xf32>
    %217 = arith.addf %214, %216 : vector<8x256xf32>
    %218 = math.tanh %217 : vector<8x256xf32>
    %219 = arith.mulf %218, %26 : vector<8x256xf32>
    %220 = arith.addf %219, %29 : vector<8x256xf32>
    %221 = vector.extract_strided_slice %220 {offsets = [0, 0], sizes = [8, 64], strides = [1, 1]} : vector<8x256xf32> to vector<8x64xf32>
    %222 = vector.extract_strided_slice %220 {offsets = [0, 64], sizes = [8, 64], strides = [1, 1]} : vector<8x256xf32> to vector<8x64xf32>
    %223 = vector.extract_strided_slice %220 {offsets = [0, 128], sizes = [8, 64], strides = [1, 1]} : vector<8x256xf32> to vector<8x64xf32>
    %224 = vector.extract_strided_slice %220 {offsets = [0, 192], sizes = [8, 64], strides = [1, 1]} : vector<8x256xf32> to vector<8x64xf32>
    %225 = arith.mulf %222, %207 : vector<8x64xf32>
    %226 = arith.mulf %221, %223 : vector<8x64xf32>
    %227 = arith.addf %225, %226 : vector<8x64xf32>
    %228 = math.tanh %227 : vector<8x64xf32>
    %229 = arith.mulf %224, %228 : vector<8x64xf32>
    %230 = vector.extract_strided_slice %229 {offsets = [0, 0], sizes = [8, 32], strides = [1, 1]} : vector<8x64xf32> to vector<8x32xf32>
    %c56_116 = arith.constant 56 : index
    %c0_117 = arith.constant 0 : index
    %231 = vector.load %arg13[%c56_116, %c0_117] : memref<64x64xf32, #tpu.memory_space<vmem>>, vector<8x32xf32>
    tpu.vector_store %arg13[%c56_116, %c0_117], %230 {strides = array<i32>} : memref<64x64xf32, #tpu.memory_space<vmem>>, vector<8x32xf32>,
    %232 = vector.extract_strided_slice %229 {offsets = [0, 32], sizes = [8, 32], strides = [1, 1]} : vector<8x64xf32> to vector<8x32xf32>
    %c0_118 = arith.constant 0 : index
    %c32_119 = arith.constant 32 : index
    %233 = vector.load %arg13[%c0_118, %c32_119] : memref<64x64xf32, #tpu.memory_space<vmem>>, vector<8x32xf32>
    tpu.vector_store %arg13[%c0_118, %c32_119], %232 {strides = array<i32>} : memref<64x64xf32, #tpu.memory_space<vmem>>, vector<8x32xf32>,
    %c0_120 = arith.constant 0 : index
    %c0_121 = arith.constant 0 : index
    %234 = vector.load %arg13[%c0_120, %c0_121] : memref<64x64xf32, #tpu.memory_space<vmem>>, vector<64x64xf32>
    %c0_122 = arith.constant 0 : index
    %c0_123 = arith.constant 0 : index
    %235 = vector.load %arg5[%c0_122, %c0_123] : memref<64x256xf32, #tpu.memory_space<vmem>>, vector<64x256xf32>
    %cst_124 = arith.constant dense<0.000000e+00> : vector<64x256xf32>
    %236 = tpu.matmul %234, %235, %cst_124 {dimension_numbers = #tpu.dot_dimension_numbers<[1], [0], [0], [1], [0, 0, 1, 1], [], []>} : vector<64x64xf32>, vector<64x256xf32>, vector<64x256xf32> -> vector<64x256xf32>
    %c0_125 = arith.constant 0 : index
    %c0_126 = arith.constant 0 : index
    %237 = vector.load %arg7[%c0_125, %c0_126] : memref<1x256xf32, #tpu.memory_space<vmem>>, vector<1x256xf32>
    %238 = vector.broadcast %237 : vector<1x256xf32> to vector<64x256xf32>
    %239 = arith.addf %236, %238 : vector<64x256xf32>
    %c0_127 = arith.constant 0 : index
    %c0_128 = arith.constant 0 : index
    %240 = vector.load %arg12[%c0_127, %c0_128] : memref<64x256xf32, #tpu.memory_space<vmem>>, vector<64x256xf32>
    tpu.vector_store %arg12[%c0_127, %c0_128], %239 {strides = array<i32>} : memref<64x256xf32, #tpu.memory_space<vmem>>, vector<64x256xf32>,
    %c0_129 = arith.constant 0 : index
    %c0_130 = arith.constant 0 : index
    %241 = vector.load %arg12[%c0_129, %c0_130] : memref<64x256xf32, #tpu.memory_space<vmem>>, vector<8x256xf32>
    %c56_131 = arith.constant 56 : index
    %c0_132 = arith.constant 0 : index
    %242 = vector.load %arg12[%c56_131, %c0_132] : memref<64x256xf32, #tpu.memory_space<vmem>>, vector<8x256xf32>
    %243 = arith.select %23, %241, %242 : vector<8x256xi1>, vector<8x256xf32>
    %c0_133 = arith.constant 0 : index
    %c0_134 = arith.constant 0 : index
    %244 = vector.load %arg12[%c0_133, %c0_134] : memref<64x256xf32, #tpu.memory_space<vmem>>, vector<8x256xf32>
    tpu.vector_store %arg12[%c0_133, %c0_134], %243 {strides = array<i32>} : memref<64x256xf32, #tpu.memory_space<vmem>>, vector<8x256xf32>,
    %245 = arith.select %23, %242, %241 : vector<8x256xi1>, vector<8x256xf32>
    %c56_135 = arith.constant 56 : index
    %c0_136 = arith.constant 0 : index
    %246 = vector.load %arg12[%c56_135, %c0_136] : memref<64x256xf32, #tpu.memory_space<vmem>>, vector<8x256xf32>
    tpu.vector_store %arg12[%c56_135, %c0_136], %245 {strides = array<i32>} : memref<64x256xf32, #tpu.memory_space<vmem>>, vector<8x256xf32>,
    %c8_137 = arith.constant 8 : index
    %c0_138 = arith.constant 0 : index
    %247 = vector.load %arg12[%c8_137, %c0_138] : memref<64x256xf32, #tpu.memory_space<vmem>>, vector<8x256xf32>
    %c48_139 = arith.constant 48 : index
    %c0_140 = arith.constant 0 : index
    %248 = vector.load %arg12[%c48_139, %c0_140] : memref<64x256xf32, #tpu.memory_space<vmem>>, vector<8x256xf32>
    %249 = arith.select %23, %247, %248 : vector<8x256xi1>, vector<8x256xf32>
    %c8_141 = arith.constant 8 : index
    %c0_142 = arith.constant 0 : index
    %250 = vector.load %arg12[%c8_141, %c0_142] : memref<64x256xf32, #tpu.memory_space<vmem>>, vector<8x256xf32>
    tpu.vector_store %arg12[%c8_141, %c0_142], %249 {strides = array<i32>} : memref<64x256xf32, #tpu.memory_space<vmem>>, vector<8x256xf32>,
    %251 = arith.select %23, %248, %247 : vector<8x256xi1>, vector<8x256xf32>
    %c48_143 = arith.constant 48 : index
    %c0_144 = arith.constant 0 : index
    %252 = vector.load %arg12[%c48_143, %c0_144] : memref<64x256xf32, #tpu.memory_space<vmem>>, vector<8x256xf32>
    tpu.vector_store %arg12[%c48_143, %c0_144], %251 {strides = array<i32>} : memref<64x256xf32, #tpu.memory_space<vmem>>, vector<8x256xf32>,
    %c16_145 = arith.constant 16 : index
    %c0_146 = arith.constant 0 : index
    %253 = vector.load %arg12[%c16_145, %c0_146] : memref<64x256xf32, #tpu.memory_space<vmem>>, vector<8x256xf32>
    %c40_147 = arith.constant 40 : index
    %c0_148 = arith.constant 0 : index
    %254 = vector.load %arg12[%c40_147, %c0_148] : memref<64x256xf32, #tpu.memory_space<vmem>>, vector<8x256xf32>
    %255 = arith.select %23, %253, %254 : vector<8x256xi1>, vector<8x256xf32>
    %c16_149 = arith.constant 16 : index
    %c0_150 = arith.constant 0 : index
    %256 = vector.load %arg12[%c16_149, %c0_150] : memref<64x256xf32, #tpu.memory_space<vmem>>, vector<8x256xf32>
    tpu.vector_store %arg12[%c16_149, %c0_150], %255 {strides = array<i32>} : memref<64x256xf32, #tpu.memory_space<vmem>>, vector<8x256xf32>,
    %257 = arith.select %23, %254, %253 : vector<8x256xi1>, vector<8x256xf32>
    %c40_151 = arith.constant 40 : index
    %c0_152 = arith.constant 0 : index
    %258 = vector.load %arg12[%c40_151, %c0_152] : memref<64x256xf32, #tpu.memory_space<vmem>>, vector<8x256xf32>
    tpu.vector_store %arg12[%c40_151, %c0_152], %257 {strides = array<i32>} : memref<64x256xf32, #tpu.memory_space<vmem>>, vector<8x256xf32>,
    %c24_153 = arith.constant 24 : index
    %c0_154 = arith.constant 0 : index
    %259 = vector.load %arg12[%c24_153, %c0_154] : memref<64x256xf32, #tpu.memory_space<vmem>>, vector<8x256xf32>
    %c32_155 = arith.constant 32 : index
    %c0_156 = arith.constant 0 : index
    %260 = vector.load %arg12[%c32_155, %c0_156] : memref<64x256xf32, #tpu.memory_space<vmem>>, vector<8x256xf32>
    %261 = arith.select %23, %259, %260 : vector<8x256xi1>, vector<8x256xf32>
    %c24_157 = arith.constant 24 : index
    %c0_158 = arith.constant 0 : index
    %262 = vector.load %arg12[%c24_157, %c0_158] : memref<64x256xf32, #tpu.memory_space<vmem>>, vector<8x256xf32>
    tpu.vector_store %arg12[%c24_157, %c0_158], %261 {strides = array<i32>} : memref<64x256xf32, #tpu.memory_space<vmem>>, vector<8x256xf32>,
    %263 = arith.select %23, %260, %259 : vector<8x256xi1>, vector<8x256xf32>
    %c32_159 = arith.constant 32 : index
    %c0_160 = arith.constant 0 : index
    %264 = vector.load %arg12[%c32_159, %c0_160] : memref<64x256xf32, #tpu.memory_space<vmem>>, vector<8x256xf32>
    tpu.vector_store %arg12[%c32_159, %c0_160], %263 {strides = array<i32>} : memref<64x256xf32, #tpu.memory_space<vmem>>, vector<8x256xf32>,
    %cst_161 = arith.constant 0.000000e+00 : f32
    %265 = vector.broadcast %cst_161 : f32 to vector<8x64xf32>
    %cst_162 = arith.constant 0.000000e+00 : f32
    %266 = vector.broadcast %cst_162 : f32 to vector<8x64xf32>
    %c0_163 = arith.constant 0 : index
    %c0_164 = arith.constant 0 : index
    %267 = vector.load %arg12[%c0_163, %c0_164] : memref<64x256xf32, #tpu.memory_space<vmem>>, vector<8x256xf32>
    %c0_165 = arith.constant 0 : index
    %c0_166 = arith.constant 0 : index
    %268 = vector.load %arg6[%c0_165, %c0_166] : memref<64x256xf32, #tpu.memory_space<vmem>>, vector<64x256xf32>
    %cst_167 = arith.constant dense<0.000000e+00> : vector<8x256xf32>
    %269 = tpu.matmul %265, %268, %cst_167 {dimension_numbers = #tpu.dot_dimension_numbers<[1], [0], [0], [1], [0, 0, 1, 1], [], []>} : vector<8x64xf32>, vector<64x256xf32>, vector<8x256xf32> -> vector<8x256xf32>
    %270 = arith.addf %267, %269 : vector<8x256xf32>
    %271 = math.tanh %270 : vector<8x256xf32>
    %272 = arith.mulf %271, %26 : vector<8x256xf32>
    %273 = arith.addf %272, %29 : vector<8x256xf32>
    %274 = vector.extract_strided_slice %273 {offsets = [0, 0], sizes = [8, 64], strides = [1, 1]} : vector<8x256xf32> to vector<8x64xf32>
    %275 = vector.extract_strided_slice %273 {offsets = [0, 64], sizes = [8, 64], strides = [1, 1]} : vector<8x256xf32> to vector<8x64xf32>
    %276 = vector.extract_strided_slice %273 {offsets = [0, 128], sizes = [8, 64], strides = [1, 1]} : vector<8x256xf32> to vector<8x64xf32>
    %277 = vector.extract_strided_slice %273 {offsets = [0, 192], sizes = [8, 64], strides = [1, 1]} : vector<8x256xf32> to vector<8x64xf32>
    %278 = arith.mulf %275, %266 : vector<8x64xf32>
    %279 = arith.mulf %274, %276 : vector<8x64xf32>
    %280 = arith.addf %278, %279 : vector<8x64xf32>
    %281 = math.tanh %280 : vector<8x64xf32>
    %282 = arith.mulf %277, %281 : vector<8x64xf32>
    %283 = vector.extract_strided_slice %282 {offsets = [0, 0], sizes = [8, 32], strides = [1, 1]} : vector<8x64xf32> to vector<8x32xf32>
    %284 = arith.mulf %283, %32 : vector<8x32xf32>
    %cst_168 = arith.constant dense<0.000000e+00> : vector<8xf32>
    %285 = vector.multi_reduction <add>, %284, %cst_168 [1] : vector<8x32xf32> to vector<8xf32>
    %286 = vector.shape_cast %285 : vector<8xf32> to vector<8x1xf32>
    %287 = vector.extract_strided_slice %282 {offsets = [0, 32], sizes = [8, 32], strides = [1, 1]} : vector<8x64xf32> to vector<8x32xf32>
    %288 = arith.mulf %287, %35 : vector<8x32xf32>
    %cst_169 = arith.constant dense<0.000000e+00> : vector<8xf32>
    %289 = vector.multi_reduction <add>, %288, %cst_169 [1] : vector<8x32xf32> to vector<8xf32>
    %290 = vector.shape_cast %289 : vector<8xf32> to vector<8x1xf32>
    %c0_i32_170 = arith.constant 0 : i32
    %291 = vector.broadcast %c0_i32_170 : i32 to vector<8x8xi32>
    %292 = arith.cmpi eq, %36, %291 : vector<8x8xi32>
    %293 = vector.broadcast %286 : vector<8x1xf32> to vector<8x8xf32>
    %294 = arith.addf %39, %293 : vector<8x8xf32>
    %295 = arith.select %292, %294, %39 : vector<8x8xi1>, vector<8x8xf32>
    %c7_i32 = arith.constant 7 : i32
    %296 = vector.broadcast %c7_i32 : i32 to vector<8x8xi32>
    %297 = arith.cmpi eq, %36, %296 : vector<8x8xi32>
    %298 = vector.broadcast %290 : vector<8x1xf32> to vector<8x8xf32>
    %299 = arith.addf %295, %298 : vector<8x8xf32>
    %300 = arith.select %297, %299, %295 : vector<8x8xi1>, vector<8x8xf32>
    %c8_171 = arith.constant 8 : index
    %c0_172 = arith.constant 0 : index
    %301 = vector.load %arg12[%c8_171, %c0_172] : memref<64x256xf32, #tpu.memory_space<vmem>>, vector<8x256xf32>
    %c0_173 = arith.constant 0 : index
    %c0_174 = arith.constant 0 : index
    %302 = vector.load %arg6[%c0_173, %c0_174] : memref<64x256xf32, #tpu.memory_space<vmem>>, vector<64x256xf32>
    %cst_175 = arith.constant dense<0.000000e+00> : vector<8x256xf32>
    %303 = tpu.matmul %282, %302, %cst_175 {dimension_numbers = #tpu.dot_dimension_numbers<[1], [0], [0], [1], [0, 0, 1, 1], [], []>} : vector<8x64xf32>, vector<64x256xf32>, vector<8x256xf32> -> vector<8x256xf32>
    %304 = arith.addf %301, %303 : vector<8x256xf32>
    %305 = math.tanh %304 : vector<8x256xf32>
    %306 = arith.mulf %305, %26 : vector<8x256xf32>
    %307 = arith.addf %306, %29 : vector<8x256xf32>
    %308 = vector.extract_strided_slice %307 {offsets = [0, 0], sizes = [8, 64], strides = [1, 1]} : vector<8x256xf32> to vector<8x64xf32>
    %309 = vector.extract_strided_slice %307 {offsets = [0, 64], sizes = [8, 64], strides = [1, 1]} : vector<8x256xf32> to vector<8x64xf32>
    %310 = vector.extract_strided_slice %307 {offsets = [0, 128], sizes = [8, 64], strides = [1, 1]} : vector<8x256xf32> to vector<8x64xf32>
    %311 = vector.extract_strided_slice %307 {offsets = [0, 192], sizes = [8, 64], strides = [1, 1]} : vector<8x256xf32> to vector<8x64xf32>
    %312 = arith.mulf %309, %280 : vector<8x64xf32>
    %313 = arith.mulf %308, %310 : vector<8x64xf32>
    %314 = arith.addf %312, %313 : vector<8x64xf32>
    %315 = math.tanh %314 : vector<8x64xf32>
    %316 = arith.mulf %311, %315 : vector<8x64xf32>
    %317 = vector.extract_strided_slice %316 {offsets = [0, 0], sizes = [8, 32], strides = [1, 1]} : vector<8x64xf32> to vector<8x32xf32>
    %318 = arith.mulf %317, %32 : vector<8x32xf32>
    %cst_176 = arith.constant dense<0.000000e+00> : vector<8xf32>
    %319 = vector.multi_reduction <add>, %318, %cst_176 [1] : vector<8x32xf32> to vector<8xf32>
    %320 = vector.shape_cast %319 : vector<8xf32> to vector<8x1xf32>
    %321 = vector.extract_strided_slice %316 {offsets = [0, 32], sizes = [8, 32], strides = [1, 1]} : vector<8x64xf32> to vector<8x32xf32>
    %322 = arith.mulf %321, %35 : vector<8x32xf32>
    %cst_177 = arith.constant dense<0.000000e+00> : vector<8xf32>
    %323 = vector.multi_reduction <add>, %322, %cst_177 [1] : vector<8x32xf32> to vector<8xf32>
    %324 = vector.shape_cast %323 : vector<8xf32> to vector<8x1xf32>
    %c1_i32_178 = arith.constant 1 : i32
    %325 = vector.broadcast %c1_i32_178 : i32 to vector<8x8xi32>
    %326 = arith.cmpi eq, %36, %325 : vector<8x8xi32>
    %327 = vector.broadcast %320 : vector<8x1xf32> to vector<8x8xf32>
    %328 = arith.addf %300, %327 : vector<8x8xf32>
    %329 = arith.select %326, %328, %300 : vector<8x8xi1>, vector<8x8xf32>
    %c6_i32 = arith.constant 6 : i32
    %330 = vector.broadcast %c6_i32 : i32 to vector<8x8xi32>
    %331 = arith.cmpi eq, %36, %330 : vector<8x8xi32>
    %332 = vector.broadcast %324 : vector<8x1xf32> to vector<8x8xf32>
    %333 = arith.addf %329, %332 : vector<8x8xf32>
    %334 = arith.select %331, %333, %329 : vector<8x8xi1>, vector<8x8xf32>
    %c16_179 = arith.constant 16 : index
    %c0_180 = arith.constant 0 : index
    %335 = vector.load %arg12[%c16_179, %c0_180] : memref<64x256xf32, #tpu.memory_space<vmem>>, vector<8x256xf32>
    %c0_181 = arith.constant 0 : index
    %c0_182 = arith.constant 0 : index
    %336 = vector.load %arg6[%c0_181, %c0_182] : memref<64x256xf32, #tpu.memory_space<vmem>>, vector<64x256xf32>
    %cst_183 = arith.constant dense<0.000000e+00> : vector<8x256xf32>
    %337 = tpu.matmul %316, %336, %cst_183 {dimension_numbers = #tpu.dot_dimension_numbers<[1], [0], [0], [1], [0, 0, 1, 1], [], []>} : vector<8x64xf32>, vector<64x256xf32>, vector<8x256xf32> -> vector<8x256xf32>
    %338 = arith.addf %335, %337 : vector<8x256xf32>
    %339 = math.tanh %338 : vector<8x256xf32>
    %340 = arith.mulf %339, %26 : vector<8x256xf32>
    %341 = arith.addf %340, %29 : vector<8x256xf32>
    %342 = vector.extract_strided_slice %341 {offsets = [0, 0], sizes = [8, 64], strides = [1, 1]} : vector<8x256xf32> to vector<8x64xf32>
    %343 = vector.extract_strided_slice %341 {offsets = [0, 64], sizes = [8, 64], strides = [1, 1]} : vector<8x256xf32> to vector<8x64xf32>
    %344 = vector.extract_strided_slice %341 {offsets = [0, 128], sizes = [8, 64], strides = [1, 1]} : vector<8x256xf32> to vector<8x64xf32>
    %345 = vector.extract_strided_slice %341 {offsets = [0, 192], sizes = [8, 64], strides = [1, 1]} : vector<8x256xf32> to vector<8x64xf32>
    %346 = arith.mulf %343, %314 : vector<8x64xf32>
    %347 = arith.mulf %342, %344 : vector<8x64xf32>
    %348 = arith.addf %346, %347 : vector<8x64xf32>
    %349 = math.tanh %348 : vector<8x64xf32>
    %350 = arith.mulf %345, %349 : vector<8x64xf32>
    %351 = vector.extract_strided_slice %350 {offsets = [0, 0], sizes = [8, 32], strides = [1, 1]} : vector<8x64xf32> to vector<8x32xf32>
    %352 = arith.mulf %351, %32 : vector<8x32xf32>
    %cst_184 = arith.constant dense<0.000000e+00> : vector<8xf32>
    %353 = vector.multi_reduction <add>, %352, %cst_184 [1] : vector<8x32xf32> to vector<8xf32>
    %354 = vector.shape_cast %353 : vector<8xf32> to vector<8x1xf32>
    %355 = vector.extract_strided_slice %350 {offsets = [0, 32], sizes = [8, 32], strides = [1, 1]} : vector<8x64xf32> to vector<8x32xf32>
    %356 = arith.mulf %355, %35 : vector<8x32xf32>
    %cst_185 = arith.constant dense<0.000000e+00> : vector<8xf32>
    %357 = vector.multi_reduction <add>, %356, %cst_185 [1] : vector<8x32xf32> to vector<8xf32>
    %358 = vector.shape_cast %357 : vector<8xf32> to vector<8x1xf32>
    %c2_i32 = arith.constant 2 : i32
    %359 = vector.broadcast %c2_i32 : i32 to vector<8x8xi32>
    %360 = arith.cmpi eq, %36, %359 : vector<8x8xi32>
    %361 = vector.broadcast %354 : vector<8x1xf32> to vector<8x8xf32>
    %362 = arith.addf %334, %361 : vector<8x8xf32>
    %363 = arith.select %360, %362, %334 : vector<8x8xi1>, vector<8x8xf32>
    %c5_i32 = arith.constant 5 : i32
    %364 = vector.broadcast %c5_i32 : i32 to vector<8x8xi32>
    %365 = arith.cmpi eq, %36, %364 : vector<8x8xi32>
    %366 = vector.broadcast %358 : vector<8x1xf32> to vector<8x8xf32>
    %367 = arith.addf %363, %366 : vector<8x8xf32>
    %368 = arith.select %365, %367, %363 : vector<8x8xi1>, vector<8x8xf32>
    %c24_186 = arith.constant 24 : index
    %c0_187 = arith.constant 0 : index
    %369 = vector.load %arg12[%c24_186, %c0_187] : memref<64x256xf32, #tpu.memory_space<vmem>>, vector<8x256xf32>
    %c0_188 = arith.constant 0 : index
    %c0_189 = arith.constant 0 : index
    %370 = vector.load %arg6[%c0_188, %c0_189] : memref<64x256xf32, #tpu.memory_space<vmem>>, vector<64x256xf32>
    %cst_190 = arith.constant dense<0.000000e+00> : vector<8x256xf32>
    %371 = tpu.matmul %350, %370, %cst_190 {dimension_numbers = #tpu.dot_dimension_numbers<[1], [0], [0], [1], [0, 0, 1, 1], [], []>} : vector<8x64xf32>, vector<64x256xf32>, vector<8x256xf32> -> vector<8x256xf32>
    %372 = arith.addf %369, %371 : vector<8x256xf32>
    %373 = math.tanh %372 : vector<8x256xf32>
    %374 = arith.mulf %373, %26 : vector<8x256xf32>
    %375 = arith.addf %374, %29 : vector<8x256xf32>
    %376 = vector.extract_strided_slice %375 {offsets = [0, 0], sizes = [8, 64], strides = [1, 1]} : vector<8x256xf32> to vector<8x64xf32>
    %377 = vector.extract_strided_slice %375 {offsets = [0, 64], sizes = [8, 64], strides = [1, 1]} : vector<8x256xf32> to vector<8x64xf32>
    %378 = vector.extract_strided_slice %375 {offsets = [0, 128], sizes = [8, 64], strides = [1, 1]} : vector<8x256xf32> to vector<8x64xf32>
    %379 = vector.extract_strided_slice %375 {offsets = [0, 192], sizes = [8, 64], strides = [1, 1]} : vector<8x256xf32> to vector<8x64xf32>
    %380 = arith.mulf %377, %348 : vector<8x64xf32>
    %381 = arith.mulf %376, %378 : vector<8x64xf32>
    %382 = arith.addf %380, %381 : vector<8x64xf32>
    %383 = math.tanh %382 : vector<8x64xf32>
    %384 = arith.mulf %379, %383 : vector<8x64xf32>
    %385 = vector.extract_strided_slice %384 {offsets = [0, 0], sizes = [8, 32], strides = [1, 1]} : vector<8x64xf32> to vector<8x32xf32>
    %386 = arith.mulf %385, %32 : vector<8x32xf32>
    %cst_191 = arith.constant dense<0.000000e+00> : vector<8xf32>
    %387 = vector.multi_reduction <add>, %386, %cst_191 [1] : vector<8x32xf32> to vector<8xf32>
    %388 = vector.shape_cast %387 : vector<8xf32> to vector<8x1xf32>
    %389 = vector.extract_strided_slice %384 {offsets = [0, 32], sizes = [8, 32], strides = [1, 1]} : vector<8x64xf32> to vector<8x32xf32>
    %390 = arith.mulf %389, %35 : vector<8x32xf32>
    %cst_192 = arith.constant dense<0.000000e+00> : vector<8xf32>
    %391 = vector.multi_reduction <add>, %390, %cst_192 [1] : vector<8x32xf32> to vector<8xf32>
    %392 = vector.shape_cast %391 : vector<8xf32> to vector<8x1xf32>
    %c3_i32 = arith.constant 3 : i32
    %393 = vector.broadcast %c3_i32 : i32 to vector<8x8xi32>
    %394 = arith.cmpi eq, %36, %393 : vector<8x8xi32>
    %395 = vector.broadcast %388 : vector<8x1xf32> to vector<8x8xf32>
    %396 = arith.addf %368, %395 : vector<8x8xf32>
    %397 = arith.select %394, %396, %368 : vector<8x8xi1>, vector<8x8xf32>
    %c4_i32 = arith.constant 4 : i32
    %398 = vector.broadcast %c4_i32 : i32 to vector<8x8xi32>
    %399 = arith.cmpi eq, %36, %398 : vector<8x8xi32>
    %400 = vector.broadcast %392 : vector<8x1xf32> to vector<8x8xf32>
    %401 = arith.addf %397, %400 : vector<8x8xf32>
    %402 = arith.select %399, %401, %397 : vector<8x8xi1>, vector<8x8xf32>
    %c32_193 = arith.constant 32 : index
    %c0_194 = arith.constant 0 : index
    %403 = vector.load %arg12[%c32_193, %c0_194] : memref<64x256xf32, #tpu.memory_space<vmem>>, vector<8x256xf32>
    %c0_195 = arith.constant 0 : index
    %c0_196 = arith.constant 0 : index
    %404 = vector.load %arg6[%c0_195, %c0_196] : memref<64x256xf32, #tpu.memory_space<vmem>>, vector<64x256xf32>
    %cst_197 = arith.constant dense<0.000000e+00> : vector<8x256xf32>
    %405 = tpu.matmul %384, %404, %cst_197 {dimension_numbers = #tpu.dot_dimension_numbers<[1], [0], [0], [1], [0, 0, 1, 1], [], []>} : vector<8x64xf32>, vector<64x256xf32>, vector<8x256xf32> -> vector<8x256xf32>
    %406 = arith.addf %403, %405 : vector<8x256xf32>
    %407 = math.tanh %406 : vector<8x256xf32>
    %408 = arith.mulf %407, %26 : vector<8x256xf32>
    %409 = arith.addf %408, %29 : vector<8x256xf32>
    %410 = vector.extract_strided_slice %409 {offsets = [0, 0], sizes = [8, 64], strides = [1, 1]} : vector<8x256xf32> to vector<8x64xf32>
    %411 = vector.extract_strided_slice %409 {offsets = [0, 64], sizes = [8, 64], strides = [1, 1]} : vector<8x256xf32> to vector<8x64xf32>
    %412 = vector.extract_strided_slice %409 {offsets = [0, 128], sizes = [8, 64], strides = [1, 1]} : vector<8x256xf32> to vector<8x64xf32>
    %413 = vector.extract_strided_slice %409 {offsets = [0, 192], sizes = [8, 64], strides = [1, 1]} : vector<8x256xf32> to vector<8x64xf32>
    %414 = arith.mulf %411, %382 : vector<8x64xf32>
    %415 = arith.mulf %410, %412 : vector<8x64xf32>
    %416 = arith.addf %414, %415 : vector<8x64xf32>
    %417 = math.tanh %416 : vector<8x64xf32>
    %418 = arith.mulf %413, %417 : vector<8x64xf32>
    %419 = vector.extract_strided_slice %418 {offsets = [0, 0], sizes = [8, 32], strides = [1, 1]} : vector<8x64xf32> to vector<8x32xf32>
    %420 = arith.mulf %419, %32 : vector<8x32xf32>
    %cst_198 = arith.constant dense<0.000000e+00> : vector<8xf32>
    %421 = vector.multi_reduction <add>, %420, %cst_198 [1] : vector<8x32xf32> to vector<8xf32>
    %422 = vector.shape_cast %421 : vector<8xf32> to vector<8x1xf32>
    %423 = vector.extract_strided_slice %418 {offsets = [0, 32], sizes = [8, 32], strides = [1, 1]} : vector<8x64xf32> to vector<8x32xf32>
    %424 = arith.mulf %423, %35 : vector<8x32xf32>
    %cst_199 = arith.constant dense<0.000000e+00> : vector<8xf32>
    %425 = vector.multi_reduction <add>, %424, %cst_199 [1] : vector<8x32xf32> to vector<8xf32>
    %426 = vector.shape_cast %425 : vector<8xf32> to vector<8x1xf32>
    %c4_i32_200 = arith.constant 4 : i32
    %427 = vector.broadcast %c4_i32_200 : i32 to vector<8x8xi32>
    %428 = arith.cmpi eq, %36, %427 : vector<8x8xi32>
    %429 = vector.broadcast %422 : vector<8x1xf32> to vector<8x8xf32>
    %430 = arith.addf %402, %429 : vector<8x8xf32>
    %431 = arith.select %428, %430, %402 : vector<8x8xi1>, vector<8x8xf32>
    %c3_i32_201 = arith.constant 3 : i32
    %432 = vector.broadcast %c3_i32_201 : i32 to vector<8x8xi32>
    %433 = arith.cmpi eq, %36, %432 : vector<8x8xi32>
    %434 = vector.broadcast %426 : vector<8x1xf32> to vector<8x8xf32>
    %435 = arith.addf %431, %434 : vector<8x8xf32>
    %436 = arith.select %433, %435, %431 : vector<8x8xi1>, vector<8x8xf32>
    %c40_202 = arith.constant 40 : index
    %c0_203 = arith.constant 0 : index
    %437 = vector.load %arg12[%c40_202, %c0_203] : memref<64x256xf32, #tpu.memory_space<vmem>>, vector<8x256xf32>
    %c0_204 = arith.constant 0 : index
    %c0_205 = arith.constant 0 : index
    %438 = vector.load %arg6[%c0_204, %c0_205] : memref<64x256xf32, #tpu.memory_space<vmem>>, vector<64x256xf32>
    %cst_206 = arith.constant dense<0.000000e+00> : vector<8x256xf32>
    %439 = tpu.matmul %418, %438, %cst_206 {dimension_numbers = #tpu.dot_dimension_numbers<[1], [0], [0], [1], [0, 0, 1, 1], [], []>} : vector<8x64xf32>, vector<64x256xf32>, vector<8x256xf32> -> vector<8x256xf32>
    %440 = arith.addf %437, %439 : vector<8x256xf32>
    %441 = math.tanh %440 : vector<8x256xf32>
    %442 = arith.mulf %441, %26 : vector<8x256xf32>
    %443 = arith.addf %442, %29 : vector<8x256xf32>
    %444 = vector.extract_strided_slice %443 {offsets = [0, 0], sizes = [8, 64], strides = [1, 1]} : vector<8x256xf32> to vector<8x64xf32>
    %445 = vector.extract_strided_slice %443 {offsets = [0, 64], sizes = [8, 64], strides = [1, 1]} : vector<8x256xf32> to vector<8x64xf32>
    %446 = vector.extract_strided_slice %443 {offsets = [0, 128], sizes = [8, 64], strides = [1, 1]} : vector<8x256xf32> to vector<8x64xf32>
    %447 = vector.extract_strided_slice %443 {offsets = [0, 192], sizes = [8, 64], strides = [1, 1]} : vector<8x256xf32> to vector<8x64xf32>
    %448 = arith.mulf %445, %416 : vector<8x64xf32>
    %449 = arith.mulf %444, %446 : vector<8x64xf32>
    %450 = arith.addf %448, %449 : vector<8x64xf32>
    %451 = math.tanh %450 : vector<8x64xf32>
    %452 = arith.mulf %447, %451 : vector<8x64xf32>
    %453 = vector.extract_strided_slice %452 {offsets = [0, 0], sizes = [8, 32], strides = [1, 1]} : vector<8x64xf32> to vector<8x32xf32>
    %454 = arith.mulf %453, %32 : vector<8x32xf32>
    %cst_207 = arith.constant dense<0.000000e+00> : vector<8xf32>
    %455 = vector.multi_reduction <add>, %454, %cst_207 [1] : vector<8x32xf32> to vector<8xf32>
    %456 = vector.shape_cast %455 : vector<8xf32> to vector<8x1xf32>
    %457 = vector.extract_strided_slice %452 {offsets = [0, 32], sizes = [8, 32], strides = [1, 1]} : vector<8x64xf32> to vector<8x32xf32>
    %458 = arith.mulf %457, %35 : vector<8x32xf32>
    %cst_208 = arith.constant dense<0.000000e+00> : vector<8xf32>
    %459 = vector.multi_reduction <add>, %458, %cst_208 [1] : vector<8x32xf32> to vector<8xf32>
    %460 = vector.shape_cast %459 : vector<8xf32> to vector<8x1xf32>
    %c5_i32_209 = arith.constant 5 : i32
    %461 = vector.broadcast %c5_i32_209 : i32 to vector<8x8xi32>
    %462 = arith.cmpi eq, %36, %461 : vector<8x8xi32>
    %463 = vector.broadcast %456 : vector<8x1xf32> to vector<8x8xf32>
    %464 = arith.addf %436, %463 : vector<8x8xf32>
    %465 = arith.select %462, %464, %436 : vector<8x8xi1>, vector<8x8xf32>
    %c2_i32_210 = arith.constant 2 : i32
    %466 = vector.broadcast %c2_i32_210 : i32 to vector<8x8xi32>
    %467 = arith.cmpi eq, %36, %466 : vector<8x8xi32>
    %468 = vector.broadcast %460 : vector<8x1xf32> to vector<8x8xf32>
    %469 = arith.addf %465, %468 : vector<8x8xf32>
    %470 = arith.select %467, %469, %465 : vector<8x8xi1>, vector<8x8xf32>
    %c48_211 = arith.constant 48 : index
    %c0_212 = arith.constant 0 : index
    %471 = vector.load %arg12[%c48_211, %c0_212] : memref<64x256xf32, #tpu.memory_space<vmem>>, vector<8x256xf32>
    %c0_213 = arith.constant 0 : index
    %c0_214 = arith.constant 0 : index
    %472 = vector.load %arg6[%c0_213, %c0_214] : memref<64x256xf32, #tpu.memory_space<vmem>>, vector<64x256xf32>
    %cst_215 = arith.constant dense<0.000000e+00> : vector<8x256xf32>
    %473 = tpu.matmul %452, %472, %cst_215 {dimension_numbers = #tpu.dot_dimension_numbers<[1], [0], [0], [1], [0, 0, 1, 1], [], []>} : vector<8x64xf32>, vector<64x256xf32>, vector<8x256xf32> -> vector<8x256xf32>
    %474 = arith.addf %471, %473 : vector<8x256xf32>
    %475 = math.tanh %474 : vector<8x256xf32>
    %476 = arith.mulf %475, %26 : vector<8x256xf32>
    %477 = arith.addf %476, %29 : vector<8x256xf32>
    %478 = vector.extract_strided_slice %477 {offsets = [0, 0], sizes = [8, 64], strides = [1, 1]} : vector<8x256xf32> to vector<8x64xf32>
    %479 = vector.extract_strided_slice %477 {offsets = [0, 64], sizes = [8, 64], strides = [1, 1]} : vector<8x256xf32> to vector<8x64xf32>
    %480 = vector.extract_strided_slice %477 {offsets = [0, 128], sizes = [8, 64], strides = [1, 1]} : vector<8x256xf32> to vector<8x64xf32>
    %481 = vector.extract_strided_slice %477 {offsets = [0, 192], sizes = [8, 64], strides = [1, 1]} : vector<8x256xf32> to vector<8x64xf32>
    %482 = arith.mulf %479, %450 : vector<8x64xf32>
    %483 = arith.mulf %478, %480 : vector<8x64xf32>
    %484 = arith.addf %482, %483 : vector<8x64xf32>
    %485 = math.tanh %484 : vector<8x64xf32>
    %486 = arith.mulf %481, %485 : vector<8x64xf32>
    %487 = vector.extract_strided_slice %486 {offsets = [0, 0], sizes = [8, 32], strides = [1, 1]} : vector<8x64xf32> to vector<8x32xf32>
    %488 = arith.mulf %487, %32 : vector<8x32xf32>
    %cst_216 = arith.constant dense<0.000000e+00> : vector<8xf32>
    %489 = vector.multi_reduction <add>, %488, %cst_216 [1] : vector<8x32xf32> to vector<8xf32>
    %490 = vector.shape_cast %489 : vector<8xf32> to vector<8x1xf32>
    %491 = vector.extract_strided_slice %486 {offsets = [0, 32], sizes = [8, 32], strides = [1, 1]} : vector<8x64xf32> to vector<8x32xf32>
    %492 = arith.mulf %491, %35 : vector<8x32xf32>
    %cst_217 = arith.constant dense<0.000000e+00> : vector<8xf32>
    %493 = vector.multi_reduction <add>, %492, %cst_217 [1] : vector<8x32xf32> to vector<8xf32>
    %494 = vector.shape_cast %493 : vector<8xf32> to vector<8x1xf32>
    %c6_i32_218 = arith.constant 6 : i32
    %495 = vector.broadcast %c6_i32_218 : i32 to vector<8x8xi32>
    %496 = arith.cmpi eq, %36, %495 : vector<8x8xi32>
    %497 = vector.broadcast %490 : vector<8x1xf32> to vector<8x8xf32>
    %498 = arith.addf %470, %497 : vector<8x8xf32>
    %499 = arith.select %496, %498, %470 : vector<8x8xi1>, vector<8x8xf32>
    %c1_i32_219 = arith.constant 1 : i32
    %500 = vector.broadcast %c1_i32_219 : i32 to vector<8x8xi32>
    %501 = arith.cmpi eq, %36, %500 : vector<8x8xi32>
    %502 = vector.broadcast %494 : vector<8x1xf32> to vector<8x8xf32>
    %503 = arith.addf %499, %502 : vector<8x8xf32>
    %504 = arith.select %501, %503, %499 : vector<8x8xi1>, vector<8x8xf32>
    %c56_220 = arith.constant 56 : index
    %c0_221 = arith.constant 0 : index
    %505 = vector.load %arg12[%c56_220, %c0_221] : memref<64x256xf32, #tpu.memory_space<vmem>>, vector<8x256xf32>
    %c0_222 = arith.constant 0 : index
    %c0_223 = arith.constant 0 : index
    %506 = vector.load %arg6[%c0_222, %c0_223] : memref<64x256xf32, #tpu.memory_space<vmem>>, vector<64x256xf32>
    %cst_224 = arith.constant dense<0.000000e+00> : vector<8x256xf32>
    %507 = tpu.matmul %486, %506, %cst_224 {dimension_numbers = #tpu.dot_dimension_numbers<[1], [0], [0], [1], [0, 0, 1, 1], [], []>} : vector<8x64xf32>, vector<64x256xf32>, vector<8x256xf32> -> vector<8x256xf32>
    %508 = arith.addf %505, %507 : vector<8x256xf32>
    %509 = math.tanh %508 : vector<8x256xf32>
    %510 = arith.mulf %509, %26 : vector<8x256xf32>
    %511 = arith.addf %510, %29 : vector<8x256xf32>
    %512 = vector.extract_strided_slice %511 {offsets = [0, 0], sizes = [8, 64], strides = [1, 1]} : vector<8x256xf32> to vector<8x64xf32>
    %513 = vector.extract_strided_slice %511 {offsets = [0, 64], sizes = [8, 64], strides = [1, 1]} : vector<8x256xf32> to vector<8x64xf32>
    %514 = vector.extract_strided_slice %511 {offsets = [0, 128], sizes = [8, 64], strides = [1, 1]} : vector<8x256xf32> to vector<8x64xf32>
    %515 = vector.extract_strided_slice %511 {offsets = [0, 192], sizes = [8, 64], strides = [1, 1]} : vector<8x256xf32> to vector<8x64xf32>
    %516 = arith.mulf %513, %484 : vector<8x64xf32>
    %517 = arith.mulf %512, %514 : vector<8x64xf32>
    %518 = arith.addf %516, %517 : vector<8x64xf32>
    %519 = math.tanh %518 : vector<8x64xf32>
    %520 = arith.mulf %515, %519 : vector<8x64xf32>
    %521 = vector.extract_strided_slice %520 {offsets = [0, 0], sizes = [8, 32], strides = [1, 1]} : vector<8x64xf32> to vector<8x32xf32>
    %522 = arith.mulf %521, %32 : vector<8x32xf32>
    %cst_225 = arith.constant dense<0.000000e+00> : vector<8xf32>
    %523 = vector.multi_reduction <add>, %522, %cst_225 [1] : vector<8x32xf32> to vector<8xf32>
    %524 = vector.shape_cast %523 : vector<8xf32> to vector<8x1xf32>
    %525 = vector.extract_strided_slice %520 {offsets = [0, 32], sizes = [8, 32], strides = [1, 1]} : vector<8x64xf32> to vector<8x32xf32>
    %526 = arith.mulf %525, %35 : vector<8x32xf32>
    %cst_226 = arith.constant dense<0.000000e+00> : vector<8xf32>
    %527 = vector.multi_reduction <add>, %526, %cst_226 [1] : vector<8x32xf32> to vector<8xf32>
    %528 = vector.shape_cast %527 : vector<8xf32> to vector<8x1xf32>
    %c7_i32_227 = arith.constant 7 : i32
    %529 = vector.broadcast %c7_i32_227 : i32 to vector<8x8xi32>
    %530 = arith.cmpi eq, %36, %529 : vector<8x8xi32>
    %531 = vector.broadcast %524 : vector<8x1xf32> to vector<8x8xf32>
    %532 = arith.addf %504, %531 : vector<8x8xf32>
    %533 = arith.select %530, %532, %504 : vector<8x8xi1>, vector<8x8xf32>
    %c0_i32_228 = arith.constant 0 : i32
    %534 = vector.broadcast %c0_i32_228 : i32 to vector<8x8xi32>
    %535 = arith.cmpi eq, %36, %534 : vector<8x8xi32>
    %536 = vector.broadcast %528 : vector<8x1xf32> to vector<8x8xf32>
    %537 = arith.addf %533, %536 : vector<8x8xf32>
    %538 = arith.select %535, %537, %533 : vector<8x8xi1>, vector<8x8xf32>
    %539 = arith.negf %538 : vector<8x8xf32>
    %540 = math.exp %539 : vector<8x8xf32>
    %cst_229 = arith.constant 1.000000e+00 : f32
    %541 = vector.broadcast %cst_229 : f32 to vector<8x8xf32>
    %542 = arith.addf %541, %540 : vector<8x8xf32>
    %543 = arith.divf %541, %542 : vector<8x8xf32>
    %c0_230 = arith.constant 0 : index
    %c0_231 = arith.constant 0 : index
    %c0_232 = arith.constant 0 : index
    %544 = vector.load %arg11[%c0_230, %c0_231, %c0_232] : memref<1x8x8xf32, #tpu.memory_space<vmem>>, vector<1x8x8xf32>
    %545 = vector.shape_cast %544 : vector<1x8x8xf32> to vector<8x8xf32>
    %546 = vector.shape_cast %543 : vector<8x8xf32> to vector<1x8x8xf32>
    tpu.vector_store %arg11[%c0_230, %c0_231, %c0_232], %546 {strides = array<i32>} : memref<1x8x8xf32, #tpu.memory_space<vmem>>, vector<1x8x8xf32>,
    return
  }
  func.func @transform_0(%arg0: i32) -> (i32, i32, i32) {
    %c0_i32 = arith.constant 0 : i32
    %c0_i32_0 = arith.constant 0 : i32
    %c0_i32_1 = arith.constant 0 : i32
    return %arg0, %c0_i32, %c0_i32_0 : i32, i32, i32
  }
  func.func @transform_1(%arg0: i32) -> (i32, i32) {
    %c0_i32 = arith.constant 0 : i32
    %c0_i32_0 = arith.constant 0 : i32
    %c0_i32_1 = arith.constant 0 : i32
    return %c0_i32, %c0_i32_0 : i32, i32
  }
  func.func @transform_2(%arg0: i32) -> (i32, i32) {
    %c0_i32 = arith.constant 0 : i32
    %c0_i32_0 = arith.constant 0 : i32
    %c0_i32_1 = arith.constant 0 : i32
    return %c0_i32, %c0_i32_0 : i32, i32
  }
  func.func @transform_3(%arg0: i32) -> (i32, i32) {
    %c0_i32 = arith.constant 0 : i32
    %c0_i32_0 = arith.constant 0 : i32
    %c0_i32_1 = arith.constant 0 : i32
    return %c0_i32, %c0_i32_0 : i32, i32
  }
  func.func @transform_4(%arg0: i32) -> (i32, i32) {
    %c0_i32 = arith.constant 0 : i32
    %c0_i32_0 = arith.constant 0 : i32
    %c0_i32_1 = arith.constant 0 : i32
    return %c0_i32, %c0_i32_0 : i32, i32
  }
  func.func @transform_5(%arg0: i32) -> (i32, i32) {
    %c0_i32 = arith.constant 0 : i32
    %c0_i32_0 = arith.constant 0 : i32
    %c0_i32_1 = arith.constant 0 : i32
    return %c0_i32, %c0_i32_0 : i32, i32
  }
  func.func @transform_6(%arg0: i32) -> (i32, i32) {
    %c0_i32 = arith.constant 0 : i32
    %c0_i32_0 = arith.constant 0 : i32
    %c0_i32_1 = arith.constant 0 : i32
    return %c0_i32, %c0_i32_0 : i32, i32
  }
  func.func @transform_7(%arg0: i32) -> (i32, i32) {
    %c0_i32 = arith.constant 0 : i32
    %c0_i32_0 = arith.constant 0 : i32
    %c0_i32_1 = arith.constant 0 : i32
    return %c0_i32, %c0_i32_0 : i32, i32
  }
  func.func @transform_8(%arg0: i32) -> (i32, i32) {
    %c0_i32 = arith.constant 0 : i32
    %c0_i32_0 = arith.constant 0 : i32
    %c0_i32_1 = arith.constant 0 : i32
    return %c0_i32, %c0_i32_0 : i32, i32
  }
  func.func @transform_9(%arg0: i32) -> (i32, i32) {
    %c0_i32 = arith.constant 0 : i32
    %c0_i32_0 = arith.constant 0 : i32
    %c0_i32_1 = arith.constant 0 : i32
    return %c0_i32, %c0_i32_0 : i32, i32
  }
  func.func @transform_10(%arg0: i32) -> (i32, i32, i32) {
    %c0_i32 = arith.constant 0 : i32
    %c0_i32_0 = arith.constant 0 : i32
    %c0_i32_1 = arith.constant 0 : i32
    return %arg0, %c0_i32, %c0_i32_0 : i32, i32, i32
  }
}

</mosaic_0001>

<bundles_post_ra>
// kernel: sequence_synthetic_reward_fused.1
= control target key start
LH: loop header
LB: loop body
LE: loop exit
PB: predicated region body
PF: predicated region fallthrough
CT: control target
= control target key end

     0   :  { %15 = vsyncpa [#allocation5], 0  ;;  %s3746_s0 = inlined_call_operand.vmem [shape: f32[1,64,8], index: 0, kind: input, shape index: {}]   ;;  %s3747_s1 = inlined_call_operand.vmem [shape: f32[8,256], index: 1, kind: input, shape index: {}]   ;;  %s3748_s2 = inlined_call_operand.vmem [shape: f32[64,256], index: 2, kind: input, shape index: {}]   ;;  %s3749_s3 = inlined_call_operand.vmem [shape: f32[1,256], index: 3, kind: input, shape index: {}]   ;;  %s3750_s4 = inlined_call_operand.hbm [shape: f32[64,256], index: 4, kind: input, shape index: {}]   ;;  %s3751_s5 = inlined_call_operand.hbm [shape: f32[64,256], index: 5, kind: input, shape index: {}]   ;;  %s3752_s6 = inlined_call_operand.vmem [shape: f32[1,256], index: 6, kind: input, shape index: {}]   ;;  %s3753_s7 = inlined_call_operand.vmem [shape: f32[1,32], index: 7, kind: input, shape index: {}]   ;;  %s3754_s8 = inlined_call_operand.vmem [shape: f32[1,32], index: 8, kind: input, shape index: {}]   ;;  %s3755_s9 = inlined_call_operand.vmem [shape: f32[1,8], index: 9, kind: input, shape index: {}]   ;;  %s3756_s10 = inlined_call_operand.vmem [shape: f32[1,8,8], index: 10, kind: output, shape index: {}]  }
   0x1   :  { %16 = vsyncpa [#allocation7], 0  ;;  %s2643_s13 = smov [#allocation4]  }
   0x2   :  { %s30_s14 = sshll.u32 %s2643_s13, 4  ;;  %s31_s14 = int_to_ptr.vmem [resolvable:$true] %s30_s14 }
   0x3   :  { %s2607_s15 = scalar_lea.vmem %s31_s14, 2048  ;;  %p2612_p1 = scmp.lt.s32.totalorder %s31_s14, %s31_s14 }
   0x4   :  { %p2608_p0 = scmp.ne.s32.totalorder %s31_s14, %s2607_s15  ;;  %p2613_p2 = scmp.lt.s32.totalorder %s2607_s15, %s2607_s15 }
   0x6   :  { %p2614_p3 = por %p2613_p2, %p2612_p1 }
   0x8   :  { %p2615_p4 = pnand %p2614_p3, %p2608_p0 }
   0xa   :  { %2618 = shalt.err (!%p2615_p4)
}
   0xb   :  { %s2644_s16 = smov 256   ;;  %s2645_s17 = smov 16  }
   0xc   :  { %36 = dma.hbm_to_vmem [thread:$0]  %s3750_s4, 2048, %s31_s14, [#allocation5], %s2644_s16, %s2644_s16, %s2645_s17  }
   0xd   :  { %s2646_s20 = smov [#allocation6]  }
   0xe   :  { %s42_s21 = sshll.u32 %s2646_s20, 4  ;;  %s43_s21 = int_to_ptr.vmem [resolvable:$true] %s42_s21 }
   0xf   :  { %s2627_s22 = scalar_lea.vmem %s43_s21, 2048  ;;  %p2632_p6 = scmp.lt.s32.totalorder %s43_s21, %s43_s21 }
  0x10   :  { %p2628_p5 = scmp.ne.s32.totalorder %s43_s21, %s2627_s22  ;;  %p2633_p7 = scmp.lt.s32.totalorder %s2627_s22, %s2627_s22 }
  0x12   :  { %p2634_p8 = por %p2633_p7, %p2632_p6 }
  0x14   :  { %p2635_p9 = pnand %p2634_p8, %p2628_p5 }
  0x16   :  { %2638 = shalt.err (!%p2635_p9)
}
  0x17   :  { %48 = dma.hbm_to_vmem [thread:$0]  %s3751_s5, 2048, %s43_s21, [#allocation7], %s2644_s16, %s2644_s16, %s2645_s17  }
  0x18   :  { %2639 = dma.done.wait [#allocation5], 2048  }
  0x19   :  { %2640 = vsyncadd [#allocation5], 4294965248 }
  0x1a   :  { %2641 = dma.done.wait [#allocation7], 2048  }
  0x1b   :  { %2642 = vsyncadd [#allocation7], 4294965248  ;;  %v2647_v0 = vmov 0.0   ;;  %v130_v1 = vld [vmem:[%s3747_s1 + $0x8] sm:$0xff]  ;;  %v129_v2 = vld [vmem:[%s3747_s1] sm:$0xff]  ;;  %vm143_vm0 = vcmask 64512   ;;  %v63_v27 = vlaneseq }
  0x1c   :  { %232 = vmatprep.mubr.f32.mxu0 %v2647_v0  ;;  %431 = vmatprep.mubr.f32.mxu1 %v2647_v0  ;;  %v121_v3 = vld [vmem:[%s3746_s0] sm:$0xff]  ;;  %v2727_v4 = vld [vmem:[%s3748_s2 + $0x78] sm:$0xff]  ;;  %v2732_v5 = vld [vmem:[%s3748_s2 + $0x70] sm:$0xff]  ;;  %vm459_vm4 = vcmask 261120   ;;  %vm461_vm5 = vcmask 523520   ;;  %vm363_vm6 = vcmask 523264  }
  0x1d   :  { %198 = vmatprep.subr.mxu0 %v130_v1  ;;  %v2737_v6 = vld [vmem:[%s3748_s2 + $0x68] sm:$0xff]  ;;  %383 = vmatprep.subr.mxu1 %v2727_v4  ;;  %v2744_v7 = vld [vmem:[%s3748_s2 + $0x60] sm:$0xff]  ;;  %v2754_v9 = vld [vmem:[%s3748_s2 + $0x58] sm:$0xff]  ;;  %v2893_v28 = vshrl.u32 %v63_v27, 7  ;;  %v2906_v38 = vand.u32 127, %v63_v27  ;;  %s2650_s13 = smov 96  }
  0x1e   :  { %199 = vmatpush1.msra.mxu0 %v129_v2  ;;  %v122_v8 = vld [vmem:[%s3746_s0 + $0x8] sm:$0xff]  ;;  %384 = vmatpush1.msra.mxu1 %v2732_v5  ;;  %v2760_v10 = vld [vmem:[%s3748_s2 + $0x50] sm:$0xff]  ;;  %v2775_v12 = vld [vmem:[%s3748_s2 + $0x40] sm:$0xff]  ;;  %s2651_s14 = smov 32  }
  0x1f   :  { %2459 = vmatmul.mubr.msk.f32.vlgmr.msra.gmra.mxu0 %vm143_vm0, %v121_v3  ;;  %385 = vmatprep.subr.mxu1 %v2737_v6  ;;  %v2767_v11 = vld [vmem:[%s3748_s2 + $0x48] sm:$0xff]  ;;  %v123_v13 = vld [vmem:[%s3746_s0 + $0x10] sm:$0xff]  ;;  %v2785_v14 = vld [vmem:[%s3748_s2 + $0x38] sm:$0xff]  ;;  %v3758_v29 = vsub.s32 0, %v2893_v28  ;;  %v3757_v32 = vsub.s32 1, %v2893_v28  ;;  %v65_v44 = vadd.s32 128, %v2906_v38 }
  0x20   :  { %238 = vmatprep.mubr.f32.mxu0 %v2647_v0  ;;  %613 = vmatprep.subr.mxu0 %v2727_v4  ;;  %v2791_v15 = vld [vmem:[%s3748_s2 + $0x30] sm:$0xff]  ;;  %v2798_v16 = vld [vmem:[%s3748_s2 + $0x28] sm:$0xff]  ;;  %v2806_v17 = vld [vmem:[%s3748_s2 + $0x20] sm:$0xff]  ;;  %v76_v47 = vand.u32 63, %v2906_v38  ;;  %vm1626_vm7 = vcmp.eq.s32.totalorder %v2906_v38, 0  ;;  %vm1629_vm8 = vcmp.eq.s32.totalorder %v2906_v38, 7 }
  0x21   :  { %386 = vmatpush1.msra.mxu1 %v2744_v7  ;;  %614 = vmatpush1.msra.mxu0 %v2732_v5  ;;  %v124_v18 = vld [vmem:[%s3746_s0 + $0x18] sm:$0xff]  ;;  %v2822_v20 = vld [vmem:[%s3748_s2 + $0x10] sm:$0xff]  ;;  %v2829_v21 = vld [vmem:[%s3748_s2 + $0x8] sm:$0xff]  ;;  %v83_v50 = vand.u32 63, %v65_v44  ;;  %vm69_vm3 = vcmp.lt.s32.totalorder %v65_v44, 192  ;;  %vm1743_vm9 = vcmp.eq.s32.totalorder %v2906_v38, 1 }
  0x22   :  { %387 = vmatprep.subr.mxu1 %v2754_v9  ;;  %615 = vmatprep.subr.mxu0 %v2737_v6  ;;  %v2816_v19 = vld [vmem:[%s3748_s2 + $0x18] sm:$0xff]  ;;  %v2837_v22 = vld [vmem:[%s3748_s2] sm:$0xff]  ;;  %v126_v24 = vld [vmem:[%s3746_s0 + $0x28] sm:$0xff]  ;;  %vm2920_vm1 = vcmp.lt.s32.totalorder %v76_v47, 32  ;;  %vm1746_vm10 = vcmp.eq.s32.totalorder %v2906_v38, 6  ;;  %vm1860_vm11 = vcmp.eq.s32.totalorder %v2906_v38, 2 }
  0x23   :  { %2460 = vmatmul.mubr.msk.f32.gmra.mxu0 %vm143_vm0, %v122_v8  ;;  %388 = vmatpush1.msra.mxu1 %v2760_v10  ;;  %v125_v23 = vld [vmem:[%s3746_s0 + $0x20] sm:$0xff]  ;;  %v127_v25 = vld [vmem:[%s3746_s0 + $0x30] sm:$0xff]  ;;  %v128_v26 = vld [vmem:[%s3746_s0 + $0x38] sm:$0xff]  ;;  %vm2926_vm2 = vcmp.lt.s32.totalorder %v83_v50, 32  ;;  %vm1863_vm12 = vcmp.eq.s32.totalorder %v2906_v38, 5  ;;  %vm1977_vm13 = vcmp.eq.s32.totalorder %v2906_v38, 3 }
  0x24   :  { %244 = vmatprep.mubr.f32.mxu0 %v2647_v0  ;;  %389 = vmatprep.subr.mxu1 %v2767_v11  ;;  %v131_v30 = vld [vmem:[%s3749_s3] sm:$0x3]  ;;  %s2649_s3 = smov 64   ;;  %vm1980_vm14 = vcmp.eq.s32.totalorder %v2906_v38, 4 }
  0x25   :  { %390 = vmatpush1.msra.mxu1 %v2775_v12  ;;  %616 = vmatpush1.msra.mxu0 %v2744_v7  ;;  %v136_v34 = vrot.slane %v131_v30, %v3758_v29  ;;  %v140_v36 = vrot.slane %v131_v30, %v3757_v32 }
  0x26   :  { %391 = vmatprep.subr.mxu1 %v2785_v14  ;;  %617 = vmatprep.subr.mxu0 %v2754_v9 }
  0x27   :  { %2461 = vmatmul.mubr.msk.f32.gmra.mxu0 %vm143_vm0, %v123_v13  ;;  %392 = vmatpush1.msra.mxu1 %v2791_v15 }
  0x28   :  { %250 = vmatprep.mubr.f32.mxu0 %v2647_v0  ;;  %393 = vmatprep.subr.mxu1 %v2798_v16 }
  0x29   :  { %394 = vmatpush1.msra.mxu1 %v2806_v17  ;;  %618 = vmatpush1.msra.mxu0 %v2760_v10 }
  0x2a   :  { %395 = vmatprep.subr.mxu1 %v2816_v19  ;;  %619 = vmatprep.subr.mxu0 %v2767_v11 }
  0x2b   :  { %2462 = vmatmul.mubr.msk.f32.gmra.mxu0 %vm143_vm0, %v124_v18  ;;  %396 = vmatpush1.msra.mxu1 %v2822_v20 }
  0x2c   :  { %256 = vmatprep.mubr.f32.mxu0 %v2647_v0  ;;  %397 = vmatprep.subr.mxu1 %v2829_v21 }
  0x2d   :  { %398 = vmatpush1.msra.mxu1 %v2837_v22  ;;  %620 = vmatpush1.msra.mxu0 %v2775_v12 }
  0x2e   :  { %432 = vmatmul.mubr.f32.vlgmr.msra.gmra.mxu1 %v2647_v0  ;;  %499 = vmatprep.subr.mxu1 %v2727_v4 }
  0x2f   :  { %2463 = vmatmul.mubr.msk.f32.gmra.mxu0 %vm143_vm0, %v125_v23  ;;  %500 = vmatpush1.msra.mxu1 %v2732_v5 }
  0x30   :  { %262 = vmatprep.mubr.f32.mxu0 %v2647_v0  ;;  %547 = vmatprep.mubr.f32.mxu1 %v2647_v0 }
  0x31   :  { %501 = vmatprep.subr.mxu1 %v2737_v6  ;;  %621 = vmatprep.subr.mxu0 %v2785_v14 }
  0x32   :  { %502 = vmatpush1.msra.mxu1 %v2744_v7  ;;  %622 = vmatpush1.msra.mxu0 %v2791_v15 }
  0x33   :  { %2464 = vmatmul.mubr.msk.f32.gmra.mxu0 %vm143_vm0, %v126_v24  ;;  %503 = vmatprep.subr.mxu1 %v2754_v9 }
  0x34   :  { %268 = vmatprep.mubr.f32.mxu0 %v2647_v0  ;;  %504 = vmatpush1.msra.mxu1 %v2760_v10 }
  0x35   :  { %505 = vmatprep.subr.mxu1 %v2767_v11  ;;  %623 = vmatprep.subr.mxu0 %v2798_v16 }
  0x36   :  { %506 = vmatpush1.msra.mxu1 %v2775_v12  ;;  %624 = vmatpush1.msra.mxu0 %v2806_v17 }
  0x37   :  { %2465 = vmatmul.mubr.msk.f32.gmra.mxu0 %vm143_vm0, %v127_v25  ;;  %507 = vmatprep.subr.mxu1 %v2785_v14 }
  0x38   :  { %274 = vmatprep.mubr.f32.mxu0 %v2647_v0  ;;  %508 = vmatpush1.msra.mxu1 %v2791_v15 }
  0x39   :  { %509 = vmatprep.subr.mxu1 %v2798_v16  ;;  %625 = vmatprep.subr.mxu0 %v2816_v19 }
  0x3a   :  { %510 = vmatpush1.msra.mxu1 %v2806_v17  ;;  %626 = vmatpush1.msra.mxu0 %v2822_v20 }
  0x3b   :  { %2466 = vmatmul.mubr.msk.f32.gmra.mxu0 %vm143_vm0, %v128_v26  ;;  %511 = vmatprep.subr.mxu1 %v2816_v19 }
  0x3c   :  { %512 = vmatpush1.msra.mxu1 %v2822_v20  ;;  %627 = vmatprep.subr.mxu0 %v2829_v21 }
  0x3d   :  { %513 = vmatprep.subr.mxu1 %v2829_v21  ;;  %628 = vmatpush1.msra.mxu0 %v2837_v22 }
  0x3e   :  { %514 = vmatpush1.msra.mxu1 %v2837_v22  ;;  %661 = vmatprep.mubr.f32.mxu0 %v2647_v0 }
  0x3f   :  { %727 = vmatprep.subr.mxu1 %v2727_v4  ;;  %841 = vmatprep.subr.mxu0 %v2727_v4 }
  0xdf   :  { %v234_v31 = vpop.f32.mrf.mxu0 }
  0xe1   :  { %v236_v33 = vpop.f32.mrf.mxu0 }
  0xe2   :  { %v2992_v50 = vadd.f32 %v236_v33, %v140_v36 }
  0xe3   :  { %v240_v35 = vpop.f32.mrf.mxu0 }
  0xe4   :  { %v2904_v37 = vadd.f32 %v240_v35, %v136_v34 }
  0xe5   :  { %v242_v39 = vpop.f32.mrf.mxu0 }
  0xe6   :  { %v2908_v40 = vadd.f32 %v242_v39, %v140_v36  ;;  %v2980_v39 = vadd.f32 %v234_v31, %v136_v34 }
  0xe7   :  { %v246_v41 = vpop.f32.mrf.mxu0 }
  0xe8   :  { %v2910_v42 = vadd.f32 %v246_v41, %v136_v34 }
  0xe9   :  { %v248_v43 = vpop.f32.mrf.mxu0 }
  0xea   :  { %v2913_v45 = vadd.f32 %v248_v43, %v140_v36 }
  0xeb   :  { %v252_v46 = vpop.f32.mrf.mxu0 }
  0xec   :  { %v2916_v48 = vadd.f32 %v252_v46, %v136_v34 }
  0xed   :  { %v254_v49 = vpop.f32.mrf.mxu0 }
  0xee   :  { %v2918_v51 = vadd.f32 %v254_v49, %v140_v36  ;;  %v433_v43 = vpop.f32.mrf.mxu1 }
  0xef   :  { %v258_v52 = vpop.f32.mrf.mxu0 }
  0xf0   :  { %v2924_v54 = vadd.f32 %v258_v52, %v136_v34  ;;  %v435_v33 = vpop.f32.mrf.mxu1 }
  0xf1   :  { %v260_v55 = vpop.f32.mrf.mxu0 }
  0xf2   :  { %v2930_v57 = vadd.f32 %v260_v55, %v140_v36  ;;  %v337_v58 = vsel %vm2920_vm1, %v2916_v48, %v2924_v54  ;;  %v341_v59 = vsel %vm2920_vm1, %v2924_v54, %v2916_v48 }
  0xf3   :  { %v264_v60 = vpop.f32.mrf.mxu0 }
  0xf4   :  { %v2940_v61 = vadd.f32 %v264_v60, %v136_v34  ;;  %v338_v62 = vsel %vm2926_vm2, %v2918_v51, %v2930_v57  ;;  %v342_v63 = vsel %vm2926_vm2, %v2930_v57, %v2918_v51 }
  0xf5   :  { %v266_v1 = vpop.f32.mrf.mxu0 }
  0xf6   :  { %v2950_v2 = vadd.f32 %v266_v1, %v140_v36  ;;  %v325_v3 = vsel %vm2920_vm1, %v2910_v42, %v2940_v61  ;;  %v329_v8 = vsel %vm2920_vm1, %v2940_v61, %v2910_v42 }
  0xf7   :  { %v270_v13 = vpop.f32.mrf.mxu0 }
  0xf8   :  { %v2960_v18 = vadd.f32 %v270_v13, %v136_v34  ;;  %v326_v23 = vsel %vm2926_vm2, %v2913_v45, %v2950_v2  ;;  %v330_v24 = vsel %vm2926_vm2, %v2950_v2, %v2913_v45 }
  0xf9   :  { %v272_v25 = vpop.f32.mrf.mxu0 }
  0xfa   :  { %v2970_v26 = vadd.f32 %v272_v25, %v140_v36  ;;  %v313_v27 = vsel %vm2920_vm1, %v2904_v37, %v2960_v18  ;;  %v2648_v25 = vmov 0.5   ;;  %v3763_v61 = vsel %vm2920_vm1, %v2960_v18, %v2904_v37 }
  0xfb   :  { %v276_v35 = vpop.f32.mrf.mxu0 }
  0xfc   :  { %v2982_v41 = vadd.f32 %v276_v35, %v136_v34  ;;  %v314_v46 = vsel %vm2926_vm2, %v2908_v40, %v2970_v26  ;;  %v3012_v35 = vsel %vm69_vm3, 1.0, %v2648_v25 }
  0xfd   :  { %v278_v49 = vpop.f32.mrf.mxu0 }
  0xfe   :  { %v301_v31 = vsel %vm2920_vm1, %v2980_v39, %v2982_v41  ;;  %v2998_v34 = vadd.f32 %v278_v49, %v140_v36 }
  0xff   :  { %v438_v55 = vadd.f32 %v433_v43, %v301_v31  ;;  %v3014_v31 = vsel %vm69_vm3, 0.0, %v2648_v25 }
 0x100   :  { %v302_v60 = vsel %vm2926_vm2, %v2992_v50, %v2998_v34 }
 0x101   :  { %2499 = vtanh.f32 %v438_v55  ;;  %v439_v36 = vadd.f32 %v435_v33, %v302_v60 }
 0x103   :  { %2501 = vtanh.f32 %v439_v36 }
 0x10e   :  { %v2500_v13 = vpop.eup %2499 }
 0x10f   :  { %v442_v43 = vmul.f32 0.5, %v2500_v13 }
 0x110   :  { %v2502_v49 = vpop.eup %2501 }
 0x111   :  { %v443_v32 = vmul.f32 %v2502_v49, %v3012_v35  ;;  %v444_v29 = vadd.f32 0.5, %v442_v43 }
 0x113   :  { %v445_v52 = vadd.f32 %v443_v32, %v3014_v31  ;;  %v446_v55 = vmul.f32 0.0, %v444_v29 }
 0x115   :  { %v447_v47 = vmul.f32 %v445_v52, %v444_v29 }
 0x117   :  { %449 = vrot.lane.b32.xlu0 %v447_v47, %s2649_s3 }
 0x189   :  { %v450_v60 = vpop.permute.xlu0 %449 }
 0x18a   :  { %v452_v44 = vadd.f32 %v450_v60, %v446_v55 }
 0x18c   :  { %2503 = vtanh.f32 %v452_v44 }
 0x199   :  { %v2504_v33 = vpop.eup %2503 }
 0x19a   :  { %v454_v36 = vmul.f32 %v2504_v33, %v445_v52 }
 0x19c   :  { %456 = vrot.lane.b32.xlu0 %v454_v36, %s2649_s3 }
 0x20e   :  { %v457_v13 = vpop.permute.xlu0 %456 }
 0x20f   :  { %460 = vst.msk [vmem:[#allocation3] sm:$0xff] %vm459_vm4, %v457_v13  ;;  %2467 = vmatmul.mubr.msk.f32.vlgmr.msra.gmra.mxu1 %vm363_vm6, %v457_v13 }
 0x210   :  { %462 = vst.msk [vmem:[#allocation3 + $0x38] sm:$0xff] %vm461_vm5, %v457_v13  ;;  %728 = vmatpush1.msra.mxu1 %v2732_v5  ;;  %775 = vmatprep.mubr.f32.mxu1 %v2647_v0 }
 0x211   :  { %729 = vmatprep.subr.mxu1 %v2737_v6 }
 0x212   :  { %730 = vmatpush1.msra.mxu1 %v2744_v7 }
 0x213   :  { %731 = vmatprep.subr.mxu1 %v2754_v9 }
 0x214   :  { %732 = vmatpush1.msra.mxu1 %v2760_v10 }
 0x215   :  { %733 = vmatprep.subr.mxu1 %v2767_v11 }
 0x216   :  { %734 = vmatpush1.msra.mxu1 %v2775_v12 }
 0x217   :  { %735 = vmatprep.subr.mxu1 %v2785_v14 }
 0x218   :  { %736 = vmatpush1.msra.mxu1 %v2791_v15 }
 0x219   :  { %737 = vmatprep.subr.mxu1 %v2798_v16 }
 0x21a   :  { %738 = vmatpush1.msra.mxu1 %v2806_v17 }
 0x21b   :  { %739 = vmatprep.subr.mxu1 %v2816_v19 }
 0x21c   :  { %740 = vmatpush1.msra.mxu1 %v2822_v20 }
 0x21d   :  { %741 = vmatprep.subr.mxu1 %v2829_v21 }
 0x21e   :  { %742 = vmatpush1.msra.mxu1 %v2837_v22 }
 0x21f   :  { %955 = vmatprep.subr.mxu1 %v2727_v4 }
 0x2cf   :  { %v549_v29 = vpop.f32.mrf.mxu1 }
 0x2d0   :  { %v554_v32 = vadd.f32 %v549_v29, %v313_v27 }
 0x2d1   :  { %v551_v47 = vpop.f32.mrf.mxu1 }
 0x2d2   :  { %2505 = vtanh.f32 %v554_v32  ;;  %v555_v52 = vadd.f32 %v551_v47, %v314_v46 }
 0x2d4   :  { %2507 = vtanh.f32 %v555_v52 }
 0x2df   :  { %v2506_v25 = vpop.eup %2505 }
 0x2e0   :  { %v558_v43 = vmul.f32 0.5, %v2506_v25 }
 0x2e1   :  { %v2508_v49 = vpop.eup %2507 }
 0x2e2   :  { %v559_v55 = vmul.f32 %v2508_v49, %v3012_v35  ;;  %v560_v60 = vadd.f32 0.5, %v558_v43 }
 0x2e4   :  { %v561_v33 = vadd.f32 %v559_v55, %v3014_v31  ;;  %v562_v13 = vmul.f32 %v560_v60, %v452_v44 }
 0x2e6   :  { %v563_v36 = vmul.f32 %v561_v33, %v560_v60 }
 0x2e8   :  { %565 = vrot.lane.b32.xlu1 %v563_v36, %s2649_s3 }
 0x35a   :  { %v566_v1 = vpop.permute.xlu1 %565 }
 0x35b   :  { %v568_v30 = vadd.f32 %v566_v1, %v562_v13 }
 0x35d   :  { %2509 = vtanh.f32 %v568_v30 }
 0x36a   :  { %v2510_v27 = vpop.eup %2509 }
 0x36b   :  { %v570_v29 = vmul.f32 %v2510_v27, %v561_v33 }
 0x36d   :  { %572 = vrot.lane.b32.xlu1 %v570_v29, %s2649_s3 }
 0x3df   :  { %v573_v46 = vpop.permute.xlu1 %572 }
 0x3e0   :  { %575 = vst.msk [vmem:[#allocation3 + $0x8] sm:$0xff] %vm459_vm4, %v573_v46  ;;  %2468 = vmatmul.mubr.msk.f32.vlgmr.msra.gmra.mxu0 %vm363_vm6, %v573_v46 }
 0x3e1   :  { %576 = vst.msk [vmem:[#allocation3 + $0x30] sm:$0xff] %vm461_vm5, %v573_v46  ;;  %842 = vmatpush1.msra.mxu0 %v2732_v5  ;;  %889 = vmatprep.mubr.f32.mxu0 %v2647_v0 }
 0x3e2   :  { %843 = vmatprep.subr.mxu0 %v2737_v6 }
 0x3e3   :  { %844 = vmatpush1.msra.mxu0 %v2744_v7 }
 0x3e4   :  { %845 = vmatprep.subr.mxu0 %v2754_v9 }
 0x3e5   :  { %846 = vmatpush1.msra.mxu0 %v2760_v10 }
 0x3e6   :  { %847 = vmatprep.subr.mxu0 %v2767_v11 }
 0x3e7   :  { %848 = vmatpush1.msra.mxu0 %v2775_v12 }
 0x3e8   :  { %849 = vmatprep.subr.mxu0 %v2785_v14 }
 0x3e9   :  { %850 = vmatpush1.msra.mxu0 %v2791_v15 }
 0x3ea   :  { %851 = vmatprep.subr.mxu0 %v2798_v16 }
 0x3eb   :  { %852 = vmatpush1.msra.mxu0 %v2806_v17 }
 0x3ec   :  { %853 = vmatprep.subr.mxu0 %v2816_v19 }
 0x3ed   :  { %854 = vmatpush1.msra.mxu0 %v2822_v20 }
 0x3ee   :  { %855 = vmatprep.subr.mxu0 %v2829_v21 }
 0x3ef   :  { %856 = vmatpush1.msra.mxu0 %v2837_v22 }
 0x3f0   :  { %1069 = vmatprep.subr.mxu0 %v2727_v4 }
 0x4a0   :  { %v663_v1 = vpop.f32.mrf.mxu0 }
 0x4a1   :  { %v668_v44 = vadd.f32 %v663_v1, %v325_v3 }
 0x4a2   :  { %v665_v32 = vpop.f32.mrf.mxu0 }
 0x4a3   :  { %2511 = vtanh.f32 %v668_v44  ;;  %v669_v47 = vadd.f32 %v665_v32, %v326_v23 }
 0x4a5   :  { %2513 = vtanh.f32 %v669_v47 }
 0x4b0   :  { %v2512_v52 = vpop.eup %2511 }
 0x4b1   :  { %v672_v25 = vmul.f32 0.5, %v2512_v52 }
 0x4b2   :  { %v2514_v43 = vpop.eup %2513 }
 0x4b3   :  { %v673_v49 = vmul.f32 %v2514_v43, %v3012_v35  ;;  %v674_v55 = vadd.f32 0.5, %v672_v25 }
 0x4b5   :  { %v675_v60 = vadd.f32 %v673_v49, %v3014_v31  ;;  %v676_v3 = vmul.f32 %v674_v55, %v568_v30 }
 0x4b7   :  { %v677_v33 = vmul.f32 %v675_v60, %v674_v55 }
 0x4b9   :  { %679 = vrot.lane.b32.xlu0 %v677_v33, %s2649_s3 }
 0x52b   :  { %v680_v36 = vpop.permute.xlu0 %679 }
 0x52c   :  { %v682_v13 = vadd.f32 %v680_v36, %v676_v3 }
 0x52e   :  { %2515 = vtanh.f32 %v682_v13 }
 0x53b   :  { %v2516_v27 = vpop.eup %2515 }
 0x53c   :  { %v684_v29 = vmul.f32 %v2516_v27, %v675_v60 }
 0x53e   :  { %686 = vrot.lane.b32.xlu1 %v684_v29, %s2649_s3 }
 0x5b0   :  { %v687_v23 = vpop.permute.xlu1 %686 }
 0x5b1   :  { %689 = vst.msk [vmem:[#allocation3 + $0x10] sm:$0xff] %vm459_vm4, %v687_v23  ;;  %2469 = vmatmul.mubr.msk.f32.vlgmr.msra.gmra.mxu1 %vm363_vm6, %v687_v23 }
 0x5b2   :  { %690 = vst.msk [vmem:[#allocation3 + $0x28] sm:$0xff] %vm461_vm5, %v687_v23  ;;  %956 = vmatpush1.msra.mxu1 %v2732_v5  ;;  %1003 = vmatprep.mubr.f32.mxu1 %v2647_v0 }
 0x5b3   :  { %957 = vmatprep.subr.mxu1 %v2737_v6 }
 0x5b4   :  { %958 = vmatpush1.msra.mxu1 %v2744_v7 }
 0x5b5   :  { %959 = vmatprep.subr.mxu1 %v2754_v9 }
 0x5b6   :  { %960 = vmatpush1.msra.mxu1 %v2760_v10 }
 0x5b7   :  { %961 = vmatprep.subr.mxu1 %v2767_v11 }
 0x5b8   :  { %962 = vmatpush1.msra.mxu1 %v2775_v12 }
 0x5b9   :  { %963 = vmatprep.subr.mxu1 %v2785_v14 }
 0x5ba   :  { %964 = vmatpush1.msra.mxu1 %v2791_v15 }
 0x5bb   :  { %965 = vmatprep.subr.mxu1 %v2798_v16 }
 0x5bc   :  { %966 = vmatpush1.msra.mxu1 %v2806_v17 }
 0x5bd   :  { %967 = vmatprep.subr.mxu1 %v2816_v19 }
 0x5be   :  { %968 = vmatpush1.msra.mxu1 %v2822_v20 }
 0x5bf   :  { %969 = vmatprep.subr.mxu1 %v2829_v21 }
 0x5c0   :  { %970 = vmatpush1.msra.mxu1 %v2837_v22 }
 0x5c1   :  { %1183 = vmatprep.subr.mxu1 %v2727_v4 }
 0x671   :  { %v777_v30 = vpop.f32.mrf.mxu1 }
 0x672   :  { %v782_v46 = vadd.f32 %v777_v30, %v337_v58 }
 0x673   :  { %v779_v1 = vpop.f32.mrf.mxu1 }
 0x674   :  { %2517 = vtanh.f32 %v782_v46  ;;  %v783_v44 = vadd.f32 %v779_v1, %v338_v62 }
 0x676   :  { %2519 = vtanh.f32 %v783_v44 }
 0x681   :  { %v2518_v32 = vpop.eup %2517 }
 0x682   :  { %v786_v47 = vmul.f32 0.5, %v2518_v32 }
 0x683   :  { %v2520_v52 = vpop.eup %2519 }
 0x684   :  { %v787_v4 = vmul.f32 %v2520_v52, %v3012_v35  ;;  %v788_v25 = vadd.f32 0.5, %v786_v47 }
 0x686   :  { %v789_v43 = vadd.f32 %v787_v4, %v3014_v31  ;;  %v790_v58 = vmul.f32 %v788_v25, %v682_v13 }
 0x688   :  { %v791_v49 = vmul.f32 %v789_v43, %v788_v25 }
 0x68a   :  { %793 = vrot.lane.b32.xlu0 %v791_v49, %s2649_s3 }
 0x6fc   :  { %v794_v55 = vpop.permute.xlu0 %793 }
 0x6fd   :  { %v796_v60 = vadd.f32 %v794_v55, %v790_v58 }
 0x6ff   :  { %2521 = vtanh.f32 %v796_v60 }
 0x70c   :  { %v2522_v33 = vpop.eup %2521 }
 0x70d   :  { %v798_v3 = vmul.f32 %v2522_v33, %v789_v43 }
 0x70f   :  { %800 = vrot.lane.b32.xlu1 %v798_v3, %s2649_s3 }
 0x781   :  { %v801_v62 = vpop.permute.xlu1 %800 }
 0x782   :  { %803 = vst.msk [vmem:[#allocation3 + $0x18] sm:$0xff] %vm459_vm4, %v801_v62  ;;  %2470 = vmatmul.mubr.msk.f32.vlgmr.msra.gmra.mxu0 %vm363_vm6, %v801_v62 }
 0x783   :  { %804 = vst.msk [vmem:[#allocation3 + $0x20] sm:$0xff] %vm461_vm5, %v801_v62  ;;  %1070 = vmatpush1.msra.mxu0 %v2732_v5  ;;  %1117 = vmatprep.mubr.f32.mxu0 %v2647_v0 }
 0x784   :  { %1071 = vmatprep.subr.mxu0 %v2737_v6 }
 0x785   :  { %1072 = vmatpush1.msra.mxu0 %v2744_v7 }
 0x786   :  { %1073 = vmatprep.subr.mxu0 %v2754_v9 }
 0x787   :  { %1074 = vmatpush1.msra.mxu0 %v2760_v10 }
 0x788   :  { %1075 = vmatprep.subr.mxu0 %v2767_v11 }
 0x789   :  { %1076 = vmatpush1.msra.mxu0 %v2775_v12 }
 0x78a   :  { %1077 = vmatprep.subr.mxu0 %v2785_v14 }
 0x78b   :  { %1078 = vmatpush1.msra.mxu0 %v2791_v15 }
 0x78c   :  { %1079 = vmatprep.subr.mxu0 %v2798_v16 }
 0x78d   :  { %1080 = vmatpush1.msra.mxu0 %v2806_v17 }
 0x78e   :  { %1081 = vmatprep.subr.mxu0 %v2816_v19 }
 0x78f   :  { %1082 = vmatpush1.msra.mxu0 %v2822_v20 }
 0x790   :  { %1083 = vmatprep.subr.mxu0 %v2829_v21 }
 0x791   :  { %1084 = vmatpush1.msra.mxu0 %v2837_v22 }
 0x842   :  { %v891_v36 = vpop.f32.mrf.mxu0 }
 0x843   :  { %v896_v13 = vadd.f32 %v891_v36, %v341_v59 }
 0x844   :  { %v893_v27 = vpop.f32.mrf.mxu0 }
 0x845   :  { %2523 = vtanh.f32 %v896_v13  ;;  %v897_v29 = vadd.f32 %v893_v27, %v342_v63  ;;  %v3765_v13 = vsel %vm2920_vm1, %v2982_v41, %v2980_v39  ;;  %v1284_v39 = vld [vmem:[#allocation4 + $0x78] sm:$0xff]  ;;  %v1283_v41 = vld [vmem:[#allocation4 + $0x70] sm:$0xff] }
 0x846   :  { %1337 = vmatprep.subr.mxu0 %v1284_v39 }
 0x847   :  { %2525 = vtanh.f32 %v897_v29 }
 0x852   :  { %v2524_v23 = vpop.eup %2523 }
 0x853   :  { %v900_v30 = vmul.f32 0.5, %v2524_v23  ;;  %v3766_v23 = vsel %vm2926_vm2, %v2998_v34, %v2992_v50  ;;  %v1280_v50 = vld [vmem:[#allocation4 + $0x58] sm:$0xff]  ;;  %v1279_v34 = vld [vmem:[#allocation4 + $0x50] sm:$0xff] }
 0x854   :  { %v2526_v46 = vpop.eup %2525 }
 0x855   :  { %v901_v1 = vmul.f32 %v2526_v46, %v3012_v35  ;;  %v902_v44 = vadd.f32 0.5, %v900_v30 }
 0x857   :  { %v903_v32 = vadd.f32 %v901_v1, %v3014_v31  ;;  %v904_v48 = vmul.f32 %v902_v44, %v796_v60 }
 0x859   :  { %v905_v47 = vmul.f32 %v903_v32, %v902_v44 }
 0x85b   :  { %907 = vrot.lane.b32.xlu0 %v905_v47, %s2649_s3 }
 0x8cd   :  { %v908_v54 = vpop.permute.xlu0 %907 }
 0x8ce   :  { %v910_v59 = vadd.f32 %v908_v54, %v904_v48 }
 0x8d0   :  { %2527 = vtanh.f32 %v910_v59 }
 0x8dd   :  { %v2528_v52 = vpop.eup %2527 }
 0x8de   :  { %v912_v4 = vmul.f32 %v2528_v52, %v903_v32  ;;  %v1281_v52 = vld [vmem:[#allocation4 + $0x60] sm:$0xff] }
 0x8e0   :  { %914 = vrot.lane.b32.xlu1 %v912_v4, %s2649_s3  ;;  %v1278_v4 = vld [vmem:[#allocation4 + $0x48] sm:$0xff] }
 0x952   :  { %v915_v51 = vpop.permute.xlu1 %914 }
 0x953   :  { %917 = vst.msk [vmem:[#allocation3 + $0x20] sm:$0xff] %vm459_vm4, %v915_v51  ;;  %2471 = vmatmul.mubr.msk.f32.vlgmr.msra.gmra.mxu1 %vm363_vm6, %v915_v51 }
 0x954   :  { %918 = vst.msk [vmem:[#allocation3 + $0x18] sm:$0xff] %vm461_vm5, %v915_v51  ;;  %1184 = vmatpush1.msra.mxu1 %v2732_v5  ;;  %1231 = vmatprep.mubr.f32.mxu1 %v2647_v0  ;;  %v1277_v51 = vld [vmem:[#allocation4 + $0x40] sm:$0xff] }
 0x955   :  { %1185 = vmatprep.subr.mxu1 %v2737_v6 }
 0x956   :  { %1186 = vmatpush1.msra.mxu1 %v2744_v7 }
 0x957   :  { %1187 = vmatprep.subr.mxu1 %v2754_v9 }
 0x958   :  { %1188 = vmatpush1.msra.mxu1 %v2760_v10 }
 0x959   :  { %1189 = vmatprep.subr.mxu1 %v2767_v11 }
 0x95a   :  { %1190 = vmatpush1.msra.mxu1 %v2775_v12 }
 0x95b   :  { %1191 = vmatprep.subr.mxu1 %v2785_v14 }
 0x95c   :  { %1192 = vmatpush1.msra.mxu1 %v2791_v15 }
 0x95d   :  { %1193 = vmatprep.subr.mxu1 %v2798_v16 }
 0x95e   :  { %1194 = vmatpush1.msra.mxu1 %v2806_v17 }
 0x95f   :  { %1195 = vmatprep.subr.mxu1 %v2816_v19 }
 0x960   :  { %1196 = vmatpush1.msra.mxu1 %v2822_v20 }
 0x961   :  { %1197 = vmatprep.subr.mxu1 %v2829_v21 }
 0x962   :  { %1198 = vmatpush1.msra.mxu1 %v2837_v22 }
 0xa13   :  { %v1005_v5 = vpop.f32.mrf.mxu1 }
 0xa14   :  { %v1010_v6 = vadd.f32 %v1005_v5, %v329_v8  ;;  %v3764_v8 = vsel %vm2926_vm2, %v2970_v26, %v2908_v40 }
 0xa15   :  { %v1007_v7 = vpop.f32.mrf.mxu1 }
 0xa16   :  { %2529 = vtanh.f32 %v1010_v6  ;;  %v1011_v9 = vadd.f32 %v1007_v7, %v330_v24 }
 0xa18   :  { %2531 = vtanh.f32 %v1011_v9  ;;  %v1276_v9 = vld [vmem:[#allocation4 + $0x38] sm:$0xff] }
 0xa23   :  { %v2530_v10 = vpop.eup %2529 }
 0xa24   :  { %v1014_v11 = vmul.f32 0.5, %v2530_v10  ;;  %v1275_v10 = vld [vmem:[#allocation4 + $0x30] sm:$0xff] }
 0xa25   :  { %v2532_v12 = vpop.eup %2531 }
 0xa26   :  { %v1015_v14 = vmul.f32 %v2532_v12, %v3012_v35  ;;  %v1016_v15 = vadd.f32 0.5, %v1014_v11  ;;  %v1274_v11 = vld [vmem:[#allocation4 + $0x28] sm:$0xff]  ;;  %v1273_v12 = vld [vmem:[#allocation4 + $0x20] sm:$0xff] }
 0xa28   :  { %v1017_v16 = vadd.f32 %v1015_v14, %v3014_v31  ;;  %v1018_v19 = vmul.f32 %v1016_v15, %v910_v59  ;;  %v1282_v59 = vld [vmem:[#allocation4 + $0x68] sm:$0xff]  ;;  %v1272_v14 = vld [vmem:[#allocation4 + $0x18] sm:$0xff] }
 0xa2a   :  { %v1019_v17 = vmul.f32 %v1017_v16, %v1016_v15  ;;  %v1271_v15 = vld [vmem:[#allocation4 + $0x10] sm:$0xff] }
 0xa2c   :  { %1021 = vrot.lane.b32.xlu0 %v1019_v17, %s2649_s3  ;;  %v1269_v17 = vld [vmem:[#allocation4] sm:$0xff] }
 0xa9e   :  { %v1022_v20 = vpop.permute.xlu0 %1021 }
 0xa9f   :  { %v1024_v21 = vadd.f32 %v1022_v20, %v1018_v19 }
 0xaa1   :  { %2533 = vtanh.f32 %v1024_v21 }
 0xaae   :  { %v2534_v22 = vpop.eup %2533 }
 0xaaf   :  { %v1026_v42 = vmul.f32 %v2534_v22, %v1017_v16  ;;  %v1270_v16 = vld [vmem:[#allocation4 + $0x8] sm:$0xff]  ;;  %v3221_v22 = vld [vmem:[#allocation6 + $0x70] sm:$0xff] }
 0xab1   :  { %1028 = vrot.lane.b32.xlu1 %v1026_v42, %s2649_s3  ;;  %v3224_v42 = vld [vmem:[#allocation6 + $0x68] sm:$0xff] }
 0xb23   :  { %v1029_v45 = vpop.permute.xlu1 %1028 }
 0xb24   :  { %1031 = vst.msk [vmem:[#allocation3 + $0x28] sm:$0xff] %vm459_vm4, %v1029_v45  ;;  %2472 = vmatmul.mubr.msk.f32.vlgmr.msra.gmra.mxu0 %vm363_vm6, %v1029_v45 }
 0xb25   :  { %1032 = vst.msk [vmem:[#allocation3 + $0x10] sm:$0xff] %vm461_vm5, %v1029_v45  ;;  %1385 = vmatprep.mubr.f32.mxu0 %v2647_v0  ;;  %1338 = vmatpush1.msra.mxu0 %v1283_v41  ;;  %v3229_v45 = vld [vmem:[#allocation6 + $0x60] sm:$0xff] }
 0xb26   :  { %1339 = vmatprep.subr.mxu0 %v1282_v59 }
 0xb27   :  { %1340 = vmatpush1.msra.mxu0 %v1281_v52 }
 0xb28   :  { %1341 = vmatprep.subr.mxu0 %v1280_v50 }
 0xb29   :  { %1342 = vmatpush1.msra.mxu0 %v1279_v34 }
 0xb2a   :  { %1343 = vmatprep.subr.mxu0 %v1278_v4 }
 0xb2b   :  { %1344 = vmatpush1.msra.mxu0 %v1277_v51 }
 0xb2c   :  { %1345 = vmatprep.subr.mxu0 %v1276_v9 }
 0xb2d   :  { %1346 = vmatpush1.msra.mxu0 %v1275_v10 }
 0xb2e   :  { %1347 = vmatprep.subr.mxu0 %v1274_v11 }
 0xb2f   :  { %1348 = vmatpush1.msra.mxu0 %v1273_v12 }
 0xb30   :  { %1349 = vmatprep.subr.mxu0 %v1272_v14 }
 0xb31   :  { %1350 = vmatpush1.msra.mxu0 %v1271_v15 }
 0xb32   :  { %1351 = vmatprep.subr.mxu0 %v1270_v16 }
 0xb33   :  { %1352 = vmatpush1.msra.mxu0 %v1269_v17 }
 0xbe4   :  { %v1119_v57 = vpop.f32.mrf.mxu0 }
 0xbe5   :  { %v1124_v63 = vadd.f32 %v1119_v57, %v3763_v61  ;;  %v3232_v57 = vld [vmem:[#allocation6 + $0x58] sm:$0xff]  ;;  %v3234_v61 = vld [vmem:[#allocation6 + $0x50] sm:$0xff] }
 0xbe6   :  { %v1121_v2 = vpop.f32.mrf.mxu0 }
 0xbe7   :  { %2535 = vtanh.f32 %v1124_v63  ;;  %v1125_v24 = vadd.f32 %v1121_v2, %v3764_v8  ;;  %v3237_v63 = vld [vmem:[#allocation6 + $0x48] sm:$0xff]  ;;  %v3241_v2 = vld [vmem:[#allocation6 + $0x40] sm:$0xff]  ;;  %v3244_v8 = vld [vmem:[#allocation6 + $0x38] sm:$0xff] }
 0xbe9   :  { %2537 = vtanh.f32 %v1125_v24  ;;  %v3246_v24 = vld [vmem:[#allocation6 + $0x30] sm:$0xff] }
 0xbf4   :  { %v2536_v25 = vpop.eup %2535 }
 0xbf5   :  { %v1128_v43 = vmul.f32 0.5, %v2536_v25  ;;  %v3249_v25 = vld [vmem:[#allocation6 + $0x28] sm:$0xff] }
 0xbf6   :  { %v2538_v49 = vpop.eup %2537 }
 0xbf7   :  { %v1129_v58 = vmul.f32 %v2538_v49, %v3012_v35  ;;  %v1130_v55 = vadd.f32 0.5, %v1128_v43  ;;  %v3253_v43 = vld [vmem:[#allocation6 + $0x20] sm:$0xff]  ;;  %v3256_v49 = vld [vmem:[#allocation6 + $0x18] sm:$0xff] }
 0xbf9   :  { %v1131_v60 = vadd.f32 %v1129_v58, %v3014_v31  ;;  %v1132_v37 = vmul.f32 %v1130_v55, %v1024_v21  ;;  %v3219_v21 = vld [vmem:[#allocation6 + $0x78] sm:$0xff]  ;;  %v3258_v58 = vld [vmem:[#allocation6 + $0x10] sm:$0xff] }
 0xbfa   :  { %1532 = vmatprep.subr.mxu1 %v3219_v21  ;;  %1772 = vmatprep.subr.mxu0 %v3219_v21 }
 0xbfb   :  { %v1133_v33 = vmul.f32 %v1131_v60, %v1130_v55  ;;  %v3261_v55 = vld [vmem:[#allocation6 + $0x8] sm:$0xff] }
 0xbfd   :  { %1135 = vrot.lane.b32.xlu0 %v1133_v33, %s2649_s3 }
 0xc6f   :  { %v1136_v18 = vpop.permute.xlu0 %1135 }
 0xc70   :  { %v1138_v3 = vadd.f32 %v1136_v18, %v1132_v37 }
 0xc72   :  { %2539 = vtanh.f32 %v1138_v3 }
 0xc7f   :  { %v2540_v62 = vpop.eup %2539 }
 0xc80   :  { %v1140_v36 = vmul.f32 %v2540_v62, %v1131_v60  ;;  %v3265_v60 = vld [vmem:[#allocation6] sm:$0xff]  ;;  %v1264_v62 = vld [vmem:[#allocation3 + $0x18] sm:$0xff] }
 0xc82   :  { %1142 = vrot.lane.b32.xlu1 %v1140_v36, %s2649_s3  ;;  %v1265_v36 = vld [vmem:[#allocation3 + $0x20] sm:$0xff] }
 0xcf4   :  { %v1143_v40 = vpop.permute.xlu1 %1142 }
 0xcf5   :  { %1145 = vst.msk [vmem:[#allocation3 + $0x30] sm:$0xff] %vm459_vm4, %v1143_v40  ;;  %2473 = vmatmul.mubr.msk.f32.vlgmr.msra.gmra.mxu1 %vm363_vm6, %v1143_v40 }
 0xcf6   :  { %1146 = vst.msk [vmem:[#allocation3 + $0x8] sm:$0xff] %vm461_vm5, %v1143_v40  ;;  %1580 = vmatprep.mubr.f32.mxu1 %v2647_v0  ;;  %1533 = vmatpush1.msra.mxu1 %v3221_v22  ;;  %v1266_v40 = vld [vmem:[#allocation3 + $0x28] sm:$0xff] }
 0xcf7   :  { %1534 = vmatprep.subr.mxu1 %v3224_v42 }
 0xcf8   :  { %1535 = vmatpush1.msra.mxu1 %v3229_v45 }
 0xcf9   :  { %1536 = vmatprep.subr.mxu1 %v3232_v57 }
 0xcfa   :  { %1537 = vmatpush1.msra.mxu1 %v3234_v61 }
 0xcfb   :  { %1538 = vmatprep.subr.mxu1 %v3237_v63 }
 0xcfc   :  { %1539 = vmatpush1.msra.mxu1 %v3241_v2 }
 0xcfd   :  { %1540 = vmatprep.subr.mxu1 %v3244_v8  ;;  %v1262_v18 = vld [vmem:[#allocation3 + $0x8] sm:$0xff] }
 0xcfe   :  { %1541 = vmatpush1.msra.mxu1 %v3246_v24 }
 0xcff   :  { %1542 = vmatprep.subr.mxu1 %v3249_v25 }
 0xd00   :  { %1543 = vmatpush1.msra.mxu1 %v3253_v43 }
 0xd01   :  { %1544 = vmatprep.subr.mxu1 %v3256_v49 }
 0xd02   :  { %1545 = vmatpush1.msra.mxu1 %v3258_v58 }
 0xd03   :  { %1546 = vmatprep.subr.mxu1 %v3261_v55 }
 0xd04   :  { %1547 = vmatpush1.msra.mxu1 %v3265_v60 }
 0xd05   :  { %1581 = vmatmul.mubr.f32.vlgmr.msra.gmra.mxu1 %v2647_v0  ;;  %1655 = vmatprep.subr.mxu1 %v3219_v21 }
 0xd06   :  { %1656 = vmatpush1.msra.mxu1 %v3221_v22  ;;  %1703 = vmatprep.mubr.f32.mxu1 %v2647_v0 }
 0xd07   :  { %1657 = vmatprep.subr.mxu1 %v3224_v42 }
 0xd08   :  { %1658 = vmatpush1.msra.mxu1 %v3229_v45 }
 0xd09   :  { %1659 = vmatprep.subr.mxu1 %v3232_v57 }
 0xd0a   :  { %1660 = vmatpush1.msra.mxu1 %v3234_v61 }
 0xd0b   :  { %1661 = vmatprep.subr.mxu1 %v3237_v63 }
 0xd0c   :  { %1662 = vmatpush1.msra.mxu1 %v3241_v2 }
 0xd0d   :  { %1663 = vmatprep.subr.mxu1 %v3244_v8 }
 0xd0e   :  { %1664 = vmatpush1.msra.mxu1 %v3246_v24 }
 0xd0f   :  { %1665 = vmatprep.subr.mxu1 %v3249_v25 }
 0xd10   :  { %1666 = vmatpush1.msra.mxu1 %v3253_v43 }
 0xd11   :  { %1667 = vmatprep.subr.mxu1 %v3256_v49 }
 0xd12   :  { %1668 = vmatpush1.msra.mxu1 %v3258_v58 }
 0xd13   :  { %1669 = vmatprep.subr.mxu1 %v3261_v55 }
 0xd14   :  { %1670 = vmatpush1.msra.mxu1 %v3265_v60 }
 0xd15   :  { %1889 = vmatprep.subr.mxu1 %v3219_v21 }
 0xdb5   :  { %v1233_v26 = vpop.f32.mrf.mxu1 }
 0xdb6   :  { %v1238_v27 = vadd.f32 %v1233_v26, %v3765_v13  ;;  %v1267_v26 = vld [vmem:[#allocation3 + $0x30] sm:$0xff] }
 0xdb7   :  { %v1235_v29 = vpop.f32.mrf.mxu1 }
 0xdb8   :  { %2541 = vtanh.f32 %v1238_v27  ;;  %v1239_v30 = vadd.f32 %v1235_v29, %v3766_v23  ;;  %v1285_v27 = vld [vmem:[%s3752_s6] sm:$0x3] }
 0xdba   :  { %2543 = vtanh.f32 %v1239_v30  ;;  %v3767_v30 = vsub.s32 0, %v2893_v28 }
 0xdc5   :  { %v2542_v46 = vpop.eup %2541 }
 0xdc6   :  { %v1242_v1 = vmul.f32 0.5, %v2542_v46  ;;  %v1290_v46 = vrot.slane %v1285_v27, %v3767_v30 }
 0xdc7   :  { %v2544_v44 = vpop.eup %2543 }
 0xdc8   :  { %v1243_v32 = vmul.f32 %v2544_v44, %v3012_v35  ;;  %v1244_v47 = vadd.f32 0.5, %v1242_v1  ;;  %v3768_v44 = vsub.s32 1, %v2893_v28 }
 0xdca   :  { %v1245_v48 = vadd.f32 %v1243_v32, %v3014_v31  ;;  %v1246_v5 = vmul.f32 %v1244_v47, %v1138_v3  ;;  %v1263_v3 = vld [vmem:[#allocation3 + $0x10] sm:$0xff]  ;;  %v1294_v32 = vrot.slane %v1285_v27, %v3768_v44 }
 0xdcc   :  { %v1247_v54 = vmul.f32 %v1245_v48, %v1244_v47 }
 0xdce   :  { %1249 = vrot.lane.b32.xlu0 %v1247_v54, %s2649_s3 }
 0xe40   :  { %v1250_v6 = vpop.permute.xlu0 %1249 }
 0xe41   :  { %v1252_v7 = vadd.f32 %v1250_v6, %v1246_v5 }
 0xe43   :  { %2545 = vtanh.f32 %v1252_v7 }
 0xe50   :  { %v2546_v19 = vpop.eup %2545 }
 0xe51   :  { %v1254_v20 = vmul.f32 %v2546_v19, %v1245_v48 }
 0xe53   :  { %1256 = vrot.lane.b32.xlu1 %v1254_v20, %s2649_s3 }
 0xec5   :  { %v1257_v33 = vpop.permute.xlu1 %1256 }
 0xec6   :  { %1259 = vst.msk [vmem:[#allocation3 + $0x38] sm:$0xff] %vm459_vm4, %v1257_v33 }
 0xec7   :  { %1260 = vst.msk [vmem:[#allocation3] sm:$0xff] %vm461_vm5, %v1257_v33 }
 0xecd   :  { %v1268_v13 = vld [vmem:[#allocation3 + $0x38] sm:$0xff] }
 0xece   :  { %v1261_v37 = vld [vmem:[#allocation3] sm:$0xff] }
 0xecf   :  { %2474 = vmatmul.mubr.msk.f32.vlgmr.msra.gmra.mxu0 %vm363_vm6, %v1261_v37 }
 0xed0   :  { %1391 = vmatprep.mubr.f32.mxu0 %v2647_v0  ;;  %1773 = vmatpush1.msra.mxu0 %v3221_v22 }
 0xed1   :  { %1774 = vmatprep.subr.mxu0 %v3224_v42 }
 0xed2   :  { %1775 = vmatpush1.msra.mxu0 %v3229_v45 }
 0xed3   :  { %2475 = vmatmul.mubr.msk.f32.gmra.mxu0 %vm363_vm6, %v1262_v18  ;;  %1776 = vmatprep.subr.mxu0 %v3232_v57 }
 0xed4   :  { %1397 = vmatprep.mubr.f32.mxu0 %v2647_v0  ;;  %1777 = vmatpush1.msra.mxu0 %v3234_v61 }
 0xed5   :  { %1778 = vmatprep.subr.mxu0 %v3237_v63 }
 0xed6   :  { %1779 = vmatpush1.msra.mxu0 %v3241_v2 }
 0xed7   :  { %2476 = vmatmul.mubr.msk.f32.gmra.mxu0 %vm363_vm6, %v1263_v3  ;;  %1780 = vmatprep.subr.mxu0 %v3244_v8 }
 0xed8   :  { %1403 = vmatprep.mubr.f32.mxu0 %v2647_v0  ;;  %1781 = vmatpush1.msra.mxu0 %v3246_v24 }
 0xed9   :  { %1782 = vmatprep.subr.mxu0 %v3249_v25 }
 0xeda   :  { %1783 = vmatpush1.msra.mxu0 %v3253_v43 }
 0xedb   :  { %2477 = vmatmul.mubr.msk.f32.gmra.mxu0 %vm363_vm6, %v1264_v62  ;;  %1784 = vmatprep.subr.mxu0 %v3256_v49 }
 0xedc   :  { %1409 = vmatprep.mubr.f32.mxu0 %v2647_v0  ;;  %1785 = vmatpush1.msra.mxu0 %v3258_v58 }
 0xedd   :  { %1786 = vmatprep.subr.mxu0 %v3261_v55 }
 0xede   :  { %1787 = vmatpush1.msra.mxu0 %v3265_v60 }
 0xedf   :  { %2478 = vmatmul.mubr.msk.f32.gmra.mxu0 %vm363_vm6, %v1265_v36  ;;  %2006 = vmatprep.subr.mxu0 %v3219_v21 }
 0xee0   :  { %1415 = vmatprep.mubr.f32.mxu0 %v2647_v0 }
 0xee3   :  { %2479 = vmatmul.mubr.msk.f32.gmra.mxu0 %vm363_vm6, %v1266_v40 }
 0xee4   :  { %1421 = vmatprep.mubr.f32.mxu0 %v2647_v0 }
 0xee7   :  { %2480 = vmatmul.mubr.msk.f32.gmra.mxu0 %vm363_vm6, %v1267_v26 }
 0xee8   :  { %1427 = vmatprep.mubr.f32.mxu0 %v2647_v0 }
 0xeeb   :  { %2481 = vmatmul.mubr.msk.f32.gmra.mxu0 %vm363_vm6, %v1268_v13 }
 0xeec   :  { %1820 = vmatprep.mubr.f32.mxu0 %v2647_v0 }
 0xf8f   :  { %v1387_v29 = vpop.f32.mrf.mxu0 }
 0xf90   :  { %v3392_v27 = vadd.f32 %v1387_v29, %v1290_v46 }
 0xf91   :  { %v1389_v23 = vpop.f32.mrf.mxu0 }
 0xf93   :  { %v1393_v1 = vpop.f32.mrf.mxu0 }
 0xf94   :  { %v3328_v47 = vadd.f32 %v1393_v1, %v1290_v46  ;;  %v1582_v1 = vpop.f32.mrf.mxu1 }
 0xf95   :  { %v1395_v48 = vpop.f32.mrf.mxu0 }
 0xf96   :  { %v3330_v54 = vadd.f32 %v1395_v48, %v1294_v32 }
 0xf97   :  { %v1399_v39 = vpop.f32.mrf.mxu0 }
 0xf98   :  { %v3332_v41 = vadd.f32 %v1399_v39, %v1290_v46 }
 0xf99   :  { %v1401_v59 = vpop.f32.mrf.mxu0 }
 0xf9a   :  { %v3334_v52 = vadd.f32 %v1401_v59, %v1294_v32  ;;  %v3404_v59 = vadd.f32 %v1389_v23, %v1294_v32  ;;  %v1584_v23 = vpop.f32.mrf.mxu1 }
 0xf9b   :  { %v1405_v50 = vpop.f32.mrf.mxu0 }
 0xf9c   :  { %v3336_v34 = vadd.f32 %v1405_v50, %v1290_v46 }
 0xf9d   :  { %v1407_v4 = vpop.f32.mrf.mxu0 }
 0xf9e   :  { %v3338_v51 = vadd.f32 %v1407_v4, %v1294_v32 }
 0xf9f   :  { %v1411_v5 = vpop.f32.mrf.mxu0 }
 0xfa0   :  { %v3340_v28 = vadd.f32 %v1411_v5, %v1290_v46 }
 0xfa1   :  { %v1413_v6 = vpop.f32.mrf.mxu0 }
 0xfa2   :  { %v3342_v7 = vadd.f32 %v1413_v6, %v1294_v32  ;;  %v1490_v9 = vsel %vm2920_vm1, %v3336_v34, %v3340_v28  ;;  %v1494_v10 = vsel %vm2920_vm1, %v3340_v28, %v3336_v34 }
 0xfa3   :  { %v1417_v11 = vpop.f32.mrf.mxu0 }
 0xfa4   :  { %v3352_v12 = vadd.f32 %v1417_v11, %v1290_v46  ;;  %v1491_v14 = vsel %vm2926_vm2, %v3338_v51, %v3342_v7  ;;  %v1495_v15 = vsel %vm2926_vm2, %v3342_v7, %v3338_v51 }
 0xfa5   :  { %v1419_v16 = vpop.f32.mrf.mxu0 }
 0xfa6   :  { %v3362_v17 = vadd.f32 %v1419_v16, %v1294_v32  ;;  %v1478_v19 = vsel %vm2920_vm1, %v3332_v41, %v3352_v12  ;;  %v1482_v20 = vsel %vm2920_vm1, %v3352_v12, %v3332_v41 }
 0xfa7   :  { %v1423_v33 = vpop.f32.mrf.mxu0 }
 0xfa8   :  { %v3372_v37 = vadd.f32 %v1423_v33, %v1290_v46  ;;  %v1479_v18 = vsel %vm2926_vm2, %v3334_v52, %v3362_v17  ;;  %v1483_v3 = vsel %vm2926_vm2, %v3362_v17, %v3334_v52 }
 0xfa9   :  { %v1425_v62 = vpop.f32.mrf.mxu0 }
 0xfaa   :  { %v3382_v36 = vadd.f32 %v1425_v62, %v1294_v32  ;;  %v1466_v40 = vsel %vm2920_vm1, %v3328_v47, %v3372_v37  ;;  %v3769_v7 = vsel %vm2920_vm1, %v3372_v37, %v3328_v47  ;;  %v2456_v47 = vld [vmem:[%s3753_s7] ss:$0 sm:$0xff] }
 0xfab   :  { %v1429_v13 = vpop.f32.mrf.mxu0 }
 0xfac   :  { %v3394_v30 = vadd.f32 %v1429_v13, %v1290_v46  ;;  %v1467_v44 = vsel %vm2926_vm2, %v3330_v54, %v3382_v36  ;;  %v3770_v17 = vsel %vm2926_vm2, %v3382_v36, %v3330_v54 }
 0xfad   :  { %v1431_v39 = vpop.f32.mrf.mxu0 }
 0xfae   :  { %v1454_v29 = vsel %vm2920_vm1, %v3392_v27, %v3394_v30  ;;  %v3410_v46 = vadd.f32 %v1431_v39, %v1294_v32 }
 0xfaf   :  { %v1587_v4 = vadd.f32 %v1582_v1, %v1454_v29 }
 0xfb0   :  { %v1455_v5 = vsel %vm2926_vm2, %v3404_v59, %v3410_v46 }
 0xfb1   :  { %2547 = vtanh.f32 %v1587_v4  ;;  %v1588_v32 = vadd.f32 %v1584_v23, %v1455_v5 }
 0xfb3   :  { %2549 = vtanh.f32 %v1588_v32 }
 0xfbe   :  { %v2548_v11 = vpop.eup %2547 }
 0xfbf   :  { %v1591_v16 = vmul.f32 0.5, %v2548_v11 }
 0xfc0   :  { %v2550_v33 = vpop.eup %2549 }
 0xfc1   :  { %v1592_v62 = vmul.f32 %v2550_v33, %v3012_v35  ;;  %v1593_v13 = vadd.f32 0.5, %v1591_v16 }
 0xfc3   :  { %v1594_v1 = vadd.f32 %v1592_v62, %v3014_v31  ;;  %v1595_v29 = vmul.f32 0.0, %v1593_v13 }
 0xfc5   :  { %v1596_v39 = vmul.f32 %v1594_v1, %v1593_v13 }
 0xfc7   :  { %1598 = vrot.lane.b32.xlu0 %v1596_v39, %s2649_s3 }
0x1039   :  { %v1599_v50 = vpop.permute.xlu0 %1598 }
0x103a   :  { %v1601_v48 = vadd.f32 %v1599_v50, %v1595_v29 }
0x103c   :  { %2551 = vtanh.f32 %v1601_v48 }
0x1049   :  { %v2552_v26 = vpop.eup %2551 }
0x104a   :  { %v3427_v6 = vmul.f32 %v2552_v26, %v1594_v1 }
0x104c   :  { %1635 = vrot.lane.b32.xlu1 %v3427_v6, %s2649_s3 }
0x10be   :  { %v1636_v4 = vpop.permute.xlu1 %1635 }
0x10bf   :  { %2482 = vmatmul.mubr.msk.f32.vlgmr.msra.gmra.mxu1 %vm363_vm6, %v1636_v4 }
0x10c0   :  { %1890 = vmatpush1.msra.mxu1 %v3221_v22  ;;  %1937 = vmatprep.mubr.f32.mxu1 %v2647_v0 }
0x10c1   :  { %1891 = vmatprep.subr.mxu1 %v3224_v42 }
0x10c2   :  { %1892 = vmatpush1.msra.mxu1 %v3229_v45 }
0x10c3   :  { %1893 = vmatprep.subr.mxu1 %v3232_v57 }
0x10c4   :  { %1894 = vmatpush1.msra.mxu1 %v3234_v61 }
0x10c5   :  { %1895 = vmatprep.subr.mxu1 %v3237_v63 }
0x10c6   :  { %1896 = vmatpush1.msra.mxu1 %v3241_v2 }
0x10c7   :  { %1897 = vmatprep.subr.mxu1 %v3244_v8 }
0x10c8   :  { %1898 = vmatpush1.msra.mxu1 %v3246_v24 }
0x10c9   :  { %1899 = vmatprep.subr.mxu1 %v3249_v25 }
0x10ca   :  { %1900 = vmatpush1.msra.mxu1 %v3253_v43 }
0x10cb   :  { %1901 = vmatprep.subr.mxu1 %v3256_v49 }
0x10cc   :  { %1902 = vmatpush1.msra.mxu1 %v3258_v58 }
0x10cd   :  { %1903 = vmatprep.subr.mxu1 %v3261_v55 }
0x10ce   :  { %1904 = vmatpush1.msra.mxu1 %v3265_v60 }
0x10cf   :  { %2121 = vmatprep.subr.mxu1 %v3219_v21 }
0x117f   :  { %v1705_v26 = vpop.f32.mrf.mxu1 }
0x1180   :  { %v1710_v50 = vadd.f32 %v1705_v26, %v1466_v40 }
0x1181   :  { %v1707_v5 = vpop.f32.mrf.mxu1 }
0x1182   :  { %2553 = vtanh.f32 %v1710_v50  ;;  %v1711_v23 = vadd.f32 %v1707_v5, %v1467_v44 }
0x1184   :  { %2555 = vtanh.f32 %v1711_v23 }
0x118f   :  { %v2554_v32 = vpop.eup %2553 }
0x1190   :  { %v1714_v11 = vmul.f32 0.5, %v2554_v32 }
0x1191   :  { %v2556_v16 = vpop.eup %2555 }
0x1192   :  { %v1715_v33 = vmul.f32 %v2556_v16, %v3012_v35  ;;  %v1716_v62 = vadd.f32 0.5, %v1714_v11 }
0x1194   :  { %v1717_v13 = vadd.f32 %v1715_v33, %v3014_v31  ;;  %v1718_v39 = vmul.f32 %v1716_v62, %v1601_v48 }
0x1196   :  { %v1719_v1 = vmul.f32 %v1717_v13, %v1716_v62 }
0x1198   :  { %1721 = vrot.lane.b32.xlu0 %v1719_v1, %s2649_s3 }
0x120a   :  { %v1722_v29 = vpop.permute.xlu0 %1721 }
0x120b   :  { %v1724_v4 = vadd.f32 %v1722_v29, %v1718_v39 }
0x120d   :  { %2557 = vtanh.f32 %v1724_v4 }
0x121a   :  { %v2558_v40 = vpop.eup %2557 }
0x121b   :  { %v3452_v26 = vmul.f32 %v2558_v40, %v1717_v13 }
0x121d   :  { %1752 = vrot.lane.b32.xlu1 %v3452_v26, %s2649_s3 }
0x128f   :  { %v1753_v44 = vpop.permute.xlu1 %1752 }
0x1290   :  { %2483 = vmatmul.mubr.msk.f32.vlgmr.msra.gmra.mxu0 %vm363_vm6, %v1753_v44 }
0x1291   :  { %2007 = vmatpush1.msra.mxu0 %v3221_v22  ;;  %2054 = vmatprep.mubr.f32.mxu0 %v2647_v0 }
0x1292   :  { %2008 = vmatprep.subr.mxu0 %v3224_v42 }
0x1293   :  { %2009 = vmatpush1.msra.mxu0 %v3229_v45 }
0x1294   :  { %2010 = vmatprep.subr.mxu0 %v3232_v57 }
0x1295   :  { %2011 = vmatpush1.msra.mxu0 %v3234_v61 }
0x1296   :  { %2012 = vmatprep.subr.mxu0 %v3237_v63 }
0x1297   :  { %2013 = vmatpush1.msra.mxu0 %v3241_v2 }
0x1298   :  { %2014 = vmatprep.subr.mxu0 %v3244_v8 }
0x1299   :  { %2015 = vmatpush1.msra.mxu0 %v3246_v24 }
0x129a   :  { %2016 = vmatprep.subr.mxu0 %v3249_v25 }
0x129b   :  { %2017 = vmatpush1.msra.mxu0 %v3253_v43 }
0x129c   :  { %2018 = vmatprep.subr.mxu0 %v3256_v49 }
0x129d   :  { %2019 = vmatpush1.msra.mxu0 %v3258_v58 }
0x129e   :  { %2020 = vmatprep.subr.mxu0 %v3261_v55 }
0x129f   :  { %2021 = vmatpush1.msra.mxu0 %v3265_v60 }
0x12a0   :  { %2236 = vmatprep.subr.mxu0 %v3219_v21 }
0x1350   :  { %v1822_v48 = vpop.f32.mrf.mxu0 }
0x1351   :  { %v1827_v50 = vadd.f32 %v1822_v48, %v1478_v19 }
0x1352   :  { %v1824_v5 = vpop.f32.mrf.mxu0 }
0x1353   :  { %2559 = vtanh.f32 %v1827_v50  ;;  %v1828_v23 = vadd.f32 %v1824_v5, %v1479_v18 }
0x1355   :  { %2561 = vtanh.f32 %v1828_v23 }
0x1360   :  { %v2560_v32 = vpop.eup %2559 }
0x1361   :  { %v1831_v11 = vmul.f32 0.5, %v2560_v32 }
0x1362   :  { %v2562_v16 = vpop.eup %2561 }
0x1363   :  { %v1832_v33 = vmul.f32 %v2562_v16, %v3012_v35  ;;  %v1833_v62 = vadd.f32 0.5, %v1831_v11 }
0x1365   :  { %v1834_v13 = vadd.f32 %v1832_v33, %v3014_v31  ;;  %v1835_v19 = vmul.f32 %v1833_v62, %v1724_v4 }
0x1367   :  { %v1836_v1 = vmul.f32 %v1834_v13, %v1833_v62 }
0x1369   :  { %1838 = vrot.lane.b32.xlu0 %v1836_v1, %s2649_s3 }
0x13db   :  { %v1839_v39 = vpop.permute.xlu0 %1838 }
0x13dc   :  { %v1841_v29 = vadd.f32 %v1839_v39, %v1835_v19 }
0x13de   :  { %2563 = vtanh.f32 %v1841_v29 }
0x13eb   :  { %v2564_v40 = vpop.eup %2563 }
0x13ec   :  { %v3487_v44 = vmul.f32 %v2564_v40, %v1834_v13 }
0x13ee   :  { %1869 = vrot.lane.b32.xlu1 %v3487_v44, %s2649_s3 }
0x1460   :  { %v1870_v18 = vpop.permute.xlu1 %1869 }
0x1461   :  { %2484 = vmatmul.mubr.msk.f32.vlgmr.msra.gmra.mxu1 %vm363_vm6, %v1870_v18 }
0x1462   :  { %2122 = vmatpush1.msra.mxu1 %v3221_v22  ;;  %2169 = vmatprep.mubr.f32.mxu1 %v2647_v0 }
0x1463   :  { %2123 = vmatprep.subr.mxu1 %v3224_v42 }
0x1464   :  { %2124 = vmatpush1.msra.mxu1 %v3229_v45 }
0x1465   :  { %2125 = vmatprep.subr.mxu1 %v3232_v57 }
0x1466   :  { %2126 = vmatpush1.msra.mxu1 %v3234_v61 }
0x1467   :  { %2127 = vmatprep.subr.mxu1 %v3237_v63 }
0x1468   :  { %2128 = vmatpush1.msra.mxu1 %v3241_v2 }
0x1469   :  { %2129 = vmatprep.subr.mxu1 %v3244_v8 }
0x146a   :  { %2130 = vmatpush1.msra.mxu1 %v3246_v24 }
0x146b   :  { %2131 = vmatprep.subr.mxu1 %v3249_v25 }
0x146c   :  { %2132 = vmatpush1.msra.mxu1 %v3253_v43 }
0x146d   :  { %2133 = vmatprep.subr.mxu1 %v3256_v49 }
0x146e   :  { %2134 = vmatpush1.msra.mxu1 %v3258_v58 }
0x146f   :  { %2135 = vmatprep.subr.mxu1 %v3261_v55 }
0x1470   :  { %2136 = vmatpush1.msra.mxu1 %v3265_v60 }
0x1471   :  { %2351 = vmatprep.subr.mxu1 %v3219_v21 }
0x1521   :  { %v1939_v4 = vpop.f32.mrf.mxu1 }
0x1522   :  { %v1944_v48 = vadd.f32 %v1939_v4, %v1490_v9 }
0x1523   :  { %v1941_v50 = vpop.f32.mrf.mxu1 }
0x1524   :  { %2565 = vtanh.f32 %v1944_v48  ;;  %v1945_v5 = vadd.f32 %v1941_v50, %v1491_v14 }
0x1526   :  { %2567 = vtanh.f32 %v1945_v5 }
0x1531   :  { %v2566_v23 = vpop.eup %2565 }
0x1532   :  { %v1948_v32 = vmul.f32 0.5, %v2566_v23 }
0x1533   :  { %v2568_v11 = vpop.eup %2567 }
0x1534   :  { %v1949_v21 = vmul.f32 %v2568_v11, %v3012_v35  ;;  %v1950_v16 = vadd.f32 0.5, %v1948_v32 }
0x1536   :  { %v1951_v33 = vadd.f32 %v1949_v21, %v3014_v31  ;;  %v1952_v9 = vmul.f32 %v1950_v16, %v1841_v29 }
0x1538   :  { %v1953_v62 = vmul.f32 %v1951_v33, %v1950_v16 }
0x153a   :  { %1955 = vrot.lane.b32.xlu0 %v1953_v62, %s2649_s3 }
0x15ac   :  { %v1956_v13 = vpop.permute.xlu0 %1955 }
0x15ad   :  { %v1958_v1 = vadd.f32 %v1956_v13, %v1952_v9 }
0x15af   :  { %2569 = vtanh.f32 %v1958_v1 }
0x15bc   :  { %v2570_v19 = vpop.eup %2569 }
0x15bd   :  { %v3522_v39 = vmul.f32 %v2570_v19, %v1951_v33 }
0x15bf   :  { %1986 = vrot.lane.b32.xlu1 %v3522_v39, %s2649_s3 }
0x1631   :  { %v1987_v14 = vpop.permute.xlu1 %1986 }
0x1632   :  { %2485 = vmatmul.mubr.msk.f32.vlgmr.msra.gmra.mxu0 %vm363_vm6, %v1987_v14 }
0x1633   :  { %2237 = vmatpush1.msra.mxu0 %v3221_v22  ;;  %2284 = vmatprep.mubr.f32.mxu0 %v2647_v0 }
0x1634   :  { %2238 = vmatprep.subr.mxu0 %v3224_v42 }
0x1635   :  { %2239 = vmatpush1.msra.mxu0 %v3229_v45 }
0x1636   :  { %2240 = vmatprep.subr.mxu0 %v3232_v57 }
0x1637   :  { %2241 = vmatpush1.msra.mxu0 %v3234_v61 }
0x1638   :  { %2242 = vmatprep.subr.mxu0 %v3237_v63 }
0x1639   :  { %2243 = vmatpush1.msra.mxu0 %v3241_v2 }
0x163a   :  { %2244 = vmatprep.subr.mxu0 %v3244_v8 }
0x163b   :  { %2245 = vmatpush1.msra.mxu0 %v3246_v24 }
0x163c   :  { %2246 = vmatprep.subr.mxu0 %v3249_v25 }
0x163d   :  { %2247 = vmatpush1.msra.mxu0 %v3253_v43 }
0x163e   :  { %2248 = vmatprep.subr.mxu0 %v3256_v49 }
0x163f   :  { %2249 = vmatpush1.msra.mxu0 %v3258_v58 }
0x1640   :  { %2250 = vmatprep.subr.mxu0 %v3261_v55 }
0x1641   :  { %2251 = vmatpush1.msra.mxu0 %v3265_v60 }
0x16f2   :  { %v2056_v29 = vpop.f32.mrf.mxu0 }
0x16f3   :  { %v2061_v40 = vadd.f32 %v2056_v29, %v1494_v10 }
0x16f4   :  { %v2058_v18 = vpop.f32.mrf.mxu0 }
0x16f5   :  { %2571 = vtanh.f32 %v2061_v40  ;;  %v2062_v4 = vadd.f32 %v2058_v18, %v1495_v15 }
0x16f7   :  { %2573 = vtanh.f32 %v2062_v4 }
0x1702   :  { %v2572_v48 = vpop.eup %2571 }
0x1703   :  { %v2065_v50 = vmul.f32 0.5, %v2572_v48  ;;  %v2457_v48 = vld [vmem:[%s3754_s8] ss:$0 sm:$0xff] }
0x1704   :  { %v2574_v5 = vpop.eup %2573 }
0x1705   :  { %v2066_v23 = vmul.f32 %v2574_v5, %v3012_v35  ;;  %v2067_v32 = vadd.f32 0.5, %v2065_v50 }
0x1707   :  { %v2068_v11 = vadd.f32 %v2066_v23, %v3014_v31  ;;  %v2069_v34 = vmul.f32 %v2067_v32, %v1958_v1 }
0x1709   :  { %v2070_v21 = vmul.f32 %v2068_v11, %v2067_v32 }
0x170b   :  { %2072 = vrot.lane.b32.xlu0 %v2070_v21, %s2649_s3 }
0x177d   :  { %v2073_v28 = vpop.permute.xlu0 %2072 }
0x177e   :  { %v2075_v10 = vadd.f32 %v2073_v28, %v2069_v34 }
0x1780   :  { %2575 = vtanh.f32 %v2075_v10 }
0x178d   :  { %v2576_v16 = vpop.eup %2575 }
0x178e   :  { %v3556_v33 = vmul.f32 %v2576_v16, %v2068_v11 }
0x1790   :  { %2101 = vrot.lane.b32.xlu1 %v3556_v33, %s2649_s3 }
0x1802   :  { %v2102_v51 = vpop.permute.xlu1 %2101 }
0x1803   :  { %2486 = vmatmul.mubr.msk.f32.vlgmr.msra.gmra.mxu1 %vm363_vm6, %v2102_v51 }
0x1804   :  { %2352 = vmatpush1.msra.mxu1 %v3221_v22  ;;  %2399 = vmatprep.mubr.f32.mxu1 %v2647_v0 }
0x1805   :  { %2353 = vmatprep.subr.mxu1 %v3224_v42 }
0x1806   :  { %2354 = vmatpush1.msra.mxu1 %v3229_v45 }
0x1807   :  { %2355 = vmatprep.subr.mxu1 %v3232_v57 }
0x1808   :  { %2356 = vmatpush1.msra.mxu1 %v3234_v61 }
0x1809   :  { %2357 = vmatprep.subr.mxu1 %v3237_v63 }
0x180a   :  { %2358 = vmatpush1.msra.mxu1 %v3241_v2 }
0x180b   :  { %2359 = vmatprep.subr.mxu1 %v3244_v8 }
0x180c   :  { %2360 = vmatpush1.msra.mxu1 %v3246_v24 }
0x180d   :  { %2361 = vmatprep.subr.mxu1 %v3249_v25 }
0x180e   :  { %2362 = vmatpush1.msra.mxu1 %v3253_v43 }
0x180f   :  { %2363 = vmatprep.subr.mxu1 %v3256_v49 }
0x1810   :  { %2364 = vmatpush1.msra.mxu1 %v3258_v58 }
0x1811   :  { %2365 = vmatprep.subr.mxu1 %v3261_v55 }
0x1812   :  { %2366 = vmatpush1.msra.mxu1 %v3265_v60 }
0x18c3   :  { %v2171_v0 = vpop.f32.mrf.mxu1 }
0x18c4   :  { %v2176_v22 = vadd.f32 %v2171_v0, %v1482_v20 }
0x18c5   :  { %v2173_v42 = vpop.f32.mrf.mxu1 }
0x18c6   :  { %2577 = vtanh.f32 %v2176_v22  ;;  %v2177_v45 = vadd.f32 %v2173_v42, %v1483_v3  ;;  %v2458_v22 = vld [vmem:[%s3755_s9] ss:$0 sm:$0xff] }
0x18c8   :  { %2579 = vtanh.f32 %v2177_v45 }
0x18d3   :  { %v2578_v57 = vpop.eup %2577 }
0x18d4   :  { %v2180_v61 = vmul.f32 0.5, %v2578_v57 }
0x18d5   :  { %v2580_v63 = vpop.eup %2579 }
0x18d6   :  { %v2181_v2 = vmul.f32 %v2580_v63, %v3012_v35  ;;  %v2182_v8 = vadd.f32 0.5, %v2180_v61 }
0x18d8   :  { %v2183_v24 = vadd.f32 %v2181_v2, %v3014_v31  ;;  %v2184_v43 = vmul.f32 %v2182_v8, %v2075_v10 }
0x18da   :  { %v2185_v25 = vmul.f32 %v2183_v24, %v2182_v8 }
0x18dc   :  { %2187 = vrot.lane.b32.xlu0 %v2185_v25, %s2649_s3 }
0x194e   :  { %v2188_v49 = vpop.permute.xlu0 %2187 }
0x194f   :  { %v2190_v58 = vadd.f32 %v2188_v49, %v2184_v43 }
0x1951   :  { %2581 = vtanh.f32 %v2190_v58 }
0x195e   :  { %v2582_v55 = vpop.eup %2581 }
0x195f   :  { %v3590_v60 = vmul.f32 %v2582_v55, %v2183_v24 }
0x1961   :  { %2216 = vrot.lane.b32.xlu1 %v3590_v60, %s2649_s3 }
0x19d3   :  { %v2217_v41 = vpop.permute.xlu1 %2216 }
0x19d4   :  { %2487 = vmatmul.mubr.msk.f32.vlgmr.msra.gmra.mxu0 %vm363_vm6, %v2217_v41  ;;  %v3772_v41 = vsel %vm2920_vm1, %v3394_v30, %v3392_v27 }
0x1a94   :  { %v2286_v52 = vpop.f32.mrf.mxu0 }
0x1a95   :  { %v2291_v12 = vadd.f32 %v2286_v52, %v3769_v7 }
0x1a96   :  { %v2288_v15 = vpop.f32.mrf.mxu0 }
0x1a97   :  { %2583 = vtanh.f32 %v2291_v12  ;;  %v2292_v20 = vadd.f32 %v2288_v15, %v3770_v17 }
0x1a99   :  { %2585 = vtanh.f32 %v2292_v20 }
0x1aa4   :  { %v2584_v3 = vpop.eup %2583 }
0x1aa5   :  { %v2295_v62 = vmul.f32 0.5, %v2584_v3 }
0x1aa6   :  { %v2586_v9 = vpop.eup %2585 }
0x1aa7   :  { %v2296_v13 = vmul.f32 %v2586_v9, %v3012_v35  ;;  %v2297_v1 = vadd.f32 0.5, %v2295_v62 }
0x1aa9   :  { %v2298_v19 = vadd.f32 %v2296_v13, %v3014_v31  ;;  %v2299_v54 = vmul.f32 %v2297_v1, %v2190_v58  ;;  %v3771_v58 = vsel %vm2926_vm2, %v3410_v46, %v3404_v59 }
0x1aab   :  { %v2300_v14 = vmul.f32 %v2298_v19, %v2297_v1 }
0x1aad   :  { %2302 = vrot.lane.b32.xlu0 %v2300_v14, %s2649_s3 }
0x1ab1   :  { %1604 = vrot.lane.b32.xlu0 %v2456_v47, %s2649_s3 }
0x1b1f   :  { %v2303_v37 = vpop.permute.xlu0 %2302 }
0x1b20   :  { %v3612_v36 = vadd.f32 %v2303_v37, %v2299_v54 }
0x1b22   :  { %2587 = vtanh.f32 %v3612_v36 }
0x1b23   :  { %v3617_v18 = vpop.permute.xlu0 %1604 }
0x1b24   :  { %v1607_v4 = vmul.f32 %v3617_v18, %v3427_v6  ;;  %v1727_v21 = vmul.f32 %v3452_v26, %v3617_v18  ;;  %v1844_v0 = vmul.f32 %v3487_v44, %v3617_v18  ;;  %v1961_v53 = vmul.f32 %v3522_v39, %v3617_v18 }
0x1b2f   :  { %v2588_v29 = vpop.eup %2587 }
0x1b30   :  { %v3615_v40 = vmul.f32 %v2588_v29, %v2298_v19  ;;  %v2078_v19 = vmul.f32 %v3556_v33, %v3617_v18 }
0x1b32   :  { %2331 = vrot.lane.b32.xlu1 %v3615_v40, %s2649_s3 }
0x1b36   :  { %1609 = vrot.lane.b32.xlu1 %v1607_v4, %s2649_s3 }
0x1b3a   :  { %1615 = vrot.lane.b32.xlu1 %v2457_v48, %s2650_s13 }
0x1ba4   :  { %v2332_v50 = vpop.permute.xlu1 %2331 }
0x1ba5   :  { %2488 = vmatmul.mubr.msk.f32.vlgmr.msra.gmra.mxu1 %vm363_vm6, %v2332_v50 }
0x1ba8   :  { %v1610_v5 = vpop.permute.xlu1 %1609 }
0x1ba9   :  { %v1612_v23 = vsel %vm459_vm4, %v1610_v5, 0.0 }
0x1baa   :  { %1613 = vadd.xlane.f32.xlu0 %v1612_v23 }
0x1bac   :  { %v3629_v32 = vpop.permute.xlu1 %1615 }
0x1bad   :  { %v1618_v11 = vmul.f32 %v3629_v32, %v3427_v6  ;;  %v1735_v6 = vmul.f32 %v3452_v26, %v3629_v32  ;;  %v1852_v56 = vmul.f32 %v3487_v44, %v3629_v32  ;;  %v1969_v1 = vmul.f32 %v3522_v39, %v3629_v32 }
0x1baf   :  { %1620 = vrot.lane.b32.xlu1 %v1618_v11, %s2651_s14 }
0x1bc0   :  { %1729 = vrot.lane.b32.xlu0 %v1727_v21, %s2649_s3 }
0x1c21   :  { %v1621_v34 = vpop.permute.xlu1 %1620 }
0x1c22   :  { %v1623_v28 = vsel %vm459_vm4, %v1621_v34, 0.0 }
0x1c23   :  { %1624 = vadd.xlane.f32.xlu1 %v1623_v28 }
0x1c33   :  { %v1614_v10 = vpop.xlane.xlu0 %1613 }
0x1c34   :  { %v1627_v42 = vadd.f32 %v2458_v22, %v1614_v10 }
0x1c36   :  { %v1628_v45 = vsel %vm1626_vm7, %v1627_v42, %v2458_v22  ;;  %v2193_v22 = vmul.f32 %v3590_v60, %v3617_v18 }
0x1c37   :  { %v1730_v16 = vpop.permute.xlu0 %1729 }
0x1c38   :  { %v1732_v51 = vsel %vm459_vm4, %v1730_v16, 0.0  ;;  %v2201_v16 = vmul.f32 %v3590_v60, %v3629_v32 }
0x1c39   :  { %1733 = vadd.xlane.f32.xlu1 %v1732_v51  ;;  %v2086_v51 = vmul.f32 %v3556_v33, %v3629_v32 }
0x1c4a   :  { %1737 = vrot.lane.b32.xlu1 %v1735_v6, %s2651_s14  ;;  %v2308_v6 = vmul.f32 %v3615_v40, %v3617_v18 }
0x1c4e   :  { %1846 = vrot.lane.b32.xlu1 %v1844_v0, %s2649_s3 }
0x1c65   :  { %v2401_v63 = vpop.f32.mrf.mxu1 }
0x1c66   :  { %v2406_v52 = vadd.f32 %v2401_v63, %v3772_v41 }
0x1c67   :  { %v2403_v24 = vpop.f32.mrf.mxu1 }
0x1c68   :  { %v2407_v55 = vadd.f32 %v2403_v24, %v3771_v58 }
0x1c6a   :  { %2589 = vtanh.f32 %v2407_v55 }
0x1c6b   :  { %2591 = vtanh.f32 %v2406_v52 }
0x1c77   :  { %v2590_v15 = vpop.eup %2589 }
0x1c78   :  { %v2592_v17 = vpop.eup %2591  ;;  %v2411_v59 = vmul.f32 %v2590_v15, %v3012_v35 }
0x1c79   :  { %v2410_v46 = vmul.f32 0.5, %v2592_v17 }
0x1c7a   :  { %v2413_v27 = vadd.f32 %v2411_v59, %v3014_v31 }
0x1c7b   :  { %v2412_v30 = vadd.f32 0.5, %v2410_v46 }
0x1c7d   :  { %v2415_v20 = vmul.f32 %v2413_v27, %v2412_v30  ;;  %v2414_v28 = vmul.f32 %v2412_v30, %v3612_v36  ;;  %v2316_v36 = vmul.f32 %v3615_v40, %v3629_v32 }
0x1cac   :  { %v1625_v57 = vpop.xlane.xlu1 %1624 }
0x1cad   :  { %v1630_v26 = vadd.f32 %v1628_v45, %v1625_v57 }
0x1caf   :  { %v1631_v61 = vsel %vm1629_vm8, %v1630_v26, %v1628_v45 }
0x1cc2   :  { %v1734_v2 = vpop.xlane.xlu1 %1733 }
0x1cc3   :  { %v1744_v8 = vadd.f32 %v1734_v2, %v1631_v61 }
0x1cc5   :  { %v1745_v25 = vsel %vm1743_vm9, %v1744_v8, %v1631_v61 }
0x1cc6   :  { %v1738_v43 = vpop.permute.xlu1 %1737 }
0x1cc7   :  { %v1740_v49 = vsel %vm459_vm4, %v1738_v43, 0.0 }
0x1cc8   :  { %1741 = vadd.xlane.f32.xlu0 %v1740_v49 }
0x1cca   :  { %v1847_v7 = vpop.permute.xlu1 %1846 }
0x1ccb   :  { %v1849_v12 = vsel %vm459_vm4, %v1847_v7, 0.0 }
0x1ccc   :  { %1850 = vadd.xlane.f32.xlu1 %v1849_v12 }
0x1cde   :  { %1854 = vrot.lane.b32.xlu0 %v1852_v56, %s2651_s14 }
0x1ce2   :  { %1963 = vrot.lane.b32.xlu0 %v1961_v53, %s2649_s3 }
0x1ce6   :  { %2417 = vrot.lane.b32.xlu0 %v2415_v20, %s2649_s3 }
0x1d51   :  { %v1742_v3 = vpop.xlane.xlu0 %1741 }
0x1d52   :  { %v1747_v44 = vadd.f32 %v1745_v25, %v1742_v3 }
0x1d54   :  { %v1748_v35 = vsel %vm1746_vm10, %v1747_v44, %v1745_v25 }
0x1d55   :  { %v1855_v62 = vpop.permute.xlu0 %1854  ;;  %v1851_v14 = vpop.xlane.xlu1 %1850 }
0x1d56   :  { %v1857_v9 = vsel %vm459_vm4, %v1855_v62, 0.0  ;;  %v1861_v47 = vadd.f32 %v1851_v14, %v1748_v35 }
0x1d57   :  { %1858 = vadd.xlane.f32.xlu1 %v1857_v9 }
0x1d58   :  { %v1862_v54 = vsel %vm1860_vm11, %v1861_v47, %v1748_v35 }
0x1d59   :  { %v1964_v13 = vpop.permute.xlu0 %1963 }
0x1d5a   :  { %v1966_v31 = vsel %vm459_vm4, %v1964_v13, 0.0 }
0x1d5b   :  { %1967 = vadd.xlane.f32.xlu1 %v1966_v31 }
0x1d5d   :  { %v2418_v34 = vpop.permute.xlu0 %2417 }
0x1d5e   :  { %v2420_v10 = vadd.f32 %v2418_v34, %v2414_v28 }
0x1d60   :  { %2593 = vtanh.f32 %v2420_v10 }
0x1d6c   :  { %1971 = vrot.lane.b32.xlu1 %v1969_v1, %s2651_s14 }
0x1d6d   :  { %v2594_v0 = vpop.eup %2593 }
0x1d6e   :  { %v2422_v42 = vmul.f32 %v2594_v0, %v2413_v27 }
0x1d70   :  { %2080 = vrot.lane.b32.xlu1 %v2078_v19, %s2649_s3  ;;  %v2423_v33 = vmul.f32 %v2422_v42, %v3617_v18  ;;  %v2431_v45 = vmul.f32 %v2422_v42, %v3629_v32 }
0x1de0   :  { %v1859_v37 = vpop.xlane.xlu1 %1858 }
0x1de1   :  { %v1864_v29 = vadd.f32 %v1862_v54, %v1859_v37 }
0x1de3   :  { %v1865_v39 = vsel %vm1863_vm12, %v1864_v29, %v1862_v54 }
0x1de4   :  { %v1968_v4 = vpop.xlane.xlu1 %1967 }
0x1de5   :  { %v1978_v48 = vadd.f32 %v1968_v4, %v1865_v39 }
0x1de7   :  { %v1979_v50 = vsel %vm1977_vm13, %v1978_v48, %v1865_v39 }
0x1de8   :  { %v1972_v5 = vpop.permute.xlu1 %1971 }
0x1de9   :  { %v1974_v23 = vsel %vm459_vm4, %v1972_v5, 0.0 }
0x1dea   :  { %1975 = vadd.xlane.f32.xlu0 %v1974_v23 }
0x1dec   :  { %v2081_v11 = vpop.permute.xlu1 %2080 }
0x1ded   :  { %v2083_v21 = vsel %vm459_vm4, %v2081_v11, 0.0 }
0x1dee   :  { %2084 = vadd.xlane.f32.xlu1 %v2083_v21 }
0x1dff   :  { %2203 = vrot.lane.b32.xlu1 %v2201_v16, %s2651_s14 }
0x1e00   :  { %2088 = vrot.lane.b32.xlu0 %v2086_v51, %s2651_s14 }
0x1e03   :  { %2310 = vrot.lane.b32.xlu1 %v2308_v6, %s2649_s3 }
0x1e04   :  { %2195 = vrot.lane.b32.xlu0 %v2193_v22, %s2649_s3 }
0x1e07   :  { %2318 = vrot.lane.b32.xlu1 %v2316_v36, %s2651_s14 }
0x1e0b   :  { %2425 = vrot.lane.b32.xlu1 %v2423_v33, %s2649_s3 }
0x1e0f   :  { %2433 = vrot.lane.b32.xlu1 %v2431_v45, %s2651_s14 }
0x1e73   :  { %v1976_v57 = vpop.xlane.xlu0 %1975 }
0x1e74   :  { %v1981_v60 = vadd.f32 %v1979_v50, %v1976_v57 }
0x1e76   :  { %v1982_v26 = vsel %vm1980_vm14, %v1981_v60, %v1979_v50 }
0x1e77   :  { %v2089_v61 = vpop.permute.xlu0 %2088  ;;  %v2085_v63 = vpop.xlane.xlu1 %2084 }
0x1e78   :  { %v2094_v2 = vadd.f32 %v2085_v63, %v1982_v26  ;;  %v2091_v40 = vsel %vm459_vm4, %v2089_v61, 0.0 }
0x1e79   :  { %2092 = vadd.xlane.f32.xlu0 %v2091_v40 }
0x1e7a   :  { %v2095_v8 = vsel %vm1980_vm14, %v2094_v2, %v1979_v50 }
0x1e7b   :  { %v2196_v24 = vpop.permute.xlu0 %2195  ;;  %v2204_v18 = vpop.permute.xlu1 %2203 }
0x1e7c   :  { %v2198_v25 = vsel %vm459_vm4, %v2196_v24, 0.0  ;;  %v2206_v32 = vsel %vm459_vm4, %v2204_v18, 0.0 }
0x1e7d   :  { %2199 = vadd.xlane.f32.xlu0 %v2198_v25  ;;  %2207 = vadd.xlane.f32.xlu1 %v2206_v32 }
0x1e7f   :  { %v2311_v43 = vpop.permute.xlu1 %2310 }
0x1e80   :  { %v2313_v49 = vsel %vm459_vm4, %v2311_v43, 0.0 }
0x1e81   :  { %2314 = vadd.xlane.f32.xlu0 %v2313_v49 }
0x1e83   :  { %v2319_v58 = vpop.permute.xlu1 %2318 }
0x1e84   :  { %v2321_v55 = vsel %vm459_vm4, %v2319_v58, 0.0 }
0x1e85   :  { %2322 = vadd.xlane.f32.xlu0 %v2321_v55 }
0x1e87   :  { %v2426_v41 = vpop.permute.xlu1 %2425 }
0x1e88   :  { %v2428_v52 = vsel %vm459_vm4, %v2426_v41, 0.0 }
0x1e89   :  { %2429 = vadd.xlane.f32.xlu0 %v2428_v52 }
0x1e8b   :  { %v2434_v7 = vpop.permute.xlu1 %2433 }
0x1e8c   :  { %v2436_v12 = vsel %vm459_vm4, %v2434_v7, 0.0 }
0x1e8d   :  { %2437 = vadd.xlane.f32.xlu0 %v2436_v12 }
0x1f02   :  { %v2093_v15 = vpop.xlane.xlu0 %2092 }
0x1f03   :  { %v2096_v17 = vadd.f32 %v2095_v8, %v2093_v15 }
0x1f05   :  { %v2097_v56 = vsel %vm1977_vm13, %v2096_v17, %v2095_v8 }
0x1f06   :  { %v2200_v59 = vpop.xlane.xlu0 %2199  ;;  %v2208_v27 = vpop.xlane.xlu1 %2207 }
0x1f07   :  { %v2209_v46 = vadd.f32 %v2200_v59, %v2097_v56 }
0x1f09   :  { %v2210_v53 = vsel %vm1863_vm12, %v2209_v46, %v2097_v56 }
0x1f0a   :  { %v2211_v30 = vadd.f32 %v2210_v53, %v2208_v27  ;;  %v2315_v20 = vpop.xlane.xlu0 %2314 }
0x1f0c   :  { %v2212_v3 = vsel %vm1860_vm11, %v2211_v30, %v2210_v53 }
0x1f0d   :  { %v2324_v44 = vadd.f32 %v2315_v20, %v2212_v3 }
0x1f0e   :  { %v2323_v35 = vpop.xlane.xlu0 %2322 }
0x1f0f   :  { %v2325_v62 = vsel %vm1746_vm10, %v2324_v44, %v2212_v3 }
0x1f10   :  { %v2326_v9 = vadd.f32 %v2325_v62, %v2323_v35 }
0x1f12   :  { %v2430_v13 = vpop.xlane.xlu0 %2429  ;;  %v2327_v31 = vsel %vm1743_vm9, %v2326_v9, %v2325_v62 }
0x1f13   :  { %v2439_v1 = vadd.f32 %v2430_v13, %v2327_v31 }
0x1f15   :  { %v2440_v19 = vsel %vm1629_vm8, %v2439_v1, %v2327_v31 }
0x1f16   :  { %v2438_v14 = vpop.xlane.xlu0 %2437 }
0x1f17   :  { %v2441_v47 = vadd.f32 %v2440_v19, %v2438_v14 }
0x1f19   :  { %v2442_v54 = vsel %vm1626_vm7, %v2441_v47, %v2440_v19 }
0x1f1a   :  { %v2489_v37 = vmul.f32 -1.442695, %v2442_v54 }
0x1f1c   :  { %2595 = vpow2.f32 %v2489_v37 }
0x1f29   :  { %v2596_v29 = vpop.eup %2595 }
0x1f2a   :  { %v2446_v39 = vadd.f32 1.0, %v2596_v29 }
0x1f2c   :  { %2597 = vrcp.f32 %v2446_v39 }
0x1f39   :  { %v2598_v4 = vpop.eup %2597 }
0x1f3a   :  { %2449 = vst.msk [vmem:[%s3756_s10] sm:$0xff] %vm143_vm0, %v2598_v4 }
0x1f3b   :  { %2454 = vsyncpa [#allocation5], 1 }
0x1f3c   :  { %2455 = vsyncpa [#allocation7], 1 }

</bundles_post_ra>
